<compile_context>
chip_gen: v6e
topology: v6e:2x2x1
jax: 0.10.0
libtpu: 0.0.40
codegen_flags: <defaults>
</compile_context>

<pallas_src>
import jax
import jax.numpy as jnp
from jax import lax
from jax.experimental import pallas as pl
from jax.experimental.pallas import tpu as pltpu

BN_EPS = 1e-5
NUM_OPS = 5  # [none, skip_connect, avg_pool_3x3, max_pool_3x3, conv_1x1]


def _node_plan(n_big_nodes, window):
    """Static DAG plan: per node (first input state index, #edges, edge base)."""
    plan = []
    eidx = 0
    for j in range(n_big_nodes):
        avail = 2 + j
        if j + 2 < window:
            start, k = 0, avail
        else:
            start, k = avail - window, window
        plan.append((start, k, eidx))
        eidx += k
    return plan, eidx


def make_kernel(*, plan, C, W, L, n_pairs, row_pre, row_node, row_cell, c_in):
    needs_pool = set()
    for (start, k, _) in plan:
        needs_pool.update(range(start, start + k))
    C4 = 4 * C

    def kernel(wcat, masks, ws, x_ref, o_ref, st):
        f32 = jnp.float32
        # Host-precomputed (1, L) rows: float boundary masks for the avg-pool
        # FMAs, count_include_pad reciprocal, and -BIG pads for the max-pool.
        left_f = masks[pl.ds(0, 1)]
        right_f = masks[pl.ds(1, 1)]
        top_f = masks[pl.ds(2, 1)]
        bot_f = masks[pl.ds(3, 1)]
        inv_cnt = masks[pl.ds(4, 1)]
        nl = masks[pl.ds(5, 1)]
        nr = masks[pl.ds(6, 1)]
        nt = masks[pl.ds(7, 1)]
        nb_ = masks[pl.ds(8, 1)]

        def pool_avg_max(x):
            # Separable 3x3 avg (count_include_pad=False) + max on (C, L).
            # Cross-image wrap from the lane-stacked batch only ever lands on
            # masked-out boundary positions, so it never contaminates results.
            xl = pltpu.roll(x, 1, 1)        # value of (y, x-1)
            xr = pltpu.roll(x, L - 1, 1)    # value of (y, x+1)
            s_w = x + left_f * xl + right_f * xr
            m_w = jnp.maximum(x, jnp.maximum(xl + nl, xr + nr))
            su = pltpu.roll(s_w, W, 1)      # row above
            sd = pltpu.roll(s_w, L - W, 1)  # row below
            mu = pltpu.roll(m_w, W, 1)
            md = pltpu.roll(m_w, L - W, 1)
            s = s_w + top_f * su + bot_f * sd
            m = jnp.maximum(m_w, jnp.maximum(mu + nt, md + nb_))
            return s * inv_cnt, m

        def put_state(idx, v):
            base = idx * C4
            st[pl.ds(base + C, C)] = v                     # raw
            if idx in needs_pool:                          # static decision
                st[pl.ds(base, C)] = jnp.maximum(v, 0.0)   # relu (cached once)
                a, m = pool_avg_max(v)
                st[pl.ds(base + 2 * C, C)] = a             # avg3
                st[pl.ds(base + 3 * C, C)] = m             # max3

        # ---- preproc0 + preproc1 fused into one block-diagonal matmul -------
        w_pre = ws[pl.ds(row_pre, 2 * C), pl.ds(0, c_in)]
        pre = jnp.dot(w_pre, jnp.maximum(x_ref[0], 0.0),
                      preferred_element_type=f32)          # (2C, L)
        put_state(0, pre[0:C])
        put_state(1, pre[C:2 * C])

        # ---- DAG nodes: ONE fused matmul per node over the [relu|raw|avg|max]
        # ---- slabs of its K input states, then the cell conv. ---------------
        for j, (start, k_edges, _) in enumerate(plan):
            w_node = ws[pl.ds(row_node[j], C), pl.ds(0, 4 * k_edges * C)]
            s_cur = jnp.dot(w_node, st[pl.ds(start * C4, k_edges * C4)],
                            preferred_element_type=f32)    # (C, L)
            # Cell stand-in: StdConv(C->C) on (s_cur + s_cur); the x2 and the
            # BN scale are folded into the cell weight (ReLU(2x) == 2*ReLU(x)).
            w_cell = ws[pl.ds(row_cell[j], C), pl.ds(0, C)]
            put_state(j + 2, jnp.dot(w_cell, jnp.maximum(s_cur, 0.0),
                                     preferred_element_type=f32))

        # ---- CS head: ss = sum_p w_concat[p] * cat(states[4+p], states[5+p])
        def raw(idx):
            return st[pl.ds(idx * C4 + C, C)]

        top = wcat[0] * raw(4)
        bot = wcat[0] * raw(5)
        for p in range(1, n_pairs):
            top = top + wcat[p] * raw(4 + p)
            bot = bot + wcat[p] * raw(5 + p)
        o_ref[0, pl.ds(0, C)] = top     # lane-dense, unmasked stores
        o_ref[0, pl.ds(C, C)] = bot

    return kernel


def search_big_dag_cs(s0, s1, params, w_dag, w_concat, *,
                      n_big_nodes, window=3, nb=None):
    N, C_pp, H, Wd = s0.shape
    _, C_p, _, _ = s1.shape
    C = params['pre0'].shape[0]
    HW = H * Wd
    n_pairs = n_big_nodes - 3
    assert n_pairs >= 1, "SearchBigDAG_CS head needs n_big_nodes >= 4"
    plan, _ = _node_plan(n_big_nodes, window)
    n_states = n_big_nodes + 2
    f32 = jnp.float32
    bn = 1.0 / (1.0 + BN_EPS) ** 0.5

    # Batch images per grid step (stacked on the lane axis).  Prefer keeping
    # the grid length >= 2 so the "parallel" axis can shard across both v7x TCs.
    if nb is None:
        nb = 1
        for cand in (4, 2):
            if N % cand == 0 and N // cand >= 2:
                nb = cand
                break
    assert N % nb == 0
    G = N // nb
    L = nb * HW

    # ---- host-side weight folding into ONE VMEM slab (O(C^2), batch indep.) -
    wmax = max(C_pp + C_p, C, max(4 * k * C for (_, k, _) in plan))

    def pad_cols(w):
        w = jnp.asarray(w, f32)
        return jnp.pad(w, ((0, 0), (0, wmax - w.shape[1])))

    eye = jnp.eye(C, dtype=f32)
    pre_bd = jnp.zeros((2 * C, C_pp + C_p), f32)
    pre_bd = pre_bd.at[:C, :C_pp].set(bn * params['pre0'])
    pre_bd = pre_bd.at[C:, C_pp:].set(bn * params['pre1'])
    slabs = [pad_cols(pre_bd)]
    row_pre, off = 0, 2 * C
    row_node, row_cell = [], []
    for j, (start, k, ebase) in enumerate(plan):
        blocks = []
        for kk in range(k):
            w = w_dag[j][kk]
            blocks += [(bn * w[4]) * params['mixed'][ebase + kk],  # relu rows
                       w[1] * eye,                                 # raw rows
                       w[2] * eye,                                 # avg rows
                       w[3] * eye]                                 # max rows
        slabs.append(pad_cols(jnp.concatenate(blocks, axis=1)))    # (C, 4KC)
        row_node.append(off)
        off += C
    for j in range(n_big_nodes):
        slabs.append(pad_cols((2.0 * bn) * params['cell'][j]))
        row_cell.append(off)
        off += C
    ws = jnp.concatenate(slabs, axis=0)                  # ((2+2n)*C, wmax)

    # ---- host-side boundary masks / pool denominators (DMA'd once) ----------
    hw = jnp.arange(HW, dtype=jnp.int32)
    colx, rowy = hw % Wd, hw // Wd
    left = (colx != 0).astype(f32)
    right = (colx != Wd - 1).astype(f32)
    topm = (rowy != 0).astype(f32)
    botm = (rowy != H - 1).astype(f32)
    inv_cnt = 1.0 / ((1.0 + left + right) * (1.0 + topm + botm))
    BIG = jnp.float32(1e30)
    masks = jnp.tile(jnp.stack([left, right, topm, botm, inv_cnt,
                                (left - 1.0) * BIG, (right - 1.0) * BIG,
                                (topm - 1.0) * BIG, (botm - 1.0) * BIG]),
                     (1, nb))                            # (9, L)

    # ---- lane-dense activations: (G, C, nb*HW) with batch stacked on lanes --
    def lane_stack(x):
        Cx = x.shape[1]
        return (x.reshape(G, nb, Cx, HW).transpose(0, 2, 1, 3)
                 .reshape(G, Cx, L).astype(f32))

    x_in = jnp.concatenate([lane_stack(s0), lane_stack(s1)], axis=1)
    wcat = jnp.asarray(w_concat, f32)[:n_pairs]

    kernel = make_kernel(plan=plan, C=C, W=Wd, L=L, n_pairs=n_pairs,
                         row_pre=row_pre, row_node=row_node,
                         row_cell=row_cell, c_in=C_pp + C_p)
    out = pl.pallas_call(
        kernel,
        out_shape=jax.ShapeDtypeStruct((G, 2 * C, L), f32),
        grid=(G,),
        in_specs=[
            pl.BlockSpec(memory_space=pltpu.MemorySpace.SMEM),      # wcat
            pl.BlockSpec(masks.shape, lambda n: (0, 0)),            # masks
            pl.BlockSpec(ws.shape, lambda n: (0, 0)),               # weights
            pl.BlockSpec((1, C_pp + C_p, L), lambda n: (n, 0, 0)),  # s0|s1
        ],
        out_specs=pl.BlockSpec((1, 2 * C, L), lambda n: (n, 0, 0)),
        scratch_shapes=[pltpu.VMEM((n_states * 4 * C, L), f32)],    # state slabs
        compiler_params=pltpu.CompilerParams(
            dimension_semantics=("parallel",)),
    )(wcat, masks, ws, x_in)
    return (out.reshape(G, 2 * C, nb, HW).transpose(0, 2, 1, 3)
               .reshape(N, 2 * C, H, Wd))


def reference_forward(s0, s1, params, w_dag, w_concat, *, n_big_nodes, window):
    """Plain-JAX reference mirroring the PyTorch SearchBigDAG_CS forward (NCHW)."""
    bn = 1.0 / (1.0 + BN_EPS) ** 0.5

    def stdconv(x, w):
        return jnp.einsum('oc,nchw->nohw', w, jnp.maximum(x, 0.0),
                          precision=lax.Precision.HIGHEST) * bn

    def avg3(x):
        s = lax.reduce_window(x, 0.0, lax.add, (1, 1, 3, 3), (1, 1, 1, 1), 'SAME')
        cnt = lax.reduce_window(jnp.ones_like(x), 0.0, lax.add,
                                (1, 1, 3, 3), (1, 1, 1, 1), 'SAME')
        return s / cnt

    def max3(x):
        return lax.reduce_window(x, -jnp.inf, lax.max,
                                 (1, 1, 3, 3), (1, 1, 1, 1), 'SAME')

    def mixed(x, w, cw):
        return w[1] * x + w[2] * avg3(x) + w[3] * max3(x) + w[4] * stdconv(x, cw)

    states = [stdconv(s0, params['pre0']), stdconv(s1, params['pre1'])]
    eidx = 0
    for j in range(n_big_nodes):
        ins = list(states) if j + 2 < window else states[-window:]
        s_cur = 0.0
        for i, x in enumerate(ins):
            s_cur = s_cur + mixed(x, w_dag[j][i], params['mixed'][eidx])
            eidx += 1
        states.append(stdconv(s_cur + s_cur, params['cell'][j]))

    s_out = [jnp.concatenate([states[i], states[i + 1]], axis=1)
             for i in range(4, n_big_nodes + 1)]
    return sum(wc * so for wc, so in zip(w_concat, s_out))


if __name__ == "__main__":
    # N=4 so two images stack on the lane axis per grid step and the grid
    # stays length 2 (v7x both-TC friendly).
    N, C_pp, C_p, C, H, W = 4, 8, 8, 8, 16, 16
    n_big_nodes, window = 5, 3
    ecounts = [2 + j if j + 2 < window else window for j in range(n_big_nodes)]
    n_edges = sum(ecounts)
    n_pairs = n_big_nodes - 3

    key = jax.random.PRNGKey(0)
    kit = iter(jax.random.split(key, 4 + n_edges + 2 * n_big_nodes + 1))

    s0 = jax.random.normal(next(kit), (N, C_pp, H, W), jnp.float32)
    s1 = jax.random.normal(next(kit), (N, C_p, H, W), jnp.float32)
    pre0 = jax.random.normal(next(kit), (C, C_pp), jnp.float32) * 0.5
    pre1 = jax.random.normal(next(kit), (C, C_p), jnp.float32) * 0.5
    mixed_ws = [jax.random.normal(next(kit), (C, C), jnp.float32) * 0.3
                for _ in range(n_edges)]
    cell_ws = [jax.random.normal(next(kit), (C, C), jnp.float32) * 0.3
               for _ in range(n_big_nodes)]

    w_dag = []
    for j in range(n_big_nodes):
        node_w = jax.nn.softmax(
            jax.random.normal(next(kit), (ecounts[j], NUM_OPS), jnp.float32),
            axis=-1)
        w_dag.append([node_w[i] for i in range(ecounts[j])])
    w_concat = jax.nn.softmax(
        jax.random.normal(next(kit), (n_pairs,), jnp.float32))

    params = {'pre0': pre0, 'pre1': pre1, 'mixed': mixed_ws, 'cell': cell_ws}

    out = search_big_dag_cs(s0, s1, params, w_dag, w_concat,
                            n_big_nodes=n_big_nodes, window=window)
    out = jax.block_until_ready(out)

    ref = jax.block_until_ready(
        reference_forward(s0, s1, params, w_dag, w_concat,
                          n_big_nodes=n_big_nodes, window=window))

    assert out.shape == (N, 2 * C, H, W)
    if not jnp.allclose(out, ref, rtol=2e-2, atol=2e-2):
        raise AssertionError(
            f"mismatch, max abs err = {jnp.max(jnp.abs(out - ref))}")
    print("KERNEL_OK")
</pallas_src>

<mosaic_0001>
module attributes {stable_mosaic.version = 11 : i64} {
  func.func @kernel(%arg0: i32, %arg1: memref<2xf32, #tpu.memory_space<smem>>, %arg2: memref<9x512xf32, #tpu.memory_space<vmem>>, %arg3: memref<96x96xf32, #tpu.memory_space<vmem>>, %arg4: memref<1x16x512xf32, #tpu.memory_space<vmem>>, %arg5: memref<1x16x512xf32, #tpu.memory_space<vmem>>, %arg6: memref<224x512xf32, #tpu.memory_space<vmem>>) attributes {dimension_semantics = [#tpu.dimension_semantics<parallel>], iteration_bounds = array<i64: 2>, scalar_prefetch = 0 : i64, scratch_operands = 1 : i64, tpu.core_type = #tpu.core_type<tc>, window_params = [{transform_indices = @transform_0, window_bounds = array<i64: 2>}, {pipeline_mode = #tpu.pipeline_mode<synchronous>, transform_indices = @transform_1, window_bounds = array<i64: 9, 512>}, {pipeline_mode = #tpu.pipeline_mode<synchronous>, transform_indices = @transform_2, window_bounds = array<i64: 96, 96>}, {transform_indices = @transform_3, window_bounds = array<i64: 1, 16, 512>}, {transform_indices = @transform_4, window_bounds = array<i64: 1, 16, 512>}]} {
    %c0 = arith.constant 0 : index
    %c0_0 = arith.constant 0 : index
    %0 = vector.load %arg2[%c0, %c0_0] : memref<9x512xf32, #tpu.memory_space<vmem>>, vector<1x512xf32>
    %c1 = arith.constant 1 : index
    %c0_1 = arith.constant 0 : index
    %1 = vector.load %arg2[%c1, %c0_1] : memref<9x512xf32, #tpu.memory_space<vmem>>, vector<1x512xf32>
    %c2 = arith.constant 2 : index
    %c0_2 = arith.constant 0 : index
    %2 = vector.load %arg2[%c2, %c0_2] : memref<9x512xf32, #tpu.memory_space<vmem>>, vector<1x512xf32>
    %c3 = arith.constant 3 : index
    %c0_3 = arith.constant 0 : index
    %3 = vector.load %arg2[%c3, %c0_3] : memref<9x512xf32, #tpu.memory_space<vmem>>, vector<1x512xf32>
    %c4 = arith.constant 4 : index
    %c0_4 = arith.constant 0 : index
    %4 = vector.load %arg2[%c4, %c0_4] : memref<9x512xf32, #tpu.memory_space<vmem>>, vector<1x512xf32>
    %c5 = arith.constant 5 : index
    %c0_5 = arith.constant 0 : index
    %5 = vector.load %arg2[%c5, %c0_5] : memref<9x512xf32, #tpu.memory_space<vmem>>, vector<1x512xf32>
    %c6 = arith.constant 6 : index
    %c0_6 = arith.constant 0 : index
    %6 = vector.load %arg2[%c6, %c0_6] : memref<9x512xf32, #tpu.memory_space<vmem>>, vector<1x512xf32>
    %c7 = arith.constant 7 : index
    %c0_7 = arith.constant 0 : index
    %7 = vector.load %arg2[%c7, %c0_7] : memref<9x512xf32, #tpu.memory_space<vmem>>, vector<1x512xf32>
    %c8 = arith.constant 8 : index
    %c0_8 = arith.constant 0 : index
    %8 = vector.load %arg2[%c8, %c0_8] : memref<9x512xf32, #tpu.memory_space<vmem>>, vector<1x512xf32>
    %c0_9 = arith.constant 0 : index
    %c0_10 = arith.constant 0 : index
    %9 = vector.load %arg3[%c0_9, %c0_10] : memref<96x96xf32, #tpu.memory_space<vmem>>, vector<16x16xf32>
    %c0_11 = arith.constant 0 : index
    %c0_12 = arith.constant 0 : index
    %c0_13 = arith.constant 0 : index
    %10 = vector.load %arg4[%c0_11, %c0_12, %c0_13] : memref<1x16x512xf32, #tpu.memory_space<vmem>>, vector<1x16x512xf32>
    %11 = vector.shape_cast %10 : vector<1x16x512xf32> to vector<16x512xf32>
    %cst = arith.constant 0.000000e+00 : f32
    %12 = vector.broadcast %cst : f32 to vector<16x512xf32>
    %13 = arith.maximumf %11, %12 : vector<16x512xf32>
    %cst_14 = arith.constant dense<0.000000e+00> : vector<16x512xf32>
    %14 = tpu.matmul %9, %13, %cst_14 {dimension_numbers = #tpu.dot_dimension_numbers<[1], [0], [0], [1], [0, 0, 1, 1], [], []>} : vector<16x16xf32>, vector<16x512xf32>, vector<16x512xf32> -> vector<16x512xf32>
    %15 = vector.extract_strided_slice %14 {offsets = [0, 0], sizes = [8, 512], strides = [1, 1]} : vector<16x512xf32> to vector<8x512xf32>
    %c8_15 = arith.constant 8 : index
    %c0_16 = arith.constant 0 : index
    %16 = vector.load %arg6[%c8_15, %c0_16] : memref<224x512xf32, #tpu.memory_space<vmem>>, vector<8x512xf32>
    tpu.vector_store %arg6[%c8_15, %c0_16], %15 {strides = array<i32>} : memref<224x512xf32, #tpu.memory_space<vmem>>, vector<8x512xf32>,
    %cst_17 = arith.constant 0.000000e+00 : f32
    %17 = vector.broadcast %cst_17 : f32 to vector<8x512xf32>
    %18 = arith.maximumf %15, %17 : vector<8x512xf32>
    %c0_18 = arith.constant 0 : index
    %c0_19 = arith.constant 0 : index
    %19 = vector.load %arg6[%c0_18, %c0_19] : memref<224x512xf32, #tpu.memory_space<vmem>>, vector<8x512xf32>
    tpu.vector_store %arg6[%c0_18, %c0_19], %18 {strides = array<i32>} : memref<224x512xf32, #tpu.memory_space<vmem>>, vector<8x512xf32>,
    %c1_i32 = arith.constant 1 : i32
    %20 = tpu.dynamic_rotate %15 by %c1_i32 dim 1 : vector<8x512xf32>, i32 -> vector<8x512xf32>
    %c511_i32 = arith.constant 511 : i32
    %21 = tpu.dynamic_rotate %15 by %c511_i32 dim 1 : vector<8x512xf32>, i32 -> vector<8x512xf32>
    %22 = vector.broadcast %0 : vector<1x512xf32> to vector<8x512xf32>
    %23 = arith.mulf %22, %20 : vector<8x512xf32>
    %24 = arith.addf %15, %23 : vector<8x512xf32>
    %25 = vector.broadcast %1 : vector<1x512xf32> to vector<8x512xf32>
    %26 = arith.mulf %25, %21 : vector<8x512xf32>
    %27 = arith.addf %24, %26 : vector<8x512xf32>
    %28 = vector.broadcast %5 : vector<1x512xf32> to vector<8x512xf32>
    %29 = arith.addf %20, %28 : vector<8x512xf32>
    %30 = vector.broadcast %6 : vector<1x512xf32> to vector<8x512xf32>
    %31 = arith.addf %21, %30 : vector<8x512xf32>
    %32 = arith.maximumf %29, %31 : vector<8x512xf32>
    %33 = arith.maximumf %15, %32 : vector<8x512xf32>
    %c16_i32 = arith.constant 16 : i32
    %34 = tpu.dynamic_rotate %27 by %c16_i32 dim 1 : vector<8x512xf32>, i32 -> vector<8x512xf32>
    %c496_i32 = arith.constant 496 : i32
    %35 = tpu.dynamic_rotate %27 by %c496_i32 dim 1 : vector<8x512xf32>, i32 -> vector<8x512xf32>
    %c16_i32_20 = arith.constant 16 : i32
    %36 = tpu.dynamic_rotate %33 by %c16_i32_20 dim 1 : vector<8x512xf32>, i32 -> vector<8x512xf32>
    %c496_i32_21 = arith.constant 496 : i32
    %37 = tpu.dynamic_rotate %33 by %c496_i32_21 dim 1 : vector<8x512xf32>, i32 -> vector<8x512xf32>
    %38 = vector.broadcast %2 : vector<1x512xf32> to vector<8x512xf32>
    %39 = arith.mulf %38, %34 : vector<8x512xf32>
    %40 = arith.addf %27, %39 : vector<8x512xf32>
    %41 = vector.broadcast %3 : vector<1x512xf32> to vector<8x512xf32>
    %42 = arith.mulf %41, %35 : vector<8x512xf32>
    %43 = arith.addf %40, %42 : vector<8x512xf32>
    %44 = vector.broadcast %7 : vector<1x512xf32> to vector<8x512xf32>
    %45 = arith.addf %36, %44 : vector<8x512xf32>
    %46 = vector.broadcast %8 : vector<1x512xf32> to vector<8x512xf32>
    %47 = arith.addf %37, %46 : vector<8x512xf32>
    %48 = arith.maximumf %45, %47 : vector<8x512xf32>
    %49 = arith.maximumf %33, %48 : vector<8x512xf32>
    %50 = vector.broadcast %4 : vector<1x512xf32> to vector<8x512xf32>
    %51 = arith.mulf %43, %50 : vector<8x512xf32>
    %c16 = arith.constant 16 : index
    %c0_22 = arith.constant 0 : index
    %52 = vector.load %arg6[%c16, %c0_22] : memref<224x512xf32, #tpu.memory_space<vmem>>, vector<8x512xf32>
    tpu.vector_store %arg6[%c16, %c0_22], %51 {strides = array<i32>} : memref<224x512xf32, #tpu.memory_space<vmem>>, vector<8x512xf32>,
    %c24 = arith.constant 24 : index
    %c0_23 = arith.constant 0 : index
    %53 = vector.load %arg6[%c24, %c0_23] : memref<224x512xf32, #tpu.memory_space<vmem>>, vector<8x512xf32>
    tpu.vector_store %arg6[%c24, %c0_23], %49 {strides = array<i32>} : memref<224x512xf32, #tpu.memory_space<vmem>>, vector<8x512xf32>,
    %54 = vector.extract_strided_slice %14 {offsets = [8, 0], sizes = [8, 512], strides = [1, 1]} : vector<16x512xf32> to vector<8x512xf32>
    %c40 = arith.constant 40 : index
    %c0_24 = arith.constant 0 : index
    %55 = vector.load %arg6[%c40, %c0_24] : memref<224x512xf32, #tpu.memory_space<vmem>>, vector<8x512xf32>
    tpu.vector_store %arg6[%c40, %c0_24], %54 {strides = array<i32>} : memref<224x512xf32, #tpu.memory_space<vmem>>, vector<8x512xf32>,
    %cst_25 = arith.constant 0.000000e+00 : f32
    %56 = vector.broadcast %cst_25 : f32 to vector<8x512xf32>
    %57 = arith.maximumf %54, %56 : vector<8x512xf32>
    %c32 = arith.constant 32 : index
    %c0_26 = arith.constant 0 : index
    %58 = vector.load %arg6[%c32, %c0_26] : memref<224x512xf32, #tpu.memory_space<vmem>>, vector<8x512xf32>
    tpu.vector_store %arg6[%c32, %c0_26], %57 {strides = array<i32>} : memref<224x512xf32, #tpu.memory_space<vmem>>, vector<8x512xf32>,
    %c1_i32_27 = arith.constant 1 : i32
    %59 = tpu.dynamic_rotate %54 by %c1_i32_27 dim 1 : vector<8x512xf32>, i32 -> vector<8x512xf32>
    %c511_i32_28 = arith.constant 511 : i32
    %60 = tpu.dynamic_rotate %54 by %c511_i32_28 dim 1 : vector<8x512xf32>, i32 -> vector<8x512xf32>
    %61 = vector.broadcast %0 : vector<1x512xf32> to vector<8x512xf32>
    %62 = arith.mulf %61, %59 : vector<8x512xf32>
    %63 = arith.addf %54, %62 : vector<8x512xf32>
    %64 = vector.broadcast %1 : vector<1x512xf32> to vector<8x512xf32>
    %65 = arith.mulf %64, %60 : vector<8x512xf32>
    %66 = arith.addf %63, %65 : vector<8x512xf32>
    %67 = vector.broadcast %5 : vector<1x512xf32> to vector<8x512xf32>
    %68 = arith.addf %59, %67 : vector<8x512xf32>
    %69 = vector.broadcast %6 : vector<1x512xf32> to vector<8x512xf32>
    %70 = arith.addf %60, %69 : vector<8x512xf32>
    %71 = arith.maximumf %68, %70 : vector<8x512xf32>
    %72 = arith.maximumf %54, %71 : vector<8x512xf32>
    %c16_i32_29 = arith.constant 16 : i32
    %73 = tpu.dynamic_rotate %66 by %c16_i32_29 dim 1 : vector<8x512xf32>, i32 -> vector<8x512xf32>
    %c496_i32_30 = arith.constant 496 : i32
    %74 = tpu.dynamic_rotate %66 by %c496_i32_30 dim 1 : vector<8x512xf32>, i32 -> vector<8x512xf32>
    %c16_i32_31 = arith.constant 16 : i32
    %75 = tpu.dynamic_rotate %72 by %c16_i32_31 dim 1 : vector<8x512xf32>, i32 -> vector<8x512xf32>
    %c496_i32_32 = arith.constant 496 : i32
    %76 = tpu.dynamic_rotate %72 by %c496_i32_32 dim 1 : vector<8x512xf32>, i32 -> vector<8x512xf32>
    %77 = vector.broadcast %2 : vector<1x512xf32> to vector<8x512xf32>
    %78 = arith.mulf %77, %73 : vector<8x512xf32>
    %79 = arith.addf %66, %78 : vector<8x512xf32>
    %80 = vector.broadcast %3 : vector<1x512xf32> to vector<8x512xf32>
    %81 = arith.mulf %80, %74 : vector<8x512xf32>
    %82 = arith.addf %79, %81 : vector<8x512xf32>
    %83 = vector.broadcast %7 : vector<1x512xf32> to vector<8x512xf32>
    %84 = arith.addf %75, %83 : vector<8x512xf32>
    %85 = vector.broadcast %8 : vector<1x512xf32> to vector<8x512xf32>
    %86 = arith.addf %76, %85 : vector<8x512xf32>
    %87 = arith.maximumf %84, %86 : vector<8x512xf32>
    %88 = arith.maximumf %72, %87 : vector<8x512xf32>
    %89 = vector.broadcast %4 : vector<1x512xf32> to vector<8x512xf32>
    %90 = arith.mulf %82, %89 : vector<8x512xf32>
    %c48 = arith.constant 48 : index
    %c0_33 = arith.constant 0 : index
    %91 = vector.load %arg6[%c48, %c0_33] : memref<224x512xf32, #tpu.memory_space<vmem>>, vector<8x512xf32>
    tpu.vector_store %arg6[%c48, %c0_33], %90 {strides = array<i32>} : memref<224x512xf32, #tpu.memory_space<vmem>>, vector<8x512xf32>,
    %c56 = arith.constant 56 : index
    %c0_34 = arith.constant 0 : index
    %92 = vector.load %arg6[%c56, %c0_34] : memref<224x512xf32, #tpu.memory_space<vmem>>, vector<8x512xf32>
    tpu.vector_store %arg6[%c56, %c0_34], %88 {strides = array<i32>} : memref<224x512xf32, #tpu.memory_space<vmem>>, vector<8x512xf32>,
    %c16_35 = arith.constant 16 : index
    %c0_36 = arith.constant 0 : index
    %93 = vector.load %arg3[%c16_35, %c0_36] : memref<96x96xf32, #tpu.memory_space<vmem>>, vector<8x64xf32>
    %c0_37 = arith.constant 0 : index
    %c0_38 = arith.constant 0 : index
    %94 = vector.load %arg6[%c0_37, %c0_38] : memref<224x512xf32, #tpu.memory_space<vmem>>, vector<64x512xf32>
    %cst_39 = arith.constant dense<0.000000e+00> : vector<8x512xf32>
    %95 = tpu.matmul %93, %94, %cst_39 {dimension_numbers = #tpu.dot_dimension_numbers<[1], [0], [0], [1], [0, 0, 1, 1], [], []>} : vector<8x64xf32>, vector<64x512xf32>, vector<8x512xf32> -> vector<8x512xf32>
    %c56_40 = arith.constant 56 : index
    %c0_41 = arith.constant 0 : index
    %96 = vector.load %arg3[%c56_40, %c0_41] : memref<96x96xf32, #tpu.memory_space<vmem>>, vector<8x8xf32>
    %cst_42 = arith.constant 0.000000e+00 : f32
    %97 = vector.broadcast %cst_42 : f32 to vector<8x512xf32>
    %98 = arith.maximumf %95, %97 : vector<8x512xf32>
    %cst_43 = arith.constant dense<0.000000e+00> : vector<8x512xf32>
    %99 = tpu.matmul %96, %98, %cst_43 {dimension_numbers = #tpu.dot_dimension_numbers<[1], [0], [0], [1], [0, 0, 1, 1], [], []>} : vector<8x8xf32>, vector<8x512xf32>, vector<8x512xf32> -> vector<8x512xf32>
    %c72 = arith.constant 72 : index
    %c0_44 = arith.constant 0 : index
    %100 = vector.load %arg6[%c72, %c0_44] : memref<224x512xf32, #tpu.memory_space<vmem>>, vector<8x512xf32>
    tpu.vector_store %arg6[%c72, %c0_44], %99 {strides = array<i32>} : memref<224x512xf32, #tpu.memory_space<vmem>>, vector<8x512xf32>,
    %cst_45 = arith.constant 0.000000e+00 : f32
    %101 = vector.broadcast %cst_45 : f32 to vector<8x512xf32>
    %102 = arith.maximumf %99, %101 : vector<8x512xf32>
    %c64 = arith.constant 64 : index
    %c0_46 = arith.constant 0 : index
    %103 = vector.load %arg6[%c64, %c0_46] : memref<224x512xf32, #tpu.memory_space<vmem>>, vector<8x512xf32>
    tpu.vector_store %arg6[%c64, %c0_46], %102 {strides = array<i32>} : memref<224x512xf32, #tpu.memory_space<vmem>>, vector<8x512xf32>,
    %c1_i32_47 = arith.constant 1 : i32
    %104 = tpu.dynamic_rotate %99 by %c1_i32_47 dim 1 : vector<8x512xf32>, i32 -> vector<8x512xf32>
    %c511_i32_48 = arith.constant 511 : i32
    %105 = tpu.dynamic_rotate %99 by %c511_i32_48 dim 1 : vector<8x512xf32>, i32 -> vector<8x512xf32>
    %106 = vector.broadcast %0 : vector<1x512xf32> to vector<8x512xf32>
    %107 = arith.mulf %106, %104 : vector<8x512xf32>
    %108 = arith.addf %99, %107 : vector<8x512xf32>
    %109 = vector.broadcast %1 : vector<1x512xf32> to vector<8x512xf32>
    %110 = arith.mulf %109, %105 : vector<8x512xf32>
    %111 = arith.addf %108, %110 : vector<8x512xf32>
    %112 = vector.broadcast %5 : vector<1x512xf32> to vector<8x512xf32>
    %113 = arith.addf %104, %112 : vector<8x512xf32>
    %114 = vector.broadcast %6 : vector<1x512xf32> to vector<8x512xf32>
    %115 = arith.addf %105, %114 : vector<8x512xf32>
    %116 = arith.maximumf %113, %115 : vector<8x512xf32>
    %117 = arith.maximumf %99, %116 : vector<8x512xf32>
    %c16_i32_49 = arith.constant 16 : i32
    %118 = tpu.dynamic_rotate %111 by %c16_i32_49 dim 1 : vector<8x512xf32>, i32 -> vector<8x512xf32>
    %c496_i32_50 = arith.constant 496 : i32
    %119 = tpu.dynamic_rotate %111 by %c496_i32_50 dim 1 : vector<8x512xf32>, i32 -> vector<8x512xf32>
    %c16_i32_51 = arith.constant 16 : i32
    %120 = tpu.dynamic_rotate %117 by %c16_i32_51 dim 1 : vector<8x512xf32>, i32 -> vector<8x512xf32>
    %c496_i32_52 = arith.constant 496 : i32
    %121 = tpu.dynamic_rotate %117 by %c496_i32_52 dim 1 : vector<8x512xf32>, i32 -> vector<8x512xf32>
    %122 = vector.broadcast %2 : vector<1x512xf32> to vector<8x512xf32>
    %123 = arith.mulf %122, %118 : vector<8x512xf32>
    %124 = arith.addf %111, %123 : vector<8x512xf32>
    %125 = vector.broadcast %3 : vector<1x512xf32> to vector<8x512xf32>
    %126 = arith.mulf %125, %119 : vector<8x512xf32>
    %127 = arith.addf %124, %126 : vector<8x512xf32>
    %128 = vector.broadcast %7 : vector<1x512xf32> to vector<8x512xf32>
    %129 = arith.addf %120, %128 : vector<8x512xf32>
    %130 = vector.broadcast %8 : vector<1x512xf32> to vector<8x512xf32>
    %131 = arith.addf %121, %130 : vector<8x512xf32>
    %132 = arith.maximumf %129, %131 : vector<8x512xf32>
    %133 = arith.maximumf %117, %132 : vector<8x512xf32>
    %134 = vector.broadcast %4 : vector<1x512xf32> to vector<8x512xf32>
    %135 = arith.mulf %127, %134 : vector<8x512xf32>
    %c80 = arith.constant 80 : index
    %c0_53 = arith.constant 0 : index
    %136 = vector.load %arg6[%c80, %c0_53] : memref<224x512xf32, #tpu.memory_space<vmem>>, vector<8x512xf32>
    tpu.vector_store %arg6[%c80, %c0_53], %135 {strides = array<i32>} : memref<224x512xf32, #tpu.memory_space<vmem>>, vector<8x512xf32>,
    %c88 = arith.constant 88 : index
    %c0_54 = arith.constant 0 : index
    %137 = vector.load %arg6[%c88, %c0_54] : memref<224x512xf32, #tpu.memory_space<vmem>>, vector<8x512xf32>
    tpu.vector_store %arg6[%c88, %c0_54], %133 {strides = array<i32>} : memref<224x512xf32, #tpu.memory_space<vmem>>, vector<8x512xf32>,
    %c24_55 = arith.constant 24 : index
    %c0_56 = arith.constant 0 : index
    %138 = vector.load %arg3[%c24_55, %c0_56] : memref<96x96xf32, #tpu.memory_space<vmem>>, vector<8x96xf32>
    %c0_57 = arith.constant 0 : index
    %c0_58 = arith.constant 0 : index
    %139 = vector.load %arg6[%c0_57, %c0_58] : memref<224x512xf32, #tpu.memory_space<vmem>>, vector<96x512xf32>
    %cst_59 = arith.constant dense<0.000000e+00> : vector<8x512xf32>
    %140 = tpu.matmul %138, %139, %cst_59 {dimension_numbers = #tpu.dot_dimension_numbers<[1], [0], [0], [1], [0, 0, 1, 1], [], []>} : vector<8x96xf32>, vector<96x512xf32>, vector<8x512xf32> -> vector<8x512xf32>
    %c64_60 = arith.constant 64 : index
    %c0_61 = arith.constant 0 : index
    %141 = vector.load %arg3[%c64_60, %c0_61] : memref<96x96xf32, #tpu.memory_space<vmem>>, vector<8x8xf32>
    %cst_62 = arith.constant 0.000000e+00 : f32
    %142 = vector.broadcast %cst_62 : f32 to vector<8x512xf32>
    %143 = arith.maximumf %140, %142 : vector<8x512xf32>
    %cst_63 = arith.constant dense<0.000000e+00> : vector<8x512xf32>
    %144 = tpu.matmul %141, %143, %cst_63 {dimension_numbers = #tpu.dot_dimension_numbers<[1], [0], [0], [1], [0, 0, 1, 1], [], []>} : vector<8x8xf32>, vector<8x512xf32>, vector<8x512xf32> -> vector<8x512xf32>
    %c104 = arith.constant 104 : index
    %c0_64 = arith.constant 0 : index
    %145 = vector.load %arg6[%c104, %c0_64] : memref<224x512xf32, #tpu.memory_space<vmem>>, vector<8x512xf32>
    tpu.vector_store %arg6[%c104, %c0_64], %144 {strides = array<i32>} : memref<224x512xf32, #tpu.memory_space<vmem>>, vector<8x512xf32>,
    %cst_65 = arith.constant 0.000000e+00 : f32
    %146 = vector.broadcast %cst_65 : f32 to vector<8x512xf32>
    %147 = arith.maximumf %144, %146 : vector<8x512xf32>
    %c96 = arith.constant 96 : index
    %c0_66 = arith.constant 0 : index
    %148 = vector.load %arg6[%c96, %c0_66] : memref<224x512xf32, #tpu.memory_space<vmem>>, vector<8x512xf32>
    tpu.vector_store %arg6[%c96, %c0_66], %147 {strides = array<i32>} : memref<224x512xf32, #tpu.memory_space<vmem>>, vector<8x512xf32>,
    %c1_i32_67 = arith.constant 1 : i32
    %149 = tpu.dynamic_rotate %144 by %c1_i32_67 dim 1 : vector<8x512xf32>, i32 -> vector<8x512xf32>
    %c511_i32_68 = arith.constant 511 : i32
    %150 = tpu.dynamic_rotate %144 by %c511_i32_68 dim 1 : vector<8x512xf32>, i32 -> vector<8x512xf32>
    %151 = vector.broadcast %0 : vector<1x512xf32> to vector<8x512xf32>
    %152 = arith.mulf %151, %149 : vector<8x512xf32>
    %153 = arith.addf %144, %152 : vector<8x512xf32>
    %154 = vector.broadcast %1 : vector<1x512xf32> to vector<8x512xf32>
    %155 = arith.mulf %154, %150 : vector<8x512xf32>
    %156 = arith.addf %153, %155 : vector<8x512xf32>
    %157 = vector.broadcast %5 : vector<1x512xf32> to vector<8x512xf32>
    %158 = arith.addf %149, %157 : vector<8x512xf32>
    %159 = vector.broadcast %6 : vector<1x512xf32> to vector<8x512xf32>
    %160 = arith.addf %150, %159 : vector<8x512xf32>
    %161 = arith.maximumf %158, %160 : vector<8x512xf32>
    %162 = arith.maximumf %144, %161 : vector<8x512xf32>
    %c16_i32_69 = arith.constant 16 : i32
    %163 = tpu.dynamic_rotate %156 by %c16_i32_69 dim 1 : vector<8x512xf32>, i32 -> vector<8x512xf32>
    %c496_i32_70 = arith.constant 496 : i32
    %164 = tpu.dynamic_rotate %156 by %c496_i32_70 dim 1 : vector<8x512xf32>, i32 -> vector<8x512xf32>
    %c16_i32_71 = arith.constant 16 : i32
    %165 = tpu.dynamic_rotate %162 by %c16_i32_71 dim 1 : vector<8x512xf32>, i32 -> vector<8x512xf32>
    %c496_i32_72 = arith.constant 496 : i32
    %166 = tpu.dynamic_rotate %162 by %c496_i32_72 dim 1 : vector<8x512xf32>, i32 -> vector<8x512xf32>
    %167 = vector.broadcast %2 : vector<1x512xf32> to vector<8x512xf32>
    %168 = arith.mulf %167, %163 : vector<8x512xf32>
    %169 = arith.addf %156, %168 : vector<8x512xf32>
    %170 = vector.broadcast %3 : vector<1x512xf32> to vector<8x512xf32>
    %171 = arith.mulf %170, %164 : vector<8x512xf32>
    %172 = arith.addf %169, %171 : vector<8x512xf32>
    %173 = vector.broadcast %7 : vector<1x512xf32> to vector<8x512xf32>
    %174 = arith.addf %165, %173 : vector<8x512xf32>
    %175 = vector.broadcast %8 : vector<1x512xf32> to vector<8x512xf32>
    %176 = arith.addf %166, %175 : vector<8x512xf32>
    %177 = arith.maximumf %174, %176 : vector<8x512xf32>
    %178 = arith.maximumf %162, %177 : vector<8x512xf32>
    %179 = vector.broadcast %4 : vector<1x512xf32> to vector<8x512xf32>
    %180 = arith.mulf %172, %179 : vector<8x512xf32>
    %c112 = arith.constant 112 : index
    %c0_73 = arith.constant 0 : index
    %181 = vector.load %arg6[%c112, %c0_73] : memref<224x512xf32, #tpu.memory_space<vmem>>, vector<8x512xf32>
    tpu.vector_store %arg6[%c112, %c0_73], %180 {strides = array<i32>} : memref<224x512xf32, #tpu.memory_space<vmem>>, vector<8x512xf32>,
    %c120 = arith.constant 120 : index
    %c0_74 = arith.constant 0 : index
    %182 = vector.load %arg6[%c120, %c0_74] : memref<224x512xf32, #tpu.memory_space<vmem>>, vector<8x512xf32>
    tpu.vector_store %arg6[%c120, %c0_74], %178 {strides = array<i32>} : memref<224x512xf32, #tpu.memory_space<vmem>>, vector<8x512xf32>,
    %c32_75 = arith.constant 32 : index
    %c0_76 = arith.constant 0 : index
    %183 = vector.load %arg3[%c32_75, %c0_76] : memref<96x96xf32, #tpu.memory_space<vmem>>, vector<8x96xf32>
    %c32_77 = arith.constant 32 : index
    %c0_78 = arith.constant 0 : index
    %184 = vector.load %arg6[%c32_77, %c0_78] : memref<224x512xf32, #tpu.memory_space<vmem>>, vector<96x512xf32>
    %cst_79 = arith.constant dense<0.000000e+00> : vector<8x512xf32>
    %185 = tpu.matmul %183, %184, %cst_79 {dimension_numbers = #tpu.dot_dimension_numbers<[1], [0], [0], [1], [0, 0, 1, 1], [], []>} : vector<8x96xf32>, vector<96x512xf32>, vector<8x512xf32> -> vector<8x512xf32>
    %c72_80 = arith.constant 72 : index
    %c0_81 = arith.constant 0 : index
    %186 = vector.load %arg3[%c72_80, %c0_81] : memref<96x96xf32, #tpu.memory_space<vmem>>, vector<8x8xf32>
    %cst_82 = arith.constant 0.000000e+00 : f32
    %187 = vector.broadcast %cst_82 : f32 to vector<8x512xf32>
    %188 = arith.maximumf %185, %187 : vector<8x512xf32>
    %cst_83 = arith.constant dense<0.000000e+00> : vector<8x512xf32>
    %189 = tpu.matmul %186, %188, %cst_83 {dimension_numbers = #tpu.dot_dimension_numbers<[1], [0], [0], [1], [0, 0, 1, 1], [], []>} : vector<8x8xf32>, vector<8x512xf32>, vector<8x512xf32> -> vector<8x512xf32>
    %c136 = arith.constant 136 : index
    %c0_84 = arith.constant 0 : index
    %190 = vector.load %arg6[%c136, %c0_84] : memref<224x512xf32, #tpu.memory_space<vmem>>, vector<8x512xf32>
    tpu.vector_store %arg6[%c136, %c0_84], %189 {strides = array<i32>} : memref<224x512xf32, #tpu.memory_space<vmem>>, vector<8x512xf32>,
    %cst_85 = arith.constant 0.000000e+00 : f32
    %191 = vector.broadcast %cst_85 : f32 to vector<8x512xf32>
    %192 = arith.maximumf %189, %191 : vector<8x512xf32>
    %c128 = arith.constant 128 : index
    %c0_86 = arith.constant 0 : index
    %193 = vector.load %arg6[%c128, %c0_86] : memref<224x512xf32, #tpu.memory_space<vmem>>, vector<8x512xf32>
    tpu.vector_store %arg6[%c128, %c0_86], %192 {strides = array<i32>} : memref<224x512xf32, #tpu.memory_space<vmem>>, vector<8x512xf32>,
    %c1_i32_87 = arith.constant 1 : i32
    %194 = tpu.dynamic_rotate %189 by %c1_i32_87 dim 1 : vector<8x512xf32>, i32 -> vector<8x512xf32>
    %c511_i32_88 = arith.constant 511 : i32
    %195 = tpu.dynamic_rotate %189 by %c511_i32_88 dim 1 : vector<8x512xf32>, i32 -> vector<8x512xf32>
    %196 = vector.broadcast %0 : vector<1x512xf32> to vector<8x512xf32>
    %197 = arith.mulf %196, %194 : vector<8x512xf32>
    %198 = arith.addf %189, %197 : vector<8x512xf32>
    %199 = vector.broadcast %1 : vector<1x512xf32> to vector<8x512xf32>
    %200 = arith.mulf %199, %195 : vector<8x512xf32>
    %201 = arith.addf %198, %200 : vector<8x512xf32>
    %202 = vector.broadcast %5 : vector<1x512xf32> to vector<8x512xf32>
    %203 = arith.addf %194, %202 : vector<8x512xf32>
    %204 = vector.broadcast %6 : vector<1x512xf32> to vector<8x512xf32>
    %205 = arith.addf %195, %204 : vector<8x512xf32>
    %206 = arith.maximumf %203, %205 : vector<8x512xf32>
    %207 = arith.maximumf %189, %206 : vector<8x512xf32>
    %c16_i32_89 = arith.constant 16 : i32
    %208 = tpu.dynamic_rotate %201 by %c16_i32_89 dim 1 : vector<8x512xf32>, i32 -> vector<8x512xf32>
    %c496_i32_90 = arith.constant 496 : i32
    %209 = tpu.dynamic_rotate %201 by %c496_i32_90 dim 1 : vector<8x512xf32>, i32 -> vector<8x512xf32>
    %c16_i32_91 = arith.constant 16 : i32
    %210 = tpu.dynamic_rotate %207 by %c16_i32_91 dim 1 : vector<8x512xf32>, i32 -> vector<8x512xf32>
    %c496_i32_92 = arith.constant 496 : i32
    %211 = tpu.dynamic_rotate %207 by %c496_i32_92 dim 1 : vector<8x512xf32>, i32 -> vector<8x512xf32>
    %212 = vector.broadcast %2 : vector<1x512xf32> to vector<8x512xf32>
    %213 = arith.mulf %212, %208 : vector<8x512xf32>
    %214 = arith.addf %201, %213 : vector<8x512xf32>
    %215 = vector.broadcast %3 : vector<1x512xf32> to vector<8x512xf32>
    %216 = arith.mulf %215, %209 : vector<8x512xf32>
    %217 = arith.addf %214, %216 : vector<8x512xf32>
    %218 = vector.broadcast %7 : vector<1x512xf32> to vector<8x512xf32>
    %219 = arith.addf %210, %218 : vector<8x512xf32>
    %220 = vector.broadcast %8 : vector<1x512xf32> to vector<8x512xf32>
    %221 = arith.addf %211, %220 : vector<8x512xf32>
    %222 = arith.maximumf %219, %221 : vector<8x512xf32>
    %223 = arith.maximumf %207, %222 : vector<8x512xf32>
    %224 = vector.broadcast %4 : vector<1x512xf32> to vector<8x512xf32>
    %225 = arith.mulf %217, %224 : vector<8x512xf32>
    %c144 = arith.constant 144 : index
    %c0_93 = arith.constant 0 : index
    %226 = vector.load %arg6[%c144, %c0_93] : memref<224x512xf32, #tpu.memory_space<vmem>>, vector<8x512xf32>
    tpu.vector_store %arg6[%c144, %c0_93], %225 {strides = array<i32>} : memref<224x512xf32, #tpu.memory_space<vmem>>, vector<8x512xf32>,
    %c152 = arith.constant 152 : index
    %c0_94 = arith.constant 0 : index
    %227 = vector.load %arg6[%c152, %c0_94] : memref<224x512xf32, #tpu.memory_space<vmem>>, vector<8x512xf32>
    tpu.vector_store %arg6[%c152, %c0_94], %223 {strides = array<i32>} : memref<224x512xf32, #tpu.memory_space<vmem>>, vector<8x512xf32>,
    %c40_95 = arith.constant 40 : index
    %c0_96 = arith.constant 0 : index
    %228 = vector.load %arg3[%c40_95, %c0_96] : memref<96x96xf32, #tpu.memory_space<vmem>>, vector<8x96xf32>
    %c64_97 = arith.constant 64 : index
    %c0_98 = arith.constant 0 : index
    %229 = vector.load %arg6[%c64_97, %c0_98] : memref<224x512xf32, #tpu.memory_space<vmem>>, vector<96x512xf32>
    %cst_99 = arith.constant dense<0.000000e+00> : vector<8x512xf32>
    %230 = tpu.matmul %228, %229, %cst_99 {dimension_numbers = #tpu.dot_dimension_numbers<[1], [0], [0], [1], [0, 0, 1, 1], [], []>} : vector<8x96xf32>, vector<96x512xf32>, vector<8x512xf32> -> vector<8x512xf32>
    %c80_100 = arith.constant 80 : index
    %c0_101 = arith.constant 0 : index
    %231 = vector.load %arg3[%c80_100, %c0_101] : memref<96x96xf32, #tpu.memory_space<vmem>>, vector<8x8xf32>
    %cst_102 = arith.constant 0.000000e+00 : f32
    %232 = vector.broadcast %cst_102 : f32 to vector<8x512xf32>
    %233 = arith.maximumf %230, %232 : vector<8x512xf32>
    %cst_103 = arith.constant dense<0.000000e+00> : vector<8x512xf32>
    %234 = tpu.matmul %231, %233, %cst_103 {dimension_numbers = #tpu.dot_dimension_numbers<[1], [0], [0], [1], [0, 0, 1, 1], [], []>} : vector<8x8xf32>, vector<8x512xf32>, vector<8x512xf32> -> vector<8x512xf32>
    %c168 = arith.constant 168 : index
    %c0_104 = arith.constant 0 : index
    %235 = vector.load %arg6[%c168, %c0_104] : memref<224x512xf32, #tpu.memory_space<vmem>>, vector<8x512xf32>
    tpu.vector_store %arg6[%c168, %c0_104], %234 {strides = array<i32>} : memref<224x512xf32, #tpu.memory_space<vmem>>, vector<8x512xf32>,
    %cst_105 = arith.constant 0.000000e+00 : f32
    %236 = vector.broadcast %cst_105 : f32 to vector<8x512xf32>
    %237 = arith.maximumf %234, %236 : vector<8x512xf32>
    %c160 = arith.constant 160 : index
    %c0_106 = arith.constant 0 : index
    %238 = vector.load %arg6[%c160, %c0_106] : memref<224x512xf32, #tpu.memory_space<vmem>>, vector<8x512xf32>
    tpu.vector_store %arg6[%c160, %c0_106], %237 {strides = array<i32>} : memref<224x512xf32, #tpu.memory_space<vmem>>, vector<8x512xf32>,
    %c1_i32_107 = arith.constant 1 : i32
    %239 = tpu.dynamic_rotate %234 by %c1_i32_107 dim 1 : vector<8x512xf32>, i32 -> vector<8x512xf32>
    %c511_i32_108 = arith.constant 511 : i32
    %240 = tpu.dynamic_rotate %234 by %c511_i32_108 dim 1 : vector<8x512xf32>, i32 -> vector<8x512xf32>
    %241 = vector.broadcast %0 : vector<1x512xf32> to vector<8x512xf32>
    %242 = arith.mulf %241, %239 : vector<8x512xf32>
    %243 = arith.addf %234, %242 : vector<8x512xf32>
    %244 = vector.broadcast %1 : vector<1x512xf32> to vector<8x512xf32>
    %245 = arith.mulf %244, %240 : vector<8x512xf32>
    %246 = arith.addf %243, %245 : vector<8x512xf32>
    %247 = vector.broadcast %5 : vector<1x512xf32> to vector<8x512xf32>
    %248 = arith.addf %239, %247 : vector<8x512xf32>
    %249 = vector.broadcast %6 : vector<1x512xf32> to vector<8x512xf32>
    %250 = arith.addf %240, %249 : vector<8x512xf32>
    %251 = arith.maximumf %248, %250 : vector<8x512xf32>
    %252 = arith.maximumf %234, %251 : vector<8x512xf32>
    %c16_i32_109 = arith.constant 16 : i32
    %253 = tpu.dynamic_rotate %246 by %c16_i32_109 dim 1 : vector<8x512xf32>, i32 -> vector<8x512xf32>
    %c496_i32_110 = arith.constant 496 : i32
    %254 = tpu.dynamic_rotate %246 by %c496_i32_110 dim 1 : vector<8x512xf32>, i32 -> vector<8x512xf32>
    %c16_i32_111 = arith.constant 16 : i32
    %255 = tpu.dynamic_rotate %252 by %c16_i32_111 dim 1 : vector<8x512xf32>, i32 -> vector<8x512xf32>
    %c496_i32_112 = arith.constant 496 : i32
    %256 = tpu.dynamic_rotate %252 by %c496_i32_112 dim 1 : vector<8x512xf32>, i32 -> vector<8x512xf32>
    %257 = vector.broadcast %2 : vector<1x512xf32> to vector<8x512xf32>
    %258 = arith.mulf %257, %253 : vector<8x512xf32>
    %259 = arith.addf %246, %258 : vector<8x512xf32>
    %260 = vector.broadcast %3 : vector<1x512xf32> to vector<8x512xf32>
    %261 = arith.mulf %260, %254 : vector<8x512xf32>
    %262 = arith.addf %259, %261 : vector<8x512xf32>
    %263 = vector.broadcast %7 : vector<1x512xf32> to vector<8x512xf32>
    %264 = arith.addf %255, %263 : vector<8x512xf32>
    %265 = vector.broadcast %8 : vector<1x512xf32> to vector<8x512xf32>
    %266 = arith.addf %256, %265 : vector<8x512xf32>
    %267 = arith.maximumf %264, %266 : vector<8x512xf32>
    %268 = arith.maximumf %252, %267 : vector<8x512xf32>
    %269 = vector.broadcast %4 : vector<1x512xf32> to vector<8x512xf32>
    %270 = arith.mulf %262, %269 : vector<8x512xf32>
    %c176 = arith.constant 176 : index
    %c0_113 = arith.constant 0 : index
    %271 = vector.load %arg6[%c176, %c0_113] : memref<224x512xf32, #tpu.memory_space<vmem>>, vector<8x512xf32>
    tpu.vector_store %arg6[%c176, %c0_113], %270 {strides = array<i32>} : memref<224x512xf32, #tpu.memory_space<vmem>>, vector<8x512xf32>,
    %c184 = arith.constant 184 : index
    %c0_114 = arith.constant 0 : index
    %272 = vector.load %arg6[%c184, %c0_114] : memref<224x512xf32, #tpu.memory_space<vmem>>, vector<8x512xf32>
    tpu.vector_store %arg6[%c184, %c0_114], %268 {strides = array<i32>} : memref<224x512xf32, #tpu.memory_space<vmem>>, vector<8x512xf32>,
    %c48_115 = arith.constant 48 : index
    %c0_116 = arith.constant 0 : index
    %273 = vector.load %arg3[%c48_115, %c0_116] : memref<96x96xf32, #tpu.memory_space<vmem>>, vector<8x96xf32>
    %c96_117 = arith.constant 96 : index
    %c0_118 = arith.constant 0 : index
    %274 = vector.load %arg6[%c96_117, %c0_118] : memref<224x512xf32, #tpu.memory_space<vmem>>, vector<96x512xf32>
    %cst_119 = arith.constant dense<0.000000e+00> : vector<8x512xf32>
    %275 = tpu.matmul %273, %274, %cst_119 {dimension_numbers = #tpu.dot_dimension_numbers<[1], [0], [0], [1], [0, 0, 1, 1], [], []>} : vector<8x96xf32>, vector<96x512xf32>, vector<8x512xf32> -> vector<8x512xf32>
    %c88_120 = arith.constant 88 : index
    %c0_121 = arith.constant 0 : index
    %276 = vector.load %arg3[%c88_120, %c0_121] : memref<96x96xf32, #tpu.memory_space<vmem>>, vector<8x8xf32>
    %cst_122 = arith.constant 0.000000e+00 : f32
    %277 = vector.broadcast %cst_122 : f32 to vector<8x512xf32>
    %278 = arith.maximumf %275, %277 : vector<8x512xf32>
    %cst_123 = arith.constant dense<0.000000e+00> : vector<8x512xf32>
    %279 = tpu.matmul %276, %278, %cst_123 {dimension_numbers = #tpu.dot_dimension_numbers<[1], [0], [0], [1], [0, 0, 1, 1], [], []>} : vector<8x8xf32>, vector<8x512xf32>, vector<8x512xf32> -> vector<8x512xf32>
    %c200 = arith.constant 200 : index
    %c0_124 = arith.constant 0 : index
    %280 = vector.load %arg6[%c200, %c0_124] : memref<224x512xf32, #tpu.memory_space<vmem>>, vector<8x512xf32>
    tpu.vector_store %arg6[%c200, %c0_124], %279 {strides = array<i32>} : memref<224x512xf32, #tpu.memory_space<vmem>>, vector<8x512xf32>,
    %c0_125 = arith.constant 0 : index
    %281 = memref.load %arg1[%c0_125] : memref<2xf32, #tpu.memory_space<smem>>
    %c136_126 = arith.constant 136 : index
    %c0_127 = arith.constant 0 : index
    %282 = vector.load %arg6[%c136_126, %c0_127] : memref<224x512xf32, #tpu.memory_space<vmem>>, vector<8x512xf32>
    %283 = vector.broadcast %281 : f32 to vector<8x512xf32>
    %284 = arith.mulf %283, %282 : vector<8x512xf32>
    %c0_128 = arith.constant 0 : index
    %285 = memref.load %arg1[%c0_128] : memref<2xf32, #tpu.memory_space<smem>>
    %c168_129 = arith.constant 168 : index
    %c0_130 = arith.constant 0 : index
    %286 = vector.load %arg6[%c168_129, %c0_130] : memref<224x512xf32, #tpu.memory_space<vmem>>, vector<8x512xf32>
    %287 = vector.broadcast %285 : f32 to vector<8x512xf32>
    %288 = arith.mulf %287, %286 : vector<8x512xf32>
    %c1_131 = arith.constant 1 : index
    %289 = memref.load %arg1[%c1_131] : memref<2xf32, #tpu.memory_space<smem>>
    %c168_132 = arith.constant 168 : index
    %c0_133 = arith.constant 0 : index
    %290 = vector.load %arg6[%c168_132, %c0_133] : memref<224x512xf32, #tpu.memory_space<vmem>>, vector<8x512xf32>
    %291 = vector.broadcast %289 : f32 to vector<8x512xf32>
    %292 = arith.mulf %291, %290 : vector<8x512xf32>
    %293 = arith.addf %284, %292 : vector<8x512xf32>
    %c1_134 = arith.constant 1 : index
    %294 = memref.load %arg1[%c1_134] : memref<2xf32, #tpu.memory_space<smem>>
    %c200_135 = arith.constant 200 : index
    %c0_136 = arith.constant 0 : index
    %295 = vector.load %arg6[%c200_135, %c0_136] : memref<224x512xf32, #tpu.memory_space<vmem>>, vector<8x512xf32>
    %296 = vector.broadcast %294 : f32 to vector<8x512xf32>
    %297 = arith.mulf %296, %295 : vector<8x512xf32>
    %298 = arith.addf %288, %297 : vector<8x512xf32>
    %c0_137 = arith.constant 0 : index
    %c0_138 = arith.constant 0 : index
    %c0_139 = arith.constant 0 : index
    %299 = vector.load %arg5[%c0_137, %c0_138, %c0_139] : memref<1x16x512xf32, #tpu.memory_space<vmem>>, vector<1x8x512xf32>
    %300 = vector.shape_cast %299 : vector<1x8x512xf32> to vector<8x512xf32>
    %301 = vector.shape_cast %293 : vector<8x512xf32> to vector<1x8x512xf32>
    tpu.vector_store %arg5[%c0_137, %c0_138, %c0_139], %301 {strides = array<i32>} : memref<1x16x512xf32, #tpu.memory_space<vmem>>, vector<1x8x512xf32>,
    %c0_140 = arith.constant 0 : index
    %c8_141 = arith.constant 8 : index
    %c0_142 = arith.constant 0 : index
    %302 = vector.load %arg5[%c0_140, %c8_141, %c0_142] : memref<1x16x512xf32, #tpu.memory_space<vmem>>, vector<1x8x512xf32>
    %303 = vector.shape_cast %302 : vector<1x8x512xf32> to vector<8x512xf32>
    %304 = vector.shape_cast %298 : vector<8x512xf32> to vector<1x8x512xf32>
    tpu.vector_store %arg5[%c0_140, %c8_141, %c0_142], %304 {strides = array<i32>} : memref<1x16x512xf32, #tpu.memory_space<vmem>>, vector<1x8x512xf32>,
    return
  }
  func.func @transform_0(%arg0: i32) -> i32 {
    %c0_i32 = arith.constant 0 : i32
    %c0_i32_0 = arith.constant 0 : i32
    return %c0_i32 : i32
  }
  func.func @transform_1(%arg0: i32) -> (i32, i32) {
    %c0_i32 = arith.constant 0 : i32
    %c0_i32_0 = arith.constant 0 : i32
    %c0_i32_1 = arith.constant 0 : i32
    return %c0_i32, %c0_i32_0 : i32, i32
  }
  func.func @transform_2(%arg0: i32) -> (i32, i32) {
    %c0_i32 = arith.constant 0 : i32
    %c0_i32_0 = arith.constant 0 : i32
    %c0_i32_1 = arith.constant 0 : i32
    return %c0_i32, %c0_i32_0 : i32, i32
  }
  func.func @transform_3(%arg0: i32) -> (i32, i32, i32) {
    %c0_i32 = arith.constant 0 : i32
    %c0_i32_0 = arith.constant 0 : i32
    %c0_i32_1 = arith.constant 0 : i32
    return %arg0, %c0_i32, %c0_i32_0 : i32, i32, i32
  }
  func.func @transform_4(%arg0: i32) -> (i32, i32, i32) {
    %c0_i32 = arith.constant 0 : i32
    %c0_i32_0 = arith.constant 0 : i32
    %c0_i32_1 = arith.constant 0 : i32
    return %arg0, %c0_i32, %c0_i32_0 : i32, i32, i32
  }
}

</mosaic_0001>

<bundles_post_ra>
// kernel: tpu_custom_call.1
= control target key start
LH: loop header
LB: loop body
LE: loop exit
PB: predicated region body
PF: predicated region fallthrough
CT: control target
= control target key end

     0   :  { %s5653_s0 = inlined_call_operand.hbm [shape: f32[2], index: 0, kind: input, shape index: {}]   ;;  %s5654_s1 = inlined_call_operand.hbm [shape: f32[9,512], index: 1, kind: input, shape index: {}]   ;;  %s5655_s2 = inlined_call_operand.hbm [shape: f32[96,96], index: 2, kind: input, shape index: {}]   ;;  %s5656_s3 = inlined_call_operand.hbm [shape: f32[2,16,512], index: 3, kind: input, shape index: {}]   ;;  %s5657_s4 = inlined_call_operand.hbm [shape: f32[2,16,512], index: 4, kind: output, shape index: {}]  }
   0x1   :  { %5830 = sst [smem:[#allocation86_spill]] %s5653_s0 }
   0x2   :  { %9 = vsyncpa [#allocation6], 0 }
   0x3   :  { %10 = vsyncpa [#allocation4], 0 }
   0x4   :  { %11 = vsyncpa [#allocation9], 0 }
   0x5   :  { %12 = vsyncpa [#allocation5], 0 }
   0x6   :  { %14 = vsyncpa [#allocation5 + $0x1], 0  ;;  %s3828_s15 = smov 0   ;;  %s3830_s16 = smov 0  }
   0x7   :  { %s3832_s17 = smov 0   ;;  %s3834_s18 = smov 0  }
   0x8 LB: > { %s3849_s19 = sadd.s32 4294967295, %s3785_s18   ;;  %s3483_s20 = sadd.s32 4294967294, %s3785_s18   ;;  %s3785_s18 = sphi %s3834_s18, %s6138_s18   ;;  %s3781_s17 = sphi %s3832_s17, %s6137_s17   ;;  %s3777_s16 = sphi %s3830_s16, %s6136_s16   ;;  %s3773_s15 = sphi %s3828_s15, %s6135_s15  }
   0x9   : > { %s3853_s21 = sadd.s32 1, %s3785_s18   ;;  %s90_s22 = sadd.s32 1, %s3781_s17 }
   0xa   : > { %s87_s23 = ssub.s32 %s3785_s18, %s3853_s21  ;;  %p97_p0 = scmp.ne.s32.totalorder %s3781_s17, %s3777_s16 }
   0xb   : > { %p88_p1 = scmp.eq.s32.totalorder %s87_s23, 0  ;;  %p98_p2 = scmp.eq.s32.totalorder %s3785_s18, 0 }
   0xc   : > { %p103_p3 = scmp.ne.s32.totalorder %s3777_s16, %s3773_s15  ;;  %p5663_p4 = scmp.eq.s32.totalorder %s3849_s19, 0 }
   0xd   : > { %s3865_s24 = scalar_select %p88_p1, %s3781_s17, %s90_s22  }
   0xe   : > { %p3867_p5 = por %p98_p2, %p97_p0  ;;  %p3873_p6 = por %p5663_p4, %p103_p3 }
   0xf   : > { %p127_p7 = scmp.eq.s32.totalorder %s3849_s19, 1  ;;  %p133_p8 = scmp.eq.s32.totalorder %s3483_s20, 1 }
  0x10   : > { %s5832_s26 = scalar_select %p3873_p6, 1, 0 }
  0x11   : > { %p3484_p9 = scmp.ge.s32.totalorder %s3785_s18, 1  ;;  %p140_p10 = scmp.lt.s32.totalorder %s3785_s18, 3 }
  0x12   : > { %p3880_p11 = por %p127_p7, %p97_p0  ;;  %p3884_p12 = por %p133_p8, %p103_p3 }
  0x13   : > { %p3888_p13 = pnand %p3484_p9, %p140_p10  ;;  %s3787_s30 = smov [#allocation7]  }
  0x14   : > { %s5833_s27 = scalar_select %p3880_p11, 1, 0 }
  0x15   : > { %s5834_s28 = scalar_select %p3884_p12, 1, 0 }
  0x16   : > { %s5835_s29 = scalar_select %p3888_p13, 1, 0 }
  0x17   : > { %p3546_p1 = pneg %p3888_p13  ;;  %s161_s5 = sshll.u32 %s3787_s30, 4  ;;  %s162_s5 = int_to_ptr.vmem [resolvable:$true] %s161_s5 }
  0x18   : > { %p3567_p3 = scmp.lt.s32.totalorder %s3785_s18, 2  ;;  %s3629_s7 = scalar_lea.vmem %s162_s5, 1024 }
  0x19   : > { %p3896_p2 = pnand %p3546_p1, %p5663_p4  ;;  %p3630_p8 = scmp.ne.s32.totalorder %s162_s5, %s3629_s7 }
  0x1a   : > { %p3637_p12 = scmp.lt.s32.totalorder %s162_s5, %s162_s5  ;;  %p3638_p11 = scmp.lt.s32.totalorder %s3629_s7, %s3629_s7 }
  0x1b   : > { %p3620_p7 = pneg %p3896_p2 }
  0x1c   : > { %p3639_p6 = por %p3638_p11, %p3637_p12 }
  0x1d   : > { %p3632_p9 = pnand %p3630_p8, %p3620_p7 }
  0x1f   : > { %p3633_p10 = pneg %p3632_p9 }
  0x21   : > { %p3640_p13 = pnand %p3639_p6, %p3633_p10 }
  0x23   : > { %3643 = shalt.err (!%p3640_p13)
}
  0x24   : > { %s5661_s8 = smov 512   ;;  %s5662_s9 = smov 32  }
  0x25   : > { %3552 = dma.hbm_to_vmem [thread:$0]  (!%p3896_p2), %s5654_s1, 1024, %s162_s5, [#allocation4], %s5661_s8, %s5661_s8, %s5662_s9  }
  0x26   : > { %p3919_p11 = pnand %p3567_p3, %p3867_p5  ;;  %s3790_s13 = smov [#allocation8]  }
  0x27   : > { %s174_s14 = sshll.u32 %s3790_s13, 4  ;;  %s3791_s20 = smov [#allocation3]   ;;  %s175_s14 = int_to_ptr.vmem [resolvable:$true] %s174_s14 }
  0x28   : > { %s5838_s0 = sld [smem:[#allocation86_spill]]  ;;  %s3666_s30 = scalar_lea.vmem %s175_s14, 1536 }
  0x29   : > { %p3667_p6 = scmp.ne.s32.totalorder %s175_s14, %s3666_s30  ;;  %p3674_p1 = scmp.lt.s32.totalorder %s175_s14, %s175_s14 }
  0x2a   : > { %p3675_p5 = scmp.lt.s32.totalorder %s3666_s30, %s3666_s30 }
  0x2b   : > { %p3669_p12 = pnand %p3667_p6, %p3620_p7 }
  0x2c   : > { %p3676_p3 = por %p3675_p5, %p3674_p1 }
  0x2d   : > { %p3670_p13 = pneg %p3669_p12 }
  0x2e   : > { %3549 = dma.hbm_to_smem (!%p3896_p2), %s5838_s0, 16, %s3791_s20, [#allocation6]  }
  0x2f   : > { %p3677_p8 = pnand %p3676_p3, %p3670_p13 }
  0x31   : > { %3680 = shalt.err (!%p3677_p8)
}
  0x32   : > { %s3792_s25 = smov 128   ;;  %s3793_s5 = smov 8  }
  0x33   : > { %3555 = dma.hbm_to_vmem [thread:$0]  (!%p3896_p2), %s5655_s2, 1536, %s175_s14, [#allocation9], %s3792_s25, %s3792_s25, %s3793_s5  }
  0x34   : > { %s188_s11 = sand.u32 1, %s3785_s18   ;;  %s190_s13 = sand.u32 1, %s3781_s17  }
  0x35   : > { %s3489_s20 = sshll.u32 %s190_s13, 6  ;;  %s3528_s22 = sshll.u32 %s3785_s18, 10 }
  0x36   : > { %s3942_s8 = scalar_lea.hbm %s5656_s3, %s3528_s22  ;;  %s192_s9 = scalar_lea.vmem [#allocation10], %s3489_s20 }
  0x37   : > { %s199_s0 = sshll.u32 %s192_s9, 4  ;;  %s3946_s6 = scalar_lea.sflag [#allocation4], %s188_s11  ;;  %s3944_s0 = int_to_ptr.vmem [resolvable:$true] %s199_s0 }
  0x38   : > { %s3681_s7 = scalar_lea.hbm %s3942_s8, 1024  ;;  %p3683_p7 = pneg %p3919_p11 }
  0x39   : > { %p3682_p2 = scmp.ne.s32.totalorder %s3942_s8, %s3681_s7  ;;  %s3686_s5 = scalar_lea.hbm %s5656_s3, 2048 }
  0x3a   : > { %p3687_p6 = scmp.lt.s32.totalorder %s3942_s8, %s5656_s3  ;;  %p3688_p12 = scmp.lt.s32.totalorder %s3686_s5, %s3681_s7 }
  0x3b   : > { %p3684_p9 = pnand %p3683_p7, %p3682_p2 }
  0x3c   : > { %p3689_p13 = por %p3688_p12, %p3687_p6 }
  0x3d   : > { %p3685_p10 = pneg %p3684_p9 }
  0x3f   : > { %p3690_p1 = pnand %p3689_p13, %p3685_p10 }
  0x41   : > { %3693 = shalt.err (!%p3690_p1)
}
  0x42   : > { %s3694_s9 = scalar_lea.vmem %s3944_s0, 1024  ;;  %s3794_s11 = smov [#allocation10]  }
  0x43   : > { %p3695_p5 = scmp.ne.s32.totalorder %s3944_s0, %s3694_s9  ;;  %s3699_s20 = sshll.u32 %s3794_s11, 4  ;;  %s3700_s20 = int_to_ptr.vmem [resolvable:$false] %s3699_s20 }
  0x44   : > { %s3701_s22 = scalar_lea.vmem %s3700_s20, 2048  ;;  %p3702_p2 = scmp.lt.s32.totalorder %s3944_s0, %s3700_s20 }
  0x45   : > { %p3697_p3 = pnand %p3695_p5, %p3683_p7  ;;  %p3703_p9 = scmp.lt.s32.totalorder %s3701_s22, %s3694_s9 }
  0x47   : > { %p3698_p8 = pneg %p3697_p3  ;;  %p3704_p0 = por %p3703_p9, %p3702_p2 }
  0x49   : > { %p3705_p4 = pnand %p3704_p0, %p3698_p8 }
  0x4b   : > { %3708 = shalt.err (!%p3705_p4)
}
  0x4c   : > { %s5839_s23 = smov 32   ;;  %s5840_s30 = smov 512  }
  0x4d   : > { %3559 = dma.hbm_to_vmem [thread:$0]  (!%p3919_p11), %s3942_s8, 1024, %s3944_s0, %s3946_s6, %s5840_s30, %s5840_s30, %s5839_s23  }
  0x4e   : > { %p5841_p7 = scmp.ne.s32.totalorder %s5835_s29, 0 }
  0x50   : > { %211 = sbr.rel (%p5841_p7) target bundleno = 3827 (0xef3), region = 36 }
  0x55   : > { %p5842_p10 = scmp.eq.s32.totalorder %s3849_s19, 0 }
  0x57   : > { %3752 = dma.done.wait (%p5842_p10), [#allocation6], 16   ;;  %p5843_p6 = pmov %p5842_p10 }
  0x59   : > { %3754 = vsyncadd (%p5843_p6), [#allocation6], 4294967280  ;;  %p5844_p4 = pmov %p5843_p6 }
  0x5b   : > { %3756 = dma.done.wait (%p5844_p4), [#allocation4], 1024   ;;  %p5845_p0 = pmov %p5844_p4 }
  0x5d   : > { %3758 = vsyncadd (%p5845_p0), [#allocation4], 4294966272  ;;  %p5846_p12 = pmov %p5845_p0 }
  0x5e   : > { %p5847_p11 = pmov %p5845_p0 }
  0x5f   : > { %3760 = dma.done.wait (%p5846_p12), [#allocation9], 1536  }
  0x60   : > { %3762 = vsyncadd (%p5847_p11), [#allocation9], 4294965760  ;;  %s225_s0 = sand.u32 1, %s3849_s19   ;;  %s227_s29 = sand.u32 1, %s3777_s16  }
  0x61   : > { %s3988_s8 = sshll.u32 %s227_s29, 6  ;;  %s226_s12 = scalar_lea.sflag [#allocation4], %s225_s0 }
  0x62   : > { %s229_s6 = scalar_lea.vmem [#allocation10], %s3988_s8  ;;  %p5848_p13 = scmp.ne.s32.totalorder %s5832_s26, 0 }
  0x64   : > { %3764 = dma.done.wait (%p5848_p13), %s226_s12, 1024  }
  0x65   : > { %3766 = vsyncadd (%p5848_p13), %s226_s12, 4294966272 }
  0x66   : > { %234 = sfence }
  0x67   : > { %v279_v0 = vld [vmem:[%s229_s6 + $0x28] sm:$0xff]  ;;  %v278_v1 = vld [vmem:[%s229_s6 + $0x20] sm:$0xff]  ;;  %v281_v6 = vld [vmem:[%s229_s6 + $0x38] sm:$0xff]  ;;  %v5664_v8 = vmov 0.0   ;;  %vm290_vm0 = vcmask 130048   ;;  %s3796_s26 = smov 1   ;;  %v471_v32 = vlaneseq }
  0x68   : > { %v275_v2 = vld [vmem:[%s229_s6 + $0x8] sm:$0xff]  ;;  %v287_v3 = vmax.f32 %v279_v0, 0.0  ;;  %v286_v4 = vmax.f32 %v278_v1, 0.0  ;;  %v274_v7 = vld [vmem:[%s229_s6] sm:$0xff]  ;;  %361 = vmatprep.mubr.f32.mxu0 %v5664_v8  ;;  %v280_v9 = vld [vmem:[%s229_s6 + $0x30] sm:$0xff]  ;;  %438 = vmatprep.mubr.f32.mxu1 %v5664_v8  ;;  %v289_v10 = vmax.f32 %v281_v6, 0.0 }
  0x69   : > { %v283_v5 = vmax.f32 %v275_v2, 0.0  ;;  %v282_v11 = vmax.f32 %v274_v7, 0.0  ;;  %v288_v12 = vmax.f32 %v280_v9, 0.0  ;;  %v277_v13 = vld [vmem:[%s229_s6 + $0x18] sm:$0xff]  ;;  %v276_v14 = vld [vmem:[%s229_s6 + $0x10] sm:$0xff]  ;;  %v272_v17 = vld [vmem:[#allocation8] sm:$0xff] }
  0x6a   : > { %325 = vmatprep.subr.mxu0 %v287_v3  ;;  %v285_v15 = vmax.f32 %v277_v13, 0.0  ;;  %v284_v16 = vmax.f32 %v276_v14, 0.0  ;;  %402 = vmatprep.subr.mxu1 %v289_v10  ;;  %v273_v18 = vld [vmem:[#allocation8 + $0x8] sm:$0xff]  ;;  %s3797_s7 = smov 127   ;;  %v493_v35 = vshrl.u32 %v471_v32, 7  ;;  %v4057_v37 = vand.u32 127, %v471_v32 }
  0x6b   : > { %326 = vmatpush1.msra.mxu0 %v286_v4  ;;  %403 = vmatpush1.msra.mxu1 %v288_v12  ;;  %v255_v42 = vld [vmem:[#allocation7] ss:$8 sm:$0xf]  ;;  %v265_v49 = vld [vmem:[#allocation7 + $0x5] ss:$8 sm:$0xf] }
  0x6c   : > { %327 = vmatprep.subr.mxu0 %v283_v5  ;;  %404 = vmatprep.subr.mxu1 %v285_v15  ;;  %v4059_v38 = vsub.s32 0, %v493_v35  ;;  %v4065_v41 = vsub.s32 1, %v493_v35  ;;  %vm473_vm1 = vcmp.lt.s32.totalorder %v4057_v37, 1  ;;  %v4068_v43 = vsub.s32 2, %v493_v35  ;;  %s3798_s14 = smov 16   ;;  %s3799_s25 = smov 112  }
  0x6d   : > { %328 = vmatpush1.msra.mxu0 %v282_v11  ;;  %405 = vmatpush1.msra.mxu1 %v284_v16  ;;  %v4077_v47 = vsub.s32 3, %v493_v35  ;;  %v257_v51 = vld [vmem:[#allocation7 + $0x1] ss:$8 sm:$0xf]  ;;  %vm486_vm2 = vcmp.lt.s32.totalorder %v4057_v37, 127  ;;  %vm615_vm3 = vcmp.lt.s32.totalorder %v4057_v37, 16 }
  0x6e   : > { %3498 = vmatmul.mubr.msk.f32.vlgmr.msra.gmra.mxu0 %vm290_vm0, %v272_v17  ;;  %3500 = vmatmul.mubr.msk.f32.vlgmr.msra.gmra.mxu1 %vm290_vm0, %v272_v17  ;;  %v4071_v44 = vrot.slane %v255_v42, %v4059_v38  ;;  %v4082_v50 = vrot.slane %v255_v42, %v4065_v41  ;;  %v4087_v53 = vrot.slane %v255_v42, %v4068_v43  ;;  %v267_v55 = vld [vmem:[#allocation7 + $0x6] ss:$8 sm:$0xf]  ;;  %vm628_vm4 = vcmp.lt.s32.totalorder %v4057_v37, 112  ;;  %s3522_s5 = sld [smem:[#allocation3 + $0x1]]  ;;  %s5391_s13 = scalar_lea.vmem [#allocation11], %s3988_s8 }
  0x6f   : > { %367 = vmatprep.mubr.f32.mxu0 %v5664_v8  ;;  %444 = vmatprep.mubr.f32.mxu1 %v5664_v8  ;;  %v4094_v58 = vrot.slane %v265_v49, %v4065_v41  ;;  %v4097_v59 = vrot.slane %v255_v42, %v4077_v47  ;;  %v4100_v60 = vrot.slane %v265_v49, %v4059_v38  ;;  %vm999_vm5 = vcmask 523264   ;;  %s3317_s10 = sld [smem:[#allocation3]]  ;;  %s3529_s9 = sshll.u32 %s3849_s19, 10 }
  0x70   : > { %5857 = vst [vmem:[#allocation25_spill] sm:$0xff] %v4071_v44  ;;  %5858 = vst [vmem:[#allocation26_spill] sm:$0xff] %v4082_v50  ;;  %v4103_v61 = vrot.slane %v257_v51, %v4059_v38  ;;  %v4107_v0 = vrot.slane %v257_v51, %v4065_v41  ;;  %v4110_v1 = vrot.slane %v267_v55, %v4059_v38  ;;  %vm1150_vm6 = vcmask 64512   ;;  %s3379_s11 = sshll.u32 %s5391_s13, 4  ;;  %s5603_s23 = scalar_lea.hbm %s5657_s4, %s3529_s9  ;;  %s5605_s11 = int_to_ptr.vmem [resolvable:$true] %s3379_s11 }
  0x71   : > { %5859 = vst [vmem:[#allocation27_spill] sm:$0xff] %v4087_v53  ;;  %5860 = vst [vmem:[#allocation28_spill] sm:$0xff] %v4094_v58  ;;  %v4120_v9 = vrot.slane %v265_v49, %v4068_v43  ;;  %v4123_v10 = vrot.slane %v267_v55, %v4065_v41  ;;  %v4126_v11 = vrot.slane %v257_v51, %v4068_v43  ;;  %vm1505_vm7 = vcmask 785408   ;;  %s5612_s19 = scalar_lea.sflag [#allocation5], %s227_s29  ;;  %s3709_s30 = scalar_lea.vmem %s5605_s11, 1024 }
  0x72   : > { %3499 = vmatmul.mubr.msk.f32.gmra.mxu0 %vm290_vm0, %v273_v18  ;;  %3501 = vmatmul.mubr.msk.f32.gmra.mxu1 %vm290_vm0, %v273_v18  ;;  %5861 = vst [vmem:[#allocation29_spill] sm:$0xff] %v4097_v59  ;;  %5862 = vst [vmem:[#allocation30_spill] sm:$0xff] %v4100_v60  ;;  %v4131_v13 = vrot.slane %v257_v51, %v4077_v47  ;;  %v4145_v32 = vrot.slane %v267_v55, %v4068_v43  ;;  %p3710_p1 = scmp.ne.s32.totalorder %s5605_s11, %s3709_s30  ;;  %p6132_p5 = scmp.ne.s32.totalorder %s5833_s27, 0 }
  0x73   : > { %1067 = vmatprep.mubr.f32.mxu0 %v5664_v8  ;;  %1138 = vmatprep.mubr.f32.mxu1 %v5664_v8  ;;  %5863 = vst [vmem:[#allocation31_spill] sm:$0xff] %v4103_v61  ;;  %5864 = vst [vmem:[#allocation32_spill] sm:$0xff] %v4107_v0  ;;  %v269_v8 = vld [vmem:[#allocation7 + $0x7] ss:$8 sm:$0xf]  ;;  %s3800_s0 = smov [#allocation11]  }
  0x74   : > { %5865 = vst [vmem:[#allocation33_spill] sm:$0xff] %v4110_v1  ;;  %5866 = vst [vmem:[#allocation34_spill] sm:$0xff] %v4120_v9  ;;  %p3711_p3 = pnand %p3710_p1, %p6132_p5  ;;  %s3713_s8 = sshll.u32 %s3800_s0, 4  ;;  %s3714_s8 = int_to_ptr.vmem [resolvable:$false] %s3713_s8 }
  0x75   : > { %5867 = vst [vmem:[#allocation35_spill] sm:$0xff] %v4123_v10  ;;  %5868 = vst [vmem:[#allocation36_spill] sm:$0xff] %v4126_v11  ;;  %s3715_s12 = scalar_lea.vmem %s3714_s8, 2048  ;;  %p3716_p2 = scmp.lt.s32.totalorder %s5605_s11, %s3714_s8 }
  0x76   : > { %5869 = vst [vmem:[#allocation37_spill] sm:$0xff] %v4131_v13  ;;  %5870 = vst [vmem:[#allocation38_spill] sm:$0xff] %v4145_v32  ;;  %p3712_p8 = pneg %p3711_p3  ;;  %p3717_p9 = scmp.lt.s32.totalorder %s3715_s12, %s3709_s30 }
  0x78   : > { %p3718_p7 = por %p3717_p9, %p3716_p2 }
  0x7a   : > { %p3719_p10 = pnand %p3718_p7, %p3712_p8 }
 0x12e   : > { %v4001_v19 = vpop.f32.mrf.mxu0  ;;  %v4007_v21 = vpop.f32.mrf.mxu1 }
 0x12f   : > { %5849 = vst [vmem:[#allocation17_spill] sm:$0xff] %v4001_v19  ;;  %463 = vrot.lane.b32.xlu0 %v4001_v19, %s3796_s26  ;;  %5851 = vst [vmem:[#allocation19_spill] sm:$0xff] %v4007_v21 }
 0x130   : > { %v4005_v20 = vpop.f32.mrf.mxu0  ;;  %v4013_v22 = vpop.f32.mrf.mxu1 }
 0x131   : > { %5850 = vst [vmem:[#allocation18_spill] sm:$0xff] %v4005_v20  ;;  %465 = vrot.lane.b32.xlu1 %v4005_v20, %s3796_s26  ;;  %5852 = vst [vmem:[#allocation20_spill] sm:$0xff] %v4013_v22 }
 0x132   : > { %v4015_v23 = vpop.f32.mrf.mxu0  ;;  %v4021_v24 = vpop.f32.mrf.mxu1 }
 0x133   : > { %467 = vrot.lane.b32.xlu0 %v4007_v21, %s3796_s26  ;;  %5853 = vst [vmem:[#allocation21_spill] sm:$0xff] %v4015_v23  ;;  %5854 = vst [vmem:[#allocation22_spill] sm:$0xff] %v4021_v24 }
 0x134   : > { %v4027_v25 = vpop.f32.mrf.mxu1  ;;  %v4033_v26 = vpop.f32.mrf.mxu0 }
 0x135   : > { %469 = vrot.lane.b32.xlu1 %v4013_v22, %s3796_s26  ;;  %5855 = vst [vmem:[#allocation23_spill] sm:$0xff] %v4027_v25  ;;  %5856 = vst [vmem:[#allocation24_spill] sm:$0xff] %v4033_v26 }
 0x137   : > { %818 = vrot.lane.b32.xlu0 %v4015_v23, %s3796_s26 }
 0x139   : > { %822 = vrot.lane.b32.xlu1 %v4021_v24, %s3796_s26 }
 0x13b   : > { %830 = vrot.lane.b32.xlu0 %v4015_v23, %s3797_s7 }
 0x13d   : > { %824 = vrot.lane.b32.xlu1 %v4027_v25, %s3796_s26 }
 0x13f   : > { %834 = vrot.lane.b32.xlu0 %v4021_v24, %s3797_s7 }
 0x141   : > { %832 = vrot.lane.b32.xlu1 %v4033_v26, %s3797_s7 }
 0x143   : > { %820 = vrot.lane.b32.xlu0 %v4033_v26, %s3796_s26 }
 0x145   : > { %836 = vrot.lane.b32.xlu1 %v4027_v25, %s3797_s7 }
 0x147   : > { %478 = vrot.lane.b32.xlu0 %v4001_v19, %s3797_s7 }
 0x149   : > { %480 = vrot.lane.b32.xlu1 %v4005_v20, %s3797_s7 }
 0x14b   : > { %482 = vrot.lane.b32.xlu0 %v4007_v21, %s3797_s7 }
 0x14d   : > { %484 = vrot.lane.b32.xlu1 %v4013_v22, %s3797_s7 }
 0x1a1   : > { %v464_v27 = vpop.permute.xlu0 %463 }
 0x1a3   : > { %v466_v28 = vpop.permute.xlu1 %465 }
 0x1a4   : > { %v476_v52 = vsel %vm473_vm1, %v464_v27, %v466_v28 }
 0x1a5   : > { %v468_v29 = vpop.permute.xlu0 %467  ;;  %v513_v63 = vmul.f32 %v4082_v50, %v476_v52 }
 0x1a6   : > { %v475_v57 = vsel %vm473_vm1, %v466_v28, %v468_v29 }
 0x1a7   : > { %v470_v30 = vpop.permute.xlu1 %469  ;;  %v514_v3 = vmul.f32 %v4087_v53, %v475_v57 }
 0x1a8   : > { %v477_v46 = vsel %vm473_vm1, %v470_v30, %v464_v27  ;;  %v474_v4 = vsel %vm473_vm1, %v468_v29, %v470_v30  ;;  %v517_v29 = vadd.f32 %v513_v63, %v4005_v20 }
 0x1a9   : > { %v4049_v31 = vpop.permute.xlu0 %818  ;;  %v512_v54 = vmul.f32 %v4071_v44, %v477_v46  ;;  %v515_v18 = vmul.f32 %v4097_v59, %v474_v4  ;;  %v570_v30 = vadd.f32 %v4100_v60, %v477_v46  ;;  %v518_v42 = vadd.f32 %v514_v3, %v4007_v21 }
 0x1ab   : > { %v4051_v33 = vpop.permute.xlu1 %822  ;;  %v516_v7 = vadd.f32 %v512_v54, %v4001_v19  ;;  %v519_v3 = vadd.f32 %v515_v18, %v4013_v22 }
 0x1ad   : > { %v4053_v34 = vpop.permute.xlu0 %830 }
 0x1af   : > { %v4055_v36 = vpop.permute.xlu1 %824 }
 0x1b1   : > { %v4061_v39 = vpop.permute.xlu0 %834 }
 0x1b3   : > { %v4063_v40 = vpop.permute.xlu1 %832 }
 0x1b5   : > { %v4073_v45 = vpop.permute.xlu0 %820 }
 0x1b7   : > { %v4079_v48 = vpop.permute.xlu1 %836 }
 0x1b9   : > { %v479_v56 = vpop.permute.xlu0 %478 }
 0x1bb   : > { %v481_v62 = vpop.permute.xlu1 %480 }
 0x1bc   : > { %v489_v2 = vsel %vm486_vm2, %v479_v56, %v481_v62 }
 0x1bd   : > { %v541_v5 = vmul.f32 %v4103_v61, %v489_v2  ;;  %v483_v6 = vpop.permute.xlu0 %482  ;;  %v595_v14 = vadd.f32 %v4110_v1, %v489_v2  ;;  %v571_v2 = vadd.f32 %v4094_v58, %v476_v52 }
 0x1be   : > { %v488_v12 = vsel %vm486_vm2, %v481_v62, %v483_v6 }
 0x1bf   : > { %v542_v15 = vmul.f32 %v4107_v0, %v488_v12  ;;  %v485_v16 = vpop.permute.xlu1 %484  ;;  %v4135_v17 = vadd.f32 %v541_v5, %v516_v7  ;;  %v596_v51 = vadd.f32 %v4123_v10, %v488_v12  ;;  %v599_v63 = vmax.f32 %v570_v30, %v595_v14 }
 0x1c0   : > { %v487_v27 = vsel %vm486_vm2, %v483_v6, %v485_v16  ;;  %v490_v28 = vsel %vm486_vm2, %v485_v16, %v479_v56  ;;  %v4160_v5 = vrot.slane %v265_v49, %v4077_v47  ;;  %v4163_v6 = vrot.slane %v267_v55, %v4077_v47 }
 0x1c1   : > { %v543_v35 = vmul.f32 %v4126_v11, %v487_v27  ;;  %607 = vrot.lane.b32.xlu0 %v4135_v17, %s3798_s14  ;;  %v544_v54 = vmul.f32 %v4131_v13, %v490_v28  ;;  %v4153_v56 = vadd.f32 %v542_v15, %v517_v29  ;;  %v597_v62 = vadd.f32 %v4145_v32, %v487_v27 }
 0x1c2   : > { %5871 = vst [vmem:[#allocation39_spill] sm:$0xff] %v4160_v5  ;;  %5872 = vst [vmem:[#allocation40_spill] sm:$0xff] %v4163_v6  ;;  %v572_v7 = vadd.f32 %v4120_v9, %v475_v57  ;;  %v598_v12 = vadd.f32 %v4163_v6, %v490_v28  ;;  %v600_v52 = vmax.f32 %v571_v2, %v596_v51 }
 0x1c3   : > { %v4156_v46 = vadd.f32 %v543_v35, %v518_v42  ;;  %609 = vrot.lane.b32.xlu1 %v4153_v56, %s3798_s14  ;;  %v4172_v14 = vadd.f32 %v544_v54, %v519_v3  ;;  %v4175_v49 = vmax.f32 %v4001_v19, %v599_v63  ;;  %v573_v15 = vadd.f32 %v4160_v5, %v474_v4 }
 0x1c4   : > { %v601_v55 = vmax.f32 %v572_v7, %v597_v62  ;;  %v4183_v57 = vmax.f32 %v4005_v20, %v600_v52  ;;  %v829_v4 = vsel %vm473_vm1, %v4055_v36, %v4049_v31  ;;  %v828_v28 = vsel %vm473_vm1, %v4049_v31, %v4073_v45  ;;  %v263_v20 = vld [vmem:[#allocation7 + $0x4] ss:$8 sm:$0xf] }
 0x1c5   : > { %611 = vrot.lane.b32.xlu0 %v4156_v46, %s3798_s14  ;;  %5873 = vst [vmem:[#allocation41_spill] sm:$0xff] %v4172_v14  ;;  %5874 = vst [vmem:[#allocation42_spill] sm:$0xff] %v4175_v49  ;;  %v602_v16 = vmax.f32 %v573_v15, %v598_v12  ;;  %v840_v29 = vsel %vm486_vm2, %v4053_v34, %v4063_v40  ;;  %v827_v30 = vsel %vm473_vm1, %v4073_v45, %v4051_v33 }
 0x1c6   : > { %5875 = vst [vmem:[#allocation43_spill] sm:$0xff] %v4183_v57  ;;  %v4186_v18 = vmax.f32 %v4007_v21, %v601_v55  ;;  %v842_v35 = vmul.f32 %v829_v4, %v4071_v44  ;;  %v843_v31 = vmul.f32 %v828_v28, %v4082_v50  ;;  %v850_v42 = vmul.f32 %v840_v29, %v4103_v61 }
 0x1c7   : > { %613 = vrot.lane.b32.xlu1 %v4172_v14, %s3798_s14  ;;  %v4197_v27 = vmax.f32 %v4013_v22, %v602_v16  ;;  %v844_v51 = vmul.f32 %v827_v30, %v4087_v53  ;;  %v838_v45 = vsel %vm486_vm2, %v4061_v39, %v4079_v48  ;;  %v826_v54 = vsel %vm473_vm1, %v4051_v33, %v4055_v36 }
 0x1c8   : > { %5876 = vst [vmem:[#allocation44_spill] sm:$0xff] %v4186_v18  ;;  %v839_v62 = vsel %vm486_vm2, %v4063_v40, %v4061_v39  ;;  %v846_v63 = vadd.f32 %v842_v35, %v4015_v23  ;;  %v862_v2 = vadd.f32 %v840_v29, %v4110_v1  ;;  %v847_v3 = vadd.f32 %v843_v31, %v4033_v26  ;;  %v261_v1 = vld [vmem:[#allocation7 + $0x3] ss:$8 sm:$0xf] }
 0x1c9   : > { %633 = vrot.lane.b32.xlu0 %v4175_v49, %s3798_s14  ;;  %5877 = vst [vmem:[#allocation45_spill] sm:$0xff] %v4197_v27  ;;  %v841_v7 = vsel %vm486_vm2, %v4079_v48, %v4053_v34  ;;  %v852_v33 = vmul.f32 %v838_v45, %v4126_v11  ;;  %v848_v39 = vadd.f32 %v844_v51, %v4021_v24 }
 0x1ca   : > { %v4243_v36 = vadd.f32 %v850_v42, %v846_v63  ;;  %v845_v40 = vmul.f32 %v826_v54, %v4097_v59  ;;  %v851_v12 = vmul.f32 %v839_v62, %v4107_v0  ;;  %v858_v52 = vadd.f32 %v829_v4, %v4100_v60 }
 0x1cb   : > { %635 = vrot.lane.b32.xlu1 %v4183_v57, %s3798_s14  ;;  %v859_v34 = vadd.f32 %v828_v28, %v4094_v58  ;;  %v853_v48 = vmul.f32 %v841_v7, %v4131_v13  ;;  %v864_v15 = vadd.f32 %v838_v45, %v4145_v32  ;;  %v4258_v16 = vadd.f32 %v852_v33, %v848_v39 }
 0x1cc   : > { %v4255_v55 = vadd.f32 %v851_v12, %v847_v3  ;;  %v866_v29 = vmax.f32 %v858_v52, %v862_v2  ;;  %v863_v35 = vadd.f32 %v839_v62, %v4123_v10  ;;  %v849_v4 = vadd.f32 %v845_v40, %v4027_v25 }
 0x1cd   : > { %637 = vrot.lane.b32.xlu0 %v4186_v18, %s3798_s14  ;;  %v860_v31 = vadd.f32 %v827_v30, %v4120_v9  ;;  %v865_v28 = vadd.f32 %v841_v7, %v4163_v6  ;;  %v861_v62 = vadd.f32 %v826_v54, %v4160_v5  ;;  %v271_v6 = vld [vmem:[#allocation7 + $0x20] ss:$8 sm:$0xf]  ;;  %v4350_v10 = vmax.f32 %v4033_v26, 0.0 }
 0x1ce   : > { %v4268_v42 = vadd.f32 %v853_v48, %v849_v4  ;;  %v867_v51 = vmax.f32 %v859_v34, %v863_v35  ;;  %v4271_v45 = vmax.f32 %v4015_v23, %v866_v29  ;;  %v4361_v0 = vrot.slane %v269_v8, %v4065_v41 }
 0x1cf   : > { %639 = vrot.lane.b32.xlu1 %v4197_v27, %s3798_s14  ;;  %v868_v63 = vmax.f32 %v860_v31, %v864_v15  ;;  %v869_v2 = vmax.f32 %v861_v62, %v865_v28  ;;  %v259_v62 = vld [vmem:[#allocation7 + $0x2] ss:$8 sm:$0xf]  ;;  %5878 = vst [vmem:[#allocation46_spill] sm:$0xff] %v4350_v10  ;;  %v4364_v61 = vrot.slane %v269_v8, %v4068_v43 }
 0x1d0   : > { %v4279_v30 = vmax.f32 %v4033_v26, %v867_v51  ;;  %v4341_v5 = vrot.slane %v259_v62, %v4065_v41  ;;  %v4347_v32 = vrot.slane %v259_v62, %v4059_v38  ;;  %v4353_v11 = vrot.slane %v259_v62, %v4068_v43  ;;  %5879 = vst [vmem:[#allocation47_spill] sm:$0xff] %v4361_v0 }
 0x1d1   : > { %645 = vrot.lane.b32.xlu0 %v4175_v49, %s3799_s25  ;;  %v4282_v3 = vmax.f32 %v4021_v24, %v868_v63  ;;  %v4289_v54 = vmax.f32 %v4027_v25, %v869_v2  ;;  %v4356_v60 = vrot.slane %v259_v62, %v4077_v47  ;;  %5880 = vst [vmem:[#allocation48_spill] sm:$0xff] %v4364_v61 }
 0x1d2   : > { %v4367_v53 = vrot.slane %v269_v8, %v4059_v38  ;;  %v4370_v50 = vrot.slane %v269_v8, %v4077_v47  ;;  %v4373_v44 = vrot.slane %v271_v6, %v4059_v38  ;;  %v4380_v21 = vrot.slane %v271_v6, %v4068_v43 }
 0x1d3   : > { %647 = vrot.lane.b32.xlu1 %v4183_v57, %s3799_s25  ;;  %v4383_v22 = vrot.slane %v271_v6, %v4077_v47  ;;  %v4389_v24 = vrot.slane %v261_v1, %v4059_v38  ;;  %v4401_v25 = vrot.slane %v261_v1, %v4068_v43  ;;  %v4409_v10 = vrot.slane %v263_v20, %v4065_v41 }
 0x1d4   : > { %5881 = vst [vmem:[#allocation49_spill] sm:$0xff] %v4367_v53  ;;  %5882 = vst [vmem:[#allocation50_spill] sm:$0xff] %v4373_v44  ;;  %v4412_v57 = vrot.slane %v263_v20, %v4059_v38 }
 0x1d5   : > { %649 = vrot.lane.b32.xlu0 %v4186_v18, %s3799_s25 }
 0x1d7   : > { %651 = vrot.lane.b32.xlu1 %v4197_v27, %s3799_s25 }
 0x1d9   : > { %874 = vrot.lane.b32.xlu0 %v4243_v36, %s3798_s14 }
 0x1db   : > { %876 = vrot.lane.b32.xlu1 %v4255_v55, %s3798_s14 }
 0x1dd   : > { %878 = vrot.lane.b32.xlu0 %v4258_v16, %s3798_s14 }
 0x1df   : > { %880 = vrot.lane.b32.xlu1 %v4268_v42, %s3798_s14 }
 0x1e1   : > { %898 = vrot.lane.b32.xlu0 %v4271_v45, %s3798_s14 }
 0x1e3   : > { %900 = vrot.lane.b32.xlu1 %v4279_v30, %s3798_s14 }
 0x1e5   : > { %902 = vrot.lane.b32.xlu0 %v4282_v3, %s3798_s14 }
 0x1e7   : > { %904 = vrot.lane.b32.xlu1 %v4289_v54, %s3798_s14 }
 0x1e9   : > { %910 = vrot.lane.b32.xlu0 %v4271_v45, %s3799_s25 }
 0x1eb   : > { %912 = vrot.lane.b32.xlu1 %v4279_v30, %s3799_s25 }
 0x1ed   : > { %914 = vrot.lane.b32.xlu0 %v4282_v3, %s3799_s25 }
 0x1ef   : > { %916 = vrot.lane.b32.xlu1 %v4289_v54, %s3799_s25 }
 0x1f1   : > { %886 = vrot.lane.b32.xlu0 %v4243_v36, %s3799_s25 }
 0x1f3   : > { %888 = vrot.lane.b32.xlu1 %v4255_v55, %s3799_s25 }
 0x1f5   : > { %890 = vrot.lane.b32.xlu0 %v4258_v16, %s3799_s25 }
 0x1f7   : > { %892 = vrot.lane.b32.xlu1 %v4268_v42, %s3799_s25 }
 0x1f9   : > { %620 = vrot.lane.b32.xlu0 %v4135_v17, %s3799_s25 }
 0x1fb   : > { %622 = vrot.lane.b32.xlu1 %v4153_v56, %s3799_s25 }
 0x1fd   : > { %624 = vrot.lane.b32.xlu0 %v4156_v46, %s3799_s25 }
 0x1ff   : > { %626 = vrot.lane.b32.xlu1 %v4172_v14, %s3799_s25  ;;  %v4426_v14 = vrot.slane %v263_v20, %v4077_v47 }
 0x233   : > { %v608_v7 = vpop.permute.xlu0 %607 }
 0x235   : > { %v610_v33 = vpop.permute.xlu1 %609 }
 0x236   : > { %v618_v58 = vsel %vm615_vm3, %v608_v7, %v610_v33 }
 0x237   : > { %v612_v39 = vpop.permute.xlu0 %611  ;;  %v679_v62 = vmul.f32 %v4341_v5, %v618_v58  ;;  %v4392_v58 = vrot.slane %v261_v1, %v4065_v41 }
 0x238   : > { %v617_v8 = vsel %vm615_vm3, %v610_v33, %v612_v39 }
 0x239   : > { %v614_v40 = vpop.permute.xlu1 %613  ;;  %v4421_v23 = vmul.f32 %v4353_v11, %v617_v8 }
 0x23a   : > { %v619_v59 = vsel %vm615_vm3, %v614_v40, %v608_v7  ;;  %v4377_v7 = vrot.slane %v271_v6, %v4065_v41  ;;  %v616_v49 = vsel %vm615_vm3, %v612_v39, %v614_v40  ;;  %v4415_v39 = vrot.slane %v263_v20, %v4068_v43 }
 0x23b   : > { %v4317_v12 = vpop.permute.xlu0 %633  ;;  %v678_v18 = vmul.f32 %v4347_v32, %v619_v59  ;;  %v4404_v59 = vrot.slane %v261_v1, %v4077_v47  ;;  %v4418_v40 = vadd.f32 %v679_v62, %v4153_v56  ;;  %v4429_v41 = vmul.f32 %v4356_v60, %v616_v49 }
 0x23c   : > { %5883 = vst [vmem:[#allocation51_spill] sm:$0xff] %v4377_v7 }
 0x23d   : > { %v4319_v52 = vpop.permute.xlu1 %635  ;;  %5884 = vst [vmem:[#allocation52_spill] sm:$0xff] %v4418_v40  ;;  %v4432_v38 = vadd.f32 %v678_v18, %v4135_v17 }
 0x23e   : > { %v643_v6 = vsel %vm615_vm3, %v4317_v12, %v4319_v52 }
 0x23f   : > { %v4321_v34 = vpop.permute.xlu0 %637  ;;  %5885 = vst [vmem:[#allocation53_spill] sm:$0xff] %v4432_v38  ;;  %v4435_v43 = vadd.f32 %v4361_v0, %v643_v6 }
 0x241   : > { %v4323_v48 = vpop.permute.xlu1 %639 }
 0x243   : > { %v4325_v15 = vpop.permute.xlu0 %645 }
 0x245   : > { %v4327_v29 = vpop.permute.xlu1 %647 }
 0x247   : > { %v4329_v35 = vpop.permute.xlu0 %649 }
 0x249   : > { %v4331_v4 = vpop.permute.xlu1 %651 }
 0x24b   : > { %v4333_v31 = vpop.permute.xlu0 %874 }
 0x24d   : > { %v4335_v28 = vpop.permute.xlu1 %876 }
 0x24f   : > { %v4337_v51 = vpop.permute.xlu0 %878 }
 0x251   : > { %v881_v63 = vpop.permute.xlu1 %880 }
 0x253   : > { %v899_v2 = vpop.permute.xlu0 %898 }
 0x255   : > { %v901_v9 = vpop.permute.xlu1 %900 }
 0x256   : > { %v908_v1 = vsel %vm615_vm3, %v899_v2, %v901_v9 }
 0x257   : > { %v903_v13 = vpop.permute.xlu0 %902  ;;  %v939_v17 = vadd.f32 %v908_v1, %v4361_v0  ;;  %v882_v1 = vsel %vm615_vm3, %v4337_v51, %v881_v63 }
 0x258   : > { %v907_v18 = vsel %vm615_vm3, %v901_v9, %v903_v13 }
 0x259   : > { %v905_v19 = vpop.permute.xlu1 %904  ;;  %v940_v40 = vadd.f32 %v907_v18, %v4364_v61 }
 0x25a   : > { %v909_v33 = vsel %vm615_vm3, %v905_v19, %v899_v2  ;;  %v885_v2 = vsel %vm615_vm3, %v881_v63, %v4333_v31  ;;  %v906_v8 = vsel %vm615_vm3, %v903_v13, %v905_v19  ;;  %v642_v63 = vsel %vm615_vm3, %v4319_v52, %v4321_v34 }
 0x25b   : > { %v911_v27 = vpop.permute.xlu0 %910  ;;  %v938_v20 = vadd.f32 %v909_v33, %v4367_v53  ;;  %v884_v33 = vsel %vm615_vm3, %v4333_v31, %v4335_v28  ;;  %v922_v19 = vmul.f32 %v885_v2, %v4347_v32 }
 0x25d   : > { %v913_v26 = vpop.permute.xlu1 %912 }
 0x25e   : > { %v920_v56 = vsel %vm628_vm4, %v911_v27, %v913_v26 }
 0x25f   : > { %v915_v62 = vpop.permute.xlu0 %914  ;;  %v942_v47 = vadd.f32 %v920_v56, %v4373_v44 }
 0x260   : > { %v919_v49 = vsel %vm628_vm4, %v913_v26, %v915_v62  ;;  %v883_v26 = vsel %vm615_vm3, %v4335_v28, %v4337_v51  ;;  %v941_v28 = vadd.f32 %v906_v8, %v4370_v50 }
 0x261   : > { %v943_v6 = vadd.f32 %v919_v49, %v4377_v7  ;;  %v946_v9 = vmax.f32 %v938_v20, %v942_v47  ;;  %v917_v56 = vpop.permute.xlu1 %916  ;;  %v654_v20 = vsel %vm628_vm4, %v4327_v29, %v4329_v35  ;;  %v924_v8 = vmul.f32 %v883_v26, %v4353_v11 }
 0x262   : > { %v918_v13 = vsel %vm628_vm4, %v915_v62, %v917_v56  ;;  %v921_v49 = vsel %vm628_vm4, %v917_v56, %v911_v27  ;;  %v655_v27 = vsel %vm628_vm4, %v4325_v15, %v4327_v29  ;;  %v923_v62 = vmul.f32 %v884_v33, %v4341_v5 }
 0x263   : > { %v887_v31 = vpop.permute.xlu0 %886  ;;  %v947_v0 = vmax.f32 %v939_v17, %v943_v6  ;;  %v944_v38 = vadd.f32 %v918_v13, %v4380_v21  ;;  %v945_v51 = vadd.f32 %v921_v49, %v4383_v22  ;;  %v4489_v18 = vmax.f32 %v4271_v45, %v946_v9 }
 0x264   : > { %v925_v6 = vmul.f32 %v882_v1, %v4356_v60  ;;  %v926_v33 = vadd.f32 %v922_v19, %v4243_v36  ;;  %v641_v36 = vsel %vm615_vm3, %v4321_v34, %v4323_v48  ;;  %v762_v26 = vadd.f32 %v4377_v7, %v654_v20 }
 0x265   : > { %v4482_v2 = vmax.f32 %v4279_v30, %v947_v0  ;;  %v948_v47 = vmax.f32 %v940_v40, %v944_v38  ;;  %v889_v17 = vpop.permute.xlu1 %888  ;;  %5887 = vst [vmem:[#allocation55_spill] sm:$0xff] %v4489_v18  ;;  %v949_v52 = vmax.f32 %v941_v28, %v945_v51  ;;  %v927_v1 = vadd.f32 %v923_v62, %v4255_v55 }
 0x266   : > { %v896_v0 = vsel %vm628_vm4, %v887_v31, %v889_v17  ;;  %v761_v56 = vadd.f32 %v4373_v44, %v655_v27  ;;  %v653_v55 = vsel %vm628_vm4, %v4329_v35, %v4331_v4  ;;  %v929_v28 = vadd.f32 %v925_v6, %v4268_v42 }
 0x267   : > { %5886 = vst [vmem:[#allocation54_spill] sm:$0xff] %v4482_v2  ;;  %1019 = vmatprep.subr.mxu0 %v4482_v2  ;;  %v891_v30 = vpop.permute.xlu0 %890  ;;  %v930_v29 = vmul.f32 %v896_v0, %v4389_v24  ;;  %v4502_v45 = vmax.f32 %v4289_v54, %v949_v52  ;;  %v4505_v38 = vmax.f32 %v4282_v3, %v948_v47 }
 0x268   : > { %v895_v40 = vsel %vm628_vm4, %v889_v17, %v891_v30  ;;  %1020 = vmatpush1.msra.mxu0 %v4489_v18  ;;  %v644_v54 = vsel %vm615_vm3, %v4323_v48, %v4317_v12  ;;  %v656_v3 = vsel %vm628_vm4, %v4331_v4, %v4325_v15  ;;  %v928_v15 = vadd.f32 %v924_v8, %v4258_v16 }
 0x269   : > { %5888 = vst [vmem:[#allocation56_spill] sm:$0xff] %v4502_v45  ;;  %5889 = vst [vmem:[#allocation57_spill] sm:$0xff] %v4505_v38  ;;  %v931_v9 = vmul.f32 %v895_v40, %v4392_v58  ;;  %v934_v19 = vadd.f32 %v930_v29, %v926_v33  ;;  %v893_v34 = vpop.permute.xlu1 %892  ;;  %1090 = vmatprep.subr.mxu1 %v4502_v45  ;;  %v736_v35 = vadd.f32 %v4367_v53, %v644_v54 }
 0x26a   : > { %v894_v13 = vsel %vm628_vm4, %v891_v30, %v893_v34  ;;  %v897_v12 = vsel %vm628_vm4, %v893_v34, %v887_v31  ;;  %1091 = vmatpush1.msra.mxu1 %v4505_v38  ;;  %v764_v4 = vadd.f32 %v4383_v22, %v656_v3  ;;  %v766_v31 = vmax.f32 %v4435_v43, %v762_v26  ;;  %v5896_v3 = vld [vmem:[#allocation53_spill] sm:$0xff] }
 0x26b   : > { %v621_v48 = vpop.permute.xlu0 %620  ;;  %v935_v49 = vadd.f32 %v931_v9, %v927_v1  ;;  %v932_v51 = vmul.f32 %v894_v13, %v4401_v25  ;;  %v933_v27 = vmul.f32 %v897_v12, %v4404_v59  ;;  %v763_v20 = vadd.f32 %v4380_v21, %v653_v55  ;;  %v5895_v9 = vld [vmem:[#allocation24_spill] sm:$0xff]  ;;  %v5897_v55 = vld [vmem:[#allocation21_spill] sm:$0xff] }
 0x26c   : > { %v4545_v16 = vmul.f32 %v934_v19, %v4412_v57  ;;  %v738_v52 = vadd.f32 %v4364_v61, %v642_v63  ;;  %v739_v8 = vadd.f32 %v4370_v50, %v641_v36  ;;  %v765_v6 = vmax.f32 %v736_v35, %v761_v56  ;;  %v5894_v36 = vld [vmem:[#allocation41_spill] sm:$0xff]  ;;  %v5903_v35 = vld [vmem:[#allocation23_spill] sm:$0xff] }
 0x26d   : > { %v4540_v62 = vmul.f32 %v935_v49, %v4409_v10  ;;  %v936_v47 = vadd.f32 %v932_v51, %v928_v15  ;;  %v623_v17 = vpop.permute.xlu1 %622  ;;  %v937_v42 = vadd.f32 %v933_v27, %v929_v28  ;;  %v684_v40 = vadd.f32 %v4421_v23, %v4156_v46  ;;  %v5899_v23 = vld [vmem:[#allocation43_spill] sm:$0xff]  ;;  %v5902_v28 = vld [vmem:[#allocation46_spill] sm:$0xff] }
 0x26e   : > { %5891 = vst [vmem:[#allocation59_spill] sm:$0xff] %v4545_v16  ;;  %v631_v33 = vsel %vm628_vm4, %v621_v48, %v623_v17  ;;  %v685_v26 = vadd.f32 %v4429_v41, %v5894_v36  ;;  %v768_v54 = vmax.f32 %v739_v8, %v764_v4  ;;  %v767_v56 = vmax.f32 %v738_v52, %v763_v20  ;;  %v5901_v41 = vld [vmem:[#allocation52_spill] sm:$0xff]  ;;  %v5917_v36 = vld [vmem:[#allocation18_spill] sm:$0xff] }
 0x26f   : > { %5890 = vst [vmem:[#allocation58_spill] sm:$0xff] %v4540_v62  ;;  %1021 = vmatprep.subr.mxu0 %v4540_v62  ;;  %v625_v0 = vpop.permute.xlu0 %624  ;;  %v707_v43 = vmul.f32 %v4389_v24, %v631_v33  ;;  %v4557_v29 = vmul.f32 %v937_v42, %v4426_v14  ;;  %v4560_v63 = vmul.f32 %v936_v47, %v4415_v39  ;;  %v4572_v13 = vmax.f32 %v5897_v55, 0.0  ;;  %v5907_v47 = vld [vmem:[#allocation22_spill] sm:$0xff]  ;;  %v5910_v42 = vld [vmem:[#allocation45_spill] sm:$0xff] }
 0x270   : > { %v630_v30 = vsel %vm628_vm4, %v623_v17, %v625_v0  ;;  %1022 = vmatpush1.msra.mxu0 %v4545_v16  ;;  %v4575_v46 = vmax.f32 %v5899_v23, %v766_v31  ;;  %v4589_v4 = vmax.f32 %v5903_v35, 0.0  ;;  %v5905_v31 = vld [vmem:[#allocation42_spill] sm:$0xff]  ;;  %v4603_v52 = vmax.f32 %v5910_v42, %v768_v54 }
 0x271   : > { %5892 = vst [vmem:[#allocation60_spill] sm:$0xff] %v4557_v29  ;;  %5893 = vst [vmem:[#allocation61_spill] sm:$0xff] %v4560_v63  ;;  %v708_v1 = vmul.f32 %v4392_v58, %v630_v30  ;;  %1023 = vmatprep.subr.mxu0 %v5895_v9  ;;  %v711_v19 = vadd.f32 %v707_v43, %v5896_v3  ;;  %v627_v34 = vpop.permute.xlu1 %626  ;;  %1092 = vmatprep.subr.mxu1 %v4557_v29  ;;  %v5919_v3 = vld [vmem:[#allocation20_spill] sm:$0xff] }
 0x272   : > { %1024 = vmatpush1.msra.mxu0 %v5897_v55  ;;  %5898 = vst [vmem:[#allocation41_spill] sm:$0xff] %v4572_v13  ;;  %5900 = vst [vmem:[#allocation53_spill] sm:$0xff] %v4575_v46  ;;  %v629_v49 = vsel %vm628_vm4, %v625_v0, %v627_v34  ;;  %v632_v15 = vsel %vm628_vm4, %v627_v34, %v621_v48  ;;  %1093 = vmatpush1.msra.mxu1 %v4560_v63  ;;  %v4597_v48 = vmax.f32 %v5907_v47, 0.0  ;;  %v5913_v0 = vld [vmem:[#allocation44_spill] sm:$0xff]  ;;  %v5920_v34 = vld [vmem:[#allocation19_spill] sm:$0xff] }
 0x273   : > { %v712_v12 = vadd.f32 %v708_v1, %v5901_v41  ;;  %1025 = vmatprep.subr.mxu0 %v5902_v28  ;;  %v709_v51 = vmul.f32 %v4401_v25, %v629_v49  ;;  %v710_v27 = vmul.f32 %v4404_v59, %v632_v15  ;;  %1094 = vmatprep.subr.mxu1 %v5903_v35  ;;  %v5918_v1 = vld [vmem:[#allocation17_spill] sm:$0xff]  ;;  %v5722_v23 = vmax.f32 %v5920_v34, 0.0 }
 0x274   : > { %1026 = vmatpush1.msra.mxu0 %v4572_v13  ;;  %5904 = vst [vmem:[#allocation43_spill] sm:$0xff] %v4589_v4  ;;  %v4592_v20 = vmax.f32 %v5905_v31, %v765_v6  ;;  %1095 = vmatpush1.msra.mxu1 %v5907_v47  ;;  %5908 = vst [vmem:[#allocation42_spill] sm:$0xff] %v4597_v48  ;;  %v4608_v6 = vmul.f32 %v4412_v57, %v711_v19  ;;  %v5724_v54 = vmax.f32 %v5918_v1, 0.0  ;;  %v5921_v41 = vmov 0.0   ;;  %v1145_v31 = vld [vmem:[#allocation8 + $0x38] sm:$0xff] }
 0x275   : > { %1027 = vmatprep.subr.mxu0 %v4575_v46  ;;  %v4600_v17 = vmul.f32 %v4409_v10, %v712_v12  ;;  %5911 = vst [vmem:[#allocation45_spill] sm:$0xff] %v4603_v52  ;;  %v713_v8 = vadd.f32 %v709_v51, %v684_v40  ;;  %v714_v33 = vadd.f32 %v710_v27, %v685_v26  ;;  %v5725_v26 = vmax.f32 %v5917_v36, 0.0 }
 0x276   : > { %5906 = vst [vmem:[#allocation52_spill] sm:$0xff] %v4592_v20  ;;  %1096 = vmatprep.subr.mxu1 %v4589_v4  ;;  %1028 = vmatpush1.msra.mxu0 %v4592_v20  ;;  %5912 = vst [vmem:[#allocation63_spill] sm:$0xff] %v4608_v6  ;;  %v4613_v43 = vmax.f32 %v5913_v0, %v767_v56  ;;  %v966_v56 = vld [vmem:[#allocation8 + $0x10] sm:$0xff]  ;;  %v5723_v19 = vmax.f32 %v5919_v3, 0.0  ;;  %v5932_v4 = vld [vmem:[#allocation29_spill] sm:$0xff] }
 0x277   : > { %5909 = vst [vmem:[#allocation62_spill] sm:$0xff] %v4600_v17  ;;  %1097 = vmatpush1.msra.mxu1 %v4597_v48  ;;  %1029 = vmatprep.subr.mxu0 %v4600_v17  ;;  %v4616_v30 = vmul.f32 %v4415_v39, %v713_v8  ;;  %v4621_v40 = vmul.f32 %v4426_v14, %v714_v33  ;;  %v5931_v17 = vld [vmem:[#allocation32_spill] sm:$0xff] }
 0x278   : > { %5914 = vst [vmem:[#allocation44_spill] sm:$0xff] %v4613_v43  ;;  %1098 = vmatprep.subr.mxu1 %v4603_v52  ;;  %1030 = vmatpush1.msra.mxu0 %v4608_v6 }
 0x279   : > { %5915 = vst [vmem:[#allocation64_spill] sm:$0xff] %v4616_v30  ;;  %5916 = vst [vmem:[#allocation65_spill] sm:$0xff] %v4621_v40  ;;  %1099 = vmatpush1.msra.mxu1 %v4613_v43  ;;  %1031 = vmatprep.subr.mxu0 %v5917_v36 }
 0x27a   : > { %1100 = vmatprep.subr.mxu1 %v4621_v40  ;;  %1032 = vmatpush1.msra.mxu0 %v5918_v1 }
 0x27b   : > { %1101 = vmatpush1.msra.mxu1 %v4616_v30  ;;  %1033 = vmatprep.subr.mxu0 %v5725_v26  ;;  %v5928_v30 = vld [vmem:[#allocation27_spill] sm:$0xff] }
 0x27c   : > { %1102 = vmatprep.subr.mxu1 %v5919_v3  ;;  %1034 = vmatpush1.msra.mxu0 %v5724_v54 }
 0x27d   : > { %1103 = vmatpush1.msra.mxu1 %v5920_v34  ;;  %3502 = vmatmul.mubr.msk.f32.vlgmr.msra.gmra.mxu0 %vm999_vm5, %v966_v56 }
 0x27e   : > { %1104 = vmatprep.subr.mxu1 %v5723_v19  ;;  %1218 = vmatprep.mubr.f32.mxu0 %v5921_v41 }
 0x27f   : > { %1105 = vmatpush1.msra.mxu1 %v5722_v23 }
 0x280   : > { %3503 = vmatmul.mubr.msk.f32.vlgmr.msra.gmra.mxu1 %vm999_vm5, %v966_v56 }
 0x281   : > { %1289 = vmatprep.mubr.f32.mxu1 %v5921_v41 }
 0x33d   : > { %v1069_v12 = vpop.f32.mrf.mxu0 }
 0x33e   : > { %v1146_v27 = vmax.f32 %v1069_v12, 0.0 }
 0x33f   : > { %v1071_v49 = vpop.f32.mrf.mxu0 }
 0x340   : > { %v1147_v15 = vmax.f32 %v1071_v49, 0.0  ;;  %v1140_v51 = vpop.f32.mrf.mxu1 }
 0x341   : > { %v1148_v42 = vmax.f32 %v1140_v51, 0.0 }
 0x342   : > { %v1142_v8 = vpop.f32.mrf.mxu1  ;;  %1184 = vmatprep.subr.mxu0 %v1147_v15 }
 0x343   : > { %v1149_v33 = vmax.f32 %v1142_v8, 0.0  ;;  %1185 = vmatpush1.msra.mxu0 %v1146_v27 }
 0x344   : > { %3504 = vmatmul.mubr.msk.f32.vlgmr.msra.gmra.mxu0 %vm1150_vm6, %v1145_v31 }
 0x345   : > { %1255 = vmatprep.subr.mxu1 %v1149_v33  ;;  %1573 = vmatprep.mubr.f32.mxu0 %v5921_v41  ;;  %v5926_v33 = vld [vmem:[#allocation25_spill] sm:$0xff] }
 0x346   : > { %1256 = vmatpush1.msra.mxu1 %v1148_v42 }
 0x347   : > { %3505 = vmatmul.mubr.msk.f32.vlgmr.msra.gmra.mxu1 %vm1150_vm6, %v1145_v31 }
 0x348   : > { %1644 = vmatprep.mubr.f32.mxu1 %v5921_v41  ;;  %v5927_v41 = vld [vmem:[#allocation26_spill] sm:$0xff] }
 0x404   : > { %v4648_v0 = vpop.f32.mrf.mxu0 }
 0x405   : > { %5922 = vst [vmem:[#allocation66_spill] sm:$0xff] %v4648_v0  ;;  %1308 = vrot.lane.b32.xlu0 %v4648_v0, %s3796_s26 }
 0x406   : > { %v4652_v56 = vpop.f32.mrf.mxu0 }
 0x407   : > { %5923 = vst [vmem:[#allocation67_spill] sm:$0xff] %v4652_v56  ;;  %v4654_v12 = vpop.f32.mrf.mxu1  ;;  %1310 = vrot.lane.b32.xlu1 %v4652_v56, %s3796_s26 }
 0x408   : > { %5924 = vst [vmem:[#allocation68_spill] sm:$0xff] %v4654_v12 }
 0x409   : > { %1312 = vrot.lane.b32.xlu0 %v4654_v12, %s3796_s26  ;;  %v4660_v49 = vpop.f32.mrf.mxu1 }
 0x40a   : > { %5925 = vst [vmem:[#allocation69_spill] sm:$0xff] %v4660_v49 }
 0x40b   : > { %1314 = vrot.lane.b32.xlu1 %v4660_v49, %s3796_s26 }
 0x40d   : > { %1320 = vrot.lane.b32.xlu0 %v4648_v0, %s3797_s7 }
 0x40f   : > { %1322 = vrot.lane.b32.xlu1 %v4652_v56, %s3797_s7 }
 0x411   : > { %1324 = vrot.lane.b32.xlu0 %v4654_v12, %s3797_s7 }
 0x413   : > { %1326 = vrot.lane.b32.xlu1 %v4660_v49, %s3797_s7 }
 0x477   : > { %v1309_v15 = vpop.permute.xlu0 %1308 }
 0x479   : > { %v1311_v51 = vpop.permute.xlu1 %1310 }
 0x47a   : > { %v1318_v8 = vsel %vm473_vm1, %v1309_v15, %v1311_v51 }
 0x47b   : > { %v1313_v27 = vpop.permute.xlu0 %1312  ;;  %v1333_v34 = vmul.f32 %v1318_v8, %v5927_v41 }
 0x47c   : > { %v1317_v54 = vsel %vm473_vm1, %v1311_v51, %v1313_v27  ;;  %v5930_v51 = vld [vmem:[#allocation33_spill] sm:$0xff] }
 0x47d   : > { %v1315_v31 = vpop.permute.xlu1 %1314  ;;  %v1334_v1 = vmul.f32 %v1317_v54, %v5928_v30  ;;  %v1337_v30 = vadd.f32 %v1333_v34, %v4652_v56  ;;  %v5936_v34 = vld [vmem:[#allocation37_spill] sm:$0xff] }
 0x47e   : > { %v1319_v42 = vsel %vm473_vm1, %v1315_v31, %v1309_v15  ;;  %v1316_v40 = vsel %vm473_vm1, %v1313_v27, %v1315_v31  ;;  %v5929_v15 = vld [vmem:[#allocation31_spill] sm:$0xff] }
 0x47f   : > { %v1332_v23 = vmul.f32 %v1319_v42, %v5926_v33  ;;  %v1321_v19 = vpop.permute.xlu0 %1320  ;;  %v1335_v46 = vmul.f32 %v1316_v40, %v5932_v4  ;;  %v1338_v31 = vadd.f32 %v1334_v1, %v4654_v12 }
 0x481   : > { %v1323_v26 = vpop.permute.xlu1 %1322  ;;  %v1336_v36 = vadd.f32 %v1332_v23, %v4648_v0 }
 0x482   : > { %v1330_v3 = vsel %vm486_vm2, %v1321_v19, %v1323_v26 }
 0x483   : > { %v1340_v43 = vmul.f32 %v1330_v3, %v5929_v15  ;;  %v1325_v33 = vpop.permute.xlu0 %1324  ;;  %v1352_v52 = vadd.f32 %v1330_v3, %v5930_v51  ;;  %v5934_v3 = vld [vmem:[#allocation36_spill] sm:$0xff] }
 0x484   : > { %v1329_v6 = vsel %vm486_vm2, %v1323_v26, %v1325_v33  ;;  %v5933_v26 = vld [vmem:[#allocation30_spill] sm:$0xff] }
 0x485   : > { %v1341_v41 = vmul.f32 %v1329_v6, %v5931_v17  ;;  %v1327_v48 = vpop.permute.xlu1 %1326  ;;  %v4691_v20 = vadd.f32 %v1340_v43, %v1336_v36  ;;  %v1348_v15 = vadd.f32 %v1319_v42, %v5933_v26  ;;  %v5935_v43 = vld [vmem:[#allocation35_spill] sm:$0xff]  ;;  %v5939_v42 = vld [vmem:[#allocation34_spill] sm:$0xff] }
 0x486   : > { %v1328_v23 = vsel %vm486_vm2, %v1325_v33, %v1327_v48  ;;  %v1331_v27 = vsel %vm486_vm2, %v1327_v48, %v1321_v19  ;;  %v1353_v36 = vadd.f32 %v1329_v6, %v5935_v43  ;;  %v5937_v33 = vld [vmem:[#allocation38_spill] sm:$0xff]  ;;  %v5938_v48 = vld [vmem:[#allocation28_spill] sm:$0xff]  ;;  %v1339_v19 = vadd.f32 %v1335_v46, %v4660_v49 }
 0x487   : > { %v1342_v51 = vmul.f32 %v1328_v23, %v5934_v3  ;;  %1364 = vrot.lane.b32.xlu0 %v4691_v20, %s3798_s14  ;;  %v1343_v17 = vmul.f32 %v1331_v27, %v5936_v34  ;;  %v4706_v4 = vadd.f32 %v1341_v41, %v1337_v30  ;;  %v1356_v47 = vmax.f32 %v1348_v15, %v1352_v52  ;;  %v5940_v30 = vld [vmem:[#allocation40_spill] sm:$0xff]  ;;  %v5942_v34 = vld [vmem:[#allocation47_spill] sm:$0xff] }
 0x488   : > { %v1354_v13 = vadd.f32 %v1328_v23, %v5937_v33  ;;  %v1349_v1 = vadd.f32 %v1318_v8, %v5938_v48  ;;  %v1350_v3 = vadd.f32 %v1317_v54, %v5939_v42  ;;  %v1355_v41 = vadd.f32 %v1331_v27, %v5940_v30  ;;  %v5941_v23 = vld [vmem:[#allocation39_spill] sm:$0xff] }
 0x489   : > { %v4709_v35 = vadd.f32 %v1342_v51, %v1338_v31  ;;  %1366 = vrot.lane.b32.xlu1 %v4706_v4, %s3798_s14  ;;  %v4719_v52 = vadd.f32 %v1343_v17, %v1339_v19  ;;  %v1360_v51 = vmax.f32 %v4648_v0, %v1356_v47  ;;  %v1351_v8 = vadd.f32 %v1316_v40, %v5941_v23 }
 0x48a   : > { %v1357_v6 = vmax.f32 %v1349_v1, %v1353_v36  ;;  %v1358_v15 = vmax.f32 %v1350_v3, %v1354_v13 }
 0x48b   : > { %1368 = vrot.lane.b32.xlu0 %v4709_v35, %s3798_s14  ;;  %v1359_v46 = vmax.f32 %v1351_v8, %v1355_v41 }
 0x48c   : > { %v1361_v54 = vmax.f32 %v4652_v56, %v1357_v6  ;;  %v1362_v31 = vmax.f32 %v4654_v12, %v1358_v15 }
 0x48d   : > { %1370 = vrot.lane.b32.xlu1 %v4719_v52, %s3798_s14  ;;  %v1363_v13 = vmax.f32 %v4660_v49, %v1359_v46 }
 0x48f   : > { %1388 = vrot.lane.b32.xlu0 %v1360_v51, %s3798_s14 }
 0x491   : > { %1390 = vrot.lane.b32.xlu1 %v1361_v54, %s3798_s14 }
 0x493   : > { %1392 = vrot.lane.b32.xlu0 %v1362_v31, %s3798_s14 }
 0x495   : > { %1394 = vrot.lane.b32.xlu1 %v1363_v13, %s3798_s14 }
 0x497   : > { %1400 = vrot.lane.b32.xlu0 %v1360_v51, %s3799_s25 }
 0x499   : > { %1402 = vrot.lane.b32.xlu1 %v1361_v54, %s3799_s25 }
 0x49b   : > { %1404 = vrot.lane.b32.xlu0 %v1362_v31, %s3799_s25 }
 0x49d   : > { %1406 = vrot.lane.b32.xlu1 %v1363_v13, %s3799_s25 }
 0x49f   : > { %1376 = vrot.lane.b32.xlu0 %v4691_v20, %s3799_s25 }
 0x4a1   : > { %1378 = vrot.lane.b32.xlu1 %v4706_v4, %s3799_s25 }
 0x4a3   : > { %1380 = vrot.lane.b32.xlu0 %v4709_v35, %s3799_s25 }
 0x4a5   : > { %1382 = vrot.lane.b32.xlu1 %v4719_v52, %s3799_s25 }
 0x4f9   : > { %v1365_v47 = vpop.permute.xlu0 %1364 }
 0x4fb   : > { %v1367_v17 = vpop.permute.xlu1 %1366 }
 0x4fc   : > { %v1374_v63 = vsel %vm615_vm3, %v1365_v47, %v1367_v17 }
 0x4fd   : > { %v1369_v40 = vpop.permute.xlu0 %1368 }
 0x4ff   : > { %v1371_v27 = vpop.permute.xlu1 %1370 }
 0x500   : > { %v1375_v30 = vsel %vm615_vm3, %v1371_v27, %v1365_v47 }
 0x501   : > { %v1389_v3 = vpop.permute.xlu0 %1388 }
 0x503   : > { %v1391_v36 = vpop.permute.xlu1 %1390 }
 0x504   : > { %v1398_v15 = vsel %vm615_vm3, %v1389_v3, %v1391_v36 }
 0x505   : > { %v1393_v1 = vpop.permute.xlu0 %1392  ;;  %v1429_v43 = vadd.f32 %v1398_v15, %v5942_v34  ;;  %v1412_v15 = vmul.f32 %v1375_v30, %v4347_v32 }
 0x507   : > { %v1395_v19 = vpop.permute.xlu1 %1394 }
 0x508   : > { %v1399_v41 = vsel %vm615_vm3, %v1395_v19, %v1389_v3  ;;  %v1397_v3 = vsel %vm615_vm3, %v1391_v36, %v1393_v1  ;;  %v1396_v26 = vsel %vm615_vm3, %v1393_v1, %v1395_v19 }
 0x509   : > { %v1401_v6 = vpop.permute.xlu0 %1400  ;;  %v1428_v42 = vadd.f32 %v1399_v41, %v4367_v53  ;;  %v1373_v41 = vsel %vm615_vm3, %v1367_v17, %v1369_v40  ;;  %v1430_v47 = vadd.f32 %v1397_v3, %v4364_v61  ;;  %v1431_v19 = vadd.f32 %v1396_v26, %v4370_v50 }
 0x50b   : > { %v1403_v8 = vpop.permute.xlu1 %1402 }
 0x50c   : > { %v1410_v46 = vsel %vm628_vm4, %v1401_v6, %v1403_v8 }
 0x50d   : > { %v1405_v23 = vpop.permute.xlu0 %1404  ;;  %v1432_v48 = vadd.f32 %v1410_v46, %v4373_v44  ;;  %v1372_v46 = vsel %vm615_vm3, %v1369_v40, %v1371_v27 }
 0x50e   : > { %v1409_v33 = vsel %vm628_vm4, %v1403_v8, %v1405_v23  ;;  %v1415_v27 = vmul.f32 %v1372_v46, %v4356_v60 }
 0x50f   : > { %v1433_v28 = vadd.f32 %v1409_v33, %v4377_v7  ;;  %v1436_v8 = vmax.f32 %v1428_v42, %v1432_v48  ;;  %v1407_v44 = vpop.permute.xlu1 %1406  ;;  %v1413_v48 = vmul.f32 %v1374_v63, %v4341_v5 }
 0x510   : > { %v1408_v36 = vsel %vm628_vm4, %v1405_v23, %v1407_v44  ;;  %v1411_v33 = vsel %vm628_vm4, %v1407_v44, %v1401_v6  ;;  %v1414_v44 = vmul.f32 %v1373_v41, %v4353_v11  ;;  %v1416_v6 = vadd.f32 %v1412_v15, %v4691_v20 }
 0x511   : > { %v1437_v34 = vmax.f32 %v1429_v43, %v1433_v28  ;;  %v1377_v1 = vpop.permute.xlu0 %1376  ;;  %v1434_v17 = vadd.f32 %v1408_v36, %v4380_v21  ;;  %v1435_v40 = vadd.f32 %v1411_v33, %v4383_v22  ;;  %v4780_v28 = vmax.f32 %v1360_v51, %v1436_v8 }
 0x512   : > { %v1417_v41 = vadd.f32 %v1413_v48, %v4706_v4  ;;  %v1419_v33 = vadd.f32 %v1415_v27, %v4719_v52  ;;  %v4824_v52 = vmax.f32 %v4652_v56, 0.0  ;;  %v5956_v27 = vld [vmem:[#allocation46_spill] sm:$0xff] }
 0x513   : > { %v4778_v42 = vmax.f32 %v1361_v54, %v1437_v34  ;;  %5944 = vst [vmem:[#allocation71_spill] sm:$0xff] %v4780_v28  ;;  %v1438_v43 = vmax.f32 %v1430_v47, %v1434_v17  ;;  %v1439_v30 = vmax.f32 %v1431_v19, %v1435_v40  ;;  %v1379_v23 = vpop.permute.xlu1 %1378 }
 0x514   : > { %v1386_v26 = vsel %vm628_vm4, %v1377_v1, %v1379_v23  ;;  %5951 = vst [vmem:[#allocation78_spill] sm:$0xff] %v4824_v52 }
 0x515   : > { %5943 = vst [vmem:[#allocation70_spill] sm:$0xff] %v4778_v42  ;;  %v1381_v3 = vpop.permute.xlu0 %1380  ;;  %1517 = vmatprep.subr.mxu0 %v4778_v42  ;;  %v4788_v63 = vmax.f32 %v1362_v31, %v1438_v43  ;;  %v1420_v34 = vmul.f32 %v1386_v26, %v4389_v24  ;;  %v4794_v54 = vmax.f32 %v1363_v13, %v1439_v30  ;;  %v4829_v43 = vmax.f32 %v4648_v0, 0.0  ;;  %v5958_v26 = vld [vmem:[#allocation41_spill] sm:$0xff] }
 0x516   : > { %v1385_v51 = vsel %vm628_vm4, %v1379_v23, %v1381_v3  ;;  %1518 = vmatpush1.msra.mxu0 %v4780_v28  ;;  %v1418_v13 = vadd.f32 %v1414_v44, %v4709_v35  ;;  %v4836_v30 = vmax.f32 %v4660_v49, 0.0  ;;  %v4841_v23 = vmax.f32 %v4654_v12, 0.0  ;;  %v5955_v44 = vld [vmem:[#allocation61_spill] sm:$0xff] }
 0x517   : > { %5945 = vst [vmem:[#allocation72_spill] sm:$0xff] %v4788_v63  ;;  %5946 = vst [vmem:[#allocation73_spill] sm:$0xff] %v4794_v54  ;;  %v1421_v20 = vmul.f32 %v1385_v51, %v4392_v58  ;;  %v1424_v46 = vadd.f32 %v1420_v34, %v1416_v6  ;;  %1588 = vmatprep.subr.mxu1 %v4794_v54  ;;  %v1383_v8 = vpop.permute.xlu1 %1382  ;;  %v5957_v6 = vld [vmem:[#allocation23_spill] sm:$0xff]  ;;  %v5960_v34 = vld [vmem:[#allocation53_spill] sm:$0xff] }
 0x518   : > { %v1384_v31 = vsel %vm628_vm4, %v1381_v3, %v1383_v8  ;;  %v1387_v36 = vsel %vm628_vm4, %v1383_v8, %v1377_v1  ;;  %1589 = vmatpush1.msra.mxu1 %v4788_v63  ;;  %5952 = vst [vmem:[#allocation79_spill] sm:$0xff] %v4829_v43  ;;  %5953 = vst [vmem:[#allocation80_spill] sm:$0xff] %v4836_v30  ;;  %v5959_v3 = vld [vmem:[#allocation22_spill] sm:$0xff]  ;;  %v5961_v51 = vld [vmem:[#allocation43_spill] sm:$0xff] }
 0x519   : > { %v1425_v15 = vadd.f32 %v1421_v20, %v1417_v41  ;;  %v1422_v4 = vmul.f32 %v1384_v31, %v4401_v25  ;;  %v1423_v47 = vmul.f32 %v1387_v36, %v4404_v59  ;;  %v4812_v17 = vmul.f32 %v1424_v46, %v4412_v57  ;;  %5954 = vst [vmem:[#allocation81_spill] sm:$0xff] %v4841_v23  ;;  %v5962_v41 = vld [vmem:[#allocation52_spill] sm:$0xff]  ;;  %v5963_v20 = vld [vmem:[#allocation42_spill] sm:$0xff]  ;;  %v5965_v8 = vld [vmem:[#allocation45_spill] sm:$0xff] }
 0x51a   : > { %v5964_v46 = vld [vmem:[#allocation62_spill] sm:$0xff]  ;;  %v5967_v31 = vld [vmem:[#allocation44_spill] sm:$0xff] }
 0x51b   : > { %v4809_v19 = vmul.f32 %v1425_v15, %v4409_v10  ;;  %5948 = vst [vmem:[#allocation75_spill] sm:$0xff] %v4812_v17  ;;  %v1426_v40 = vadd.f32 %v1422_v4, %v1418_v13  ;;  %v1427_v48 = vadd.f32 %v1423_v47, %v1419_v33  ;;  %v5966_v15 = vld [vmem:[#allocation63_spill] sm:$0xff]  ;;  %v5968_v36 = vld [vmem:[#allocation18_spill] sm:$0xff]  ;;  %v5969_v13 = vld [vmem:[#allocation65_spill] sm:$0xff] }
 0x51c   : > { %v5970_v33 = vld [vmem:[#allocation17_spill] sm:$0xff]  ;;  %v1456_v4 = vld [vmem:[#allocation8 + $0x18] sm:$0xff] }
 0x51d   : > { %5947 = vst [vmem:[#allocation74_spill] sm:$0xff] %v4809_v19  ;;  %1519 = vmatprep.subr.mxu0 %v4809_v19  ;;  %v4816_v1 = vmul.f32 %v1426_v40, %v4415_v39  ;;  %v4820_v35 = vmul.f32 %v1427_v48, %v4426_v14  ;;  %v5971_v47 = vld [vmem:[#allocation64_spill] sm:$0xff]  ;;  %v5972_v40 = vmax.f32 %v5968_v36, 0.0 }
 0x51e   : > { %1520 = vmatpush1.msra.mxu0 %v4812_v17  ;;  %v5973_v48 = vld [vmem:[#allocation20_spill] sm:$0xff] }
 0x51f   : > { %5949 = vst [vmem:[#allocation76_spill] sm:$0xff] %v4816_v1  ;;  %5950 = vst [vmem:[#allocation77_spill] sm:$0xff] %v4820_v35  ;;  %1521 = vmatprep.subr.mxu0 %v4652_v56  ;;  %1590 = vmatprep.subr.mxu1 %v4820_v35 }
 0x520   : > { %1522 = vmatpush1.msra.mxu0 %v4648_v0  ;;  %1591 = vmatpush1.msra.mxu1 %v4816_v1 }
 0x521   : > { %1523 = vmatprep.subr.mxu0 %v4824_v52  ;;  %1592 = vmatprep.subr.mxu1 %v4660_v49 }
 0x522   : > { %1524 = vmatpush1.msra.mxu0 %v4829_v43  ;;  %1593 = vmatpush1.msra.mxu1 %v4654_v12 }
 0x523   : > { %1525 = vmatprep.subr.mxu0 %v4482_v2  ;;  %1594 = vmatprep.subr.mxu1 %v4836_v30 }
 0x524   : > { %1526 = vmatpush1.msra.mxu0 %v4489_v18  ;;  %1595 = vmatpush1.msra.mxu1 %v4841_v23  ;;  %v5989_v18 = vld [vmem:[#allocation29_spill] sm:$0xff] }
 0x525   : > { %1527 = vmatprep.subr.mxu0 %v4540_v62  ;;  %1596 = vmatprep.subr.mxu1 %v4502_v45  ;;  %v5988_v45 = vld [vmem:[#allocation32_spill] sm:$0xff] }
 0x526   : > { %1528 = vmatpush1.msra.mxu0 %v4545_v16  ;;  %1597 = vmatpush1.msra.mxu1 %v4505_v38 }
 0x527   : > { %1529 = vmatprep.subr.mxu0 %v5895_v9  ;;  %1598 = vmatprep.subr.mxu1 %v4557_v29 }
 0x528   : > { %1530 = vmatpush1.msra.mxu0 %v5897_v55  ;;  %1599 = vmatpush1.msra.mxu1 %v5955_v44 }
 0x529   : > { %1531 = vmatprep.subr.mxu0 %v5956_v27  ;;  %1600 = vmatprep.subr.mxu1 %v5957_v6  ;;  %v5985_v27 = vld [vmem:[#allocation27_spill] sm:$0xff] }
 0x52a   : > { %1532 = vmatpush1.msra.mxu0 %v5958_v26  ;;  %1601 = vmatpush1.msra.mxu1 %v5959_v3  ;;  %v5984_v3 = vld [vmem:[#allocation26_spill] sm:$0xff] }
 0x52b   : > { %1533 = vmatprep.subr.mxu0 %v5960_v34  ;;  %1602 = vmatprep.subr.mxu1 %v5961_v51  ;;  %v5974_v34 = vmax.f32 %v5970_v33, 0.0 }
 0x52c   : > { %1534 = vmatpush1.msra.mxu0 %v5962_v41  ;;  %1603 = vmatpush1.msra.mxu1 %v5963_v20  ;;  %v5975_v41 = vld [vmem:[#allocation19_spill] sm:$0xff] }
 0x52d   : > { %1535 = vmatprep.subr.mxu0 %v5964_v46  ;;  %1604 = vmatprep.subr.mxu1 %v5965_v8  ;;  %v5976_v46 = vmax.f32 %v5973_v48, 0.0  ;;  %v5977_v8 = vmov 0.0  }
 0x52e   : > { %1536 = vmatpush1.msra.mxu0 %v5966_v15  ;;  %1605 = vmatpush1.msra.mxu1 %v5967_v31  ;;  %v5978_v15 = vmax.f32 %v5975_v41, 0.0 }
 0x52f   : > { %1537 = vmatprep.subr.mxu0 %v5968_v36  ;;  %1606 = vmatprep.subr.mxu1 %v5969_v13 }
 0x530   : > { %1538 = vmatpush1.msra.mxu0 %v5970_v33  ;;  %1607 = vmatpush1.msra.mxu1 %v5971_v47 }
 0x531   : > { %1539 = vmatprep.subr.mxu0 %v5972_v40  ;;  %1608 = vmatprep.subr.mxu1 %v5973_v48  ;;  %v1651_v40 = vld [vmem:[#allocation8 + $0x40] sm:$0xff] }
 0x532   : > { %1540 = vmatpush1.msra.mxu0 %v5974_v34  ;;  %1609 = vmatpush1.msra.mxu1 %v5975_v41 }
 0x533   : > { %3506 = vmatmul.mubr.msk.f32.vlgmr.msra.gmra.mxu0 %vm1505_vm7, %v1456_v4  ;;  %1610 = vmatprep.subr.mxu1 %v5976_v46 }
 0x534   : > { %1723 = vmatprep.mubr.f32.mxu0 %v5977_v8  ;;  %1611 = vmatpush1.msra.mxu1 %v5978_v15 }
 0x535   : > { %3507 = vmatmul.mubr.msk.f32.vlgmr.msra.gmra.mxu1 %vm1505_vm7, %v1456_v4 }
 0x536   : > { %1794 = vmatprep.mubr.f32.mxu1 %v5977_v8 }
 0x5f3   : > { %v1575_v31 = vpop.f32.mrf.mxu0 }
 0x5f4   : > { %v1652_v47 = vmax.f32 %v1575_v31, 0.0 }
 0x5f5   : > { %v1577_v36 = vpop.f32.mrf.mxu0  ;;  %v1646_v33 = vpop.f32.mrf.mxu1 }
 0x5f6   : > { %v1653_v13 = vmax.f32 %v1577_v36, 0.0  ;;  %v1654_v34 = vmax.f32 %v1646_v33, 0.0 }
 0x5f7   : > { %v1648_v20 = vpop.f32.mrf.mxu1 }
 0x5f8   : > { %1689 = vmatprep.subr.mxu0 %v1653_v13  ;;  %v1655_v48 = vmax.f32 %v1648_v20, 0.0 }
 0x5f9   : > { %1690 = vmatpush1.msra.mxu0 %v1652_v47 }
 0x5fa   : > { %3508 = vmatmul.mubr.msk.f32.vlgmr.msra.gmra.mxu0 %vm1150_vm6, %v1651_v40  ;;  %1760 = vmatprep.subr.mxu1 %v1655_v48 }
 0x5fb   : > { %2077 = vmatprep.mubr.f32.mxu0 %v5977_v8  ;;  %1761 = vmatpush1.msra.mxu1 %v1654_v34 }
 0x5fc   : > { %3509 = vmatmul.mubr.msk.f32.vlgmr.msra.gmra.mxu1 %vm1150_vm6, %v1651_v40  ;;  %v5983_v40 = vld [vmem:[#allocation25_spill] sm:$0xff] }
 0x5fd   : > { %2148 = vmatprep.mubr.f32.mxu1 %v5977_v8 }
 0x6ba   : > { %v4888_v4 = vpop.f32.mrf.mxu0 }
 0x6bb   : > { %5979 = vst [vmem:[#allocation53_spill] sm:$0xff] %v4888_v4  ;;  %1813 = vrot.lane.b32.xlu0 %v4888_v4, %s3796_s26 }
 0x6bc   : > { %v4892_v41 = vpop.f32.mrf.mxu0  ;;  %v4894_v46 = vpop.f32.mrf.mxu1 }
 0x6bd   : > { %5980 = vst [vmem:[#allocation52_spill] sm:$0xff] %v4892_v41  ;;  %5981 = vst [vmem:[#allocation62_spill] sm:$0xff] %v4894_v46  ;;  %1815 = vrot.lane.b32.xlu1 %v4892_v41, %s3796_s26 }
 0x6be   : > { %v4900_v20 = vpop.f32.mrf.mxu1 }
 0x6bf   : > { %1817 = vrot.lane.b32.xlu0 %v4894_v46, %s3796_s26  ;;  %5982 = vst [vmem:[#allocation45_spill] sm:$0xff] %v4900_v20 }
 0x6c1   : > { %1819 = vrot.lane.b32.xlu1 %v4900_v20, %s3796_s26 }
 0x6c3   : > { %1825 = vrot.lane.b32.xlu0 %v4888_v4, %s3797_s7 }
 0x6c5   : > { %1827 = vrot.lane.b32.xlu1 %v4892_v41, %s3797_s7 }
 0x6c7   : > { %1829 = vrot.lane.b32.xlu0 %v4894_v46, %s3797_s7 }
 0x6c9   : > { %1831 = vrot.lane.b32.xlu1 %v4900_v20, %s3797_s7 }
 0x72d   : > { %v1814_v15 = vpop.permute.xlu0 %1813 }
 0x72f   : > { %v1816_v31 = vpop.permute.xlu1 %1815 }
 0x730   : > { %v1823_v47 = vsel %vm473_vm1, %v1814_v15, %v1816_v31 }
 0x731   : > { %v1818_v36 = vpop.permute.xlu0 %1817  ;;  %v1838_v26 = vmul.f32 %v1823_v47, %v5984_v3 }
 0x732   : > { %v1822_v8 = vsel %vm473_vm1, %v1816_v31, %v1818_v36  ;;  %v5987_v31 = vld [vmem:[#allocation33_spill] sm:$0xff] }
 0x733   : > { %v1820_v13 = vpop.permute.xlu1 %1819  ;;  %v1839_v44 = vmul.f32 %v1822_v8, %v5985_v27  ;;  %v1842_v27 = vadd.f32 %v1838_v26, %v4892_v41  ;;  %v5993_v26 = vld [vmem:[#allocation37_spill] sm:$0xff] }
 0x734   : > { %v1824_v33 = vsel %vm473_vm1, %v1820_v13, %v1814_v15  ;;  %v1821_v55 = vsel %vm473_vm1, %v1818_v36, %v1820_v13  ;;  %v5986_v15 = vld [vmem:[#allocation31_spill] sm:$0xff] }
 0x735   : > { %v1837_v34 = vmul.f32 %v1824_v33, %v5983_v40  ;;  %v1826_v48 = vpop.permute.xlu0 %1825  ;;  %v1840_v30 = vmul.f32 %v1821_v55, %v5989_v18 }
 0x737   : > { %v1828_v51 = vpop.permute.xlu1 %1827  ;;  %v1841_v29 = vadd.f32 %v1837_v34, %v4888_v4  ;;  %v1843_v34 = vadd.f32 %v1839_v44, %v4894_v46 }
 0x738   : > { %v1835_v6 = vsel %vm486_vm2, %v1826_v48, %v1828_v51 }
 0x739   : > { %v1845_v9 = vmul.f32 %v1835_v6, %v5986_v15  ;;  %v1830_v40 = vpop.permute.xlu0 %1829  ;;  %v1857_v16 = vadd.f32 %v1835_v6, %v5987_v31  ;;  %v5991_v6 = vld [vmem:[#allocation36_spill] sm:$0xff] }
 0x73a   : > { %v1834_v38 = vsel %vm486_vm2, %v1828_v51, %v1830_v40  ;;  %v5990_v51 = vld [vmem:[#allocation30_spill] sm:$0xff] }
 0x73b   : > { %v1846_v3 = vmul.f32 %v1834_v38, %v5988_v45  ;;  %v1832_v62 = vpop.permute.xlu1 %1831  ;;  %v4931_v23 = vadd.f32 %v1845_v9, %v1841_v29  ;;  %v1853_v15 = vadd.f32 %v1824_v33, %v5990_v51  ;;  %v5992_v29 = vld [vmem:[#allocation35_spill] sm:$0xff]  ;;  %v1844_v33 = vadd.f32 %v1840_v30, %v4900_v20 }
 0x73c   : > { %v1833_v36 = vsel %vm486_vm2, %v1830_v40, %v1832_v62  ;;  %v1836_v13 = vsel %vm486_vm2, %v1832_v62, %v1826_v48  ;;  %v1858_v9 = vadd.f32 %v1834_v38, %v5992_v29  ;;  %v5994_v40 = vld [vmem:[#allocation38_spill] sm:$0xff]  ;;  %v5995_v62 = vld [vmem:[#allocation28_spill] sm:$0xff]  ;;  %v6000_v29 = vld [vmem:[#allocation47_spill] sm:$0xff] }
 0x73d   : > { %v1847_v31 = vmul.f32 %v1833_v36, %v5991_v6  ;;  %1869 = vrot.lane.b32.xlu0 %v4931_v23, %s3798_s14  ;;  %v1848_v45 = vmul.f32 %v1836_v13, %v5993_v26  ;;  %v4946_v18 = vadd.f32 %v1846_v3, %v1842_v27  ;;  %v1861_v2 = vmax.f32 %v1853_v15, %v1857_v16  ;;  %v5996_v48 = vld [vmem:[#allocation34_spill] sm:$0xff]  ;;  %v5997_v27 = vld [vmem:[#allocation40_spill] sm:$0xff] }
 0x73e   : > { %v1859_v12 = vadd.f32 %v1833_v36, %v5994_v40  ;;  %v1854_v44 = vadd.f32 %v1823_v47, %v5995_v62  ;;  %v1855_v6 = vadd.f32 %v1822_v8, %v5996_v48  ;;  %v1860_v3 = vadd.f32 %v1836_v13, %v5997_v27  ;;  %v5998_v36 = vld [vmem:[#allocation39_spill] sm:$0xff]  ;;  %v5999_v40 = vld [vmem:[#allocation50_spill] sm:$0xff] }
 0x73f   : > { %v4949_v43 = vadd.f32 %v1847_v31, %v1843_v34  ;;  %1871 = vrot.lane.b32.xlu1 %v4946_v18, %s3798_s14  ;;  %v4959_v16 = vadd.f32 %v1848_v45, %v1844_v33  ;;  %v1865_v31 = vmax.f32 %v4888_v4, %v1861_v2  ;;  %v1856_v47 = vadd.f32 %v1821_v55, %v5998_v36 }
 0x740   : > { %v1862_v38 = vmax.f32 %v1854_v44, %v1858_v9  ;;  %v1863_v15 = vmax.f32 %v1855_v6, %v1859_v12 }
 0x741   : > { %1873 = vrot.lane.b32.xlu0 %v4949_v43, %s3798_s14  ;;  %v1864_v30 = vmax.f32 %v1856_v47, %v1860_v3 }
 0x742   : > { %v1866_v8 = vmax.f32 %v4892_v41, %v1862_v38  ;;  %v1867_v34 = vmax.f32 %v4894_v46, %v1863_v15 }
 0x743   : > { %1875 = vrot.lane.b32.xlu1 %v4959_v16, %s3798_s14  ;;  %v1868_v45 = vmax.f32 %v4900_v20, %v1864_v30 }
 0x745   : > { %1893 = vrot.lane.b32.xlu0 %v1865_v31, %s3798_s14 }
 0x747   : > { %1895 = vrot.lane.b32.xlu1 %v1866_v8, %s3798_s14 }
 0x749   : > { %1897 = vrot.lane.b32.xlu0 %v1867_v34, %s3798_s14 }
 0x74b   : > { %1899 = vrot.lane.b32.xlu1 %v1868_v45, %s3798_s14 }
 0x74d   : > { %1905 = vrot.lane.b32.xlu0 %v1865_v31, %s3799_s25 }
 0x74f   : > { %1907 = vrot.lane.b32.xlu1 %v1866_v8, %s3799_s25 }
 0x751   : > { %1909 = vrot.lane.b32.xlu0 %v1867_v34, %s3799_s25 }
 0x753   : > { %1911 = vrot.lane.b32.xlu1 %v1868_v45, %s3799_s25 }
 0x755   : > { %1881 = vrot.lane.b32.xlu0 %v4931_v23, %s3799_s25 }
 0x757   : > { %1883 = vrot.lane.b32.xlu1 %v4946_v18, %s3799_s25 }
 0x759   : > { %1885 = vrot.lane.b32.xlu0 %v4949_v43, %s3799_s25 }
 0x75b   : > { %1887 = vrot.lane.b32.xlu1 %v4959_v16, %s3799_s25 }
 0x7af   : > { %v1870_v2 = vpop.permute.xlu0 %1869 }
 0x7b1   : > { %v1872_v55 = vpop.permute.xlu1 %1871 }
 0x7b2   : > { %v1879_v1 = vsel %vm615_vm3, %v1870_v2, %v1872_v55 }
 0x7b3   : > { %v1874_v12 = vpop.permute.xlu0 %1873 }
 0x7b5   : > { %v1876_v13 = vpop.permute.xlu1 %1875 }
 0x7b6   : > { %v1880_v27 = vsel %vm615_vm3, %v1876_v13, %v1870_v2 }
 0x7b7   : > { %v1894_v6 = vpop.permute.xlu0 %1893 }
 0x7b9   : > { %v1896_v9 = vpop.permute.xlu1 %1895 }
 0x7ba   : > { %v1903_v15 = vsel %vm615_vm3, %v1894_v6, %v1896_v9 }
 0x7bb   : > { %v1898_v44 = vpop.permute.xlu0 %1897  ;;  %v1934_v51 = vadd.f32 %v1903_v15, %v6000_v29  ;;  %v1917_v15 = vmul.f32 %v1880_v27, %v4347_v32 }
 0x7bd   : > { %v1900_v33 = vpop.permute.xlu1 %1899 }
 0x7be   : > { %v1904_v3 = vsel %vm615_vm3, %v1900_v33, %v1894_v6  ;;  %v1902_v6 = vsel %vm615_vm3, %v1896_v9, %v1898_v44  ;;  %v1901_v49 = vsel %vm615_vm3, %v1898_v44, %v1900_v33 }
 0x7bf   : > { %v1906_v38 = vpop.permute.xlu0 %1905  ;;  %v1933_v48 = vadd.f32 %v1904_v3, %v4367_v53  ;;  %v1878_v3 = vsel %vm615_vm3, %v1872_v55, %v1874_v12  ;;  %v1935_v2 = vadd.f32 %v1902_v6, %v4364_v61  ;;  %v1936_v33 = vadd.f32 %v1901_v49, %v4370_v50 }
 0x7c1   : > { %v1908_v47 = vpop.permute.xlu1 %1907 }
 0x7c2   : > { %v1915_v30 = vsel %vm628_vm4, %v1906_v38, %v1908_v47 }
 0x7c3   : > { %v1910_v36 = vpop.permute.xlu0 %1909  ;;  %v1937_v26 = vadd.f32 %v1915_v30, %v5999_v40  ;;  %v1877_v30 = vsel %vm615_vm3, %v1874_v12, %v1876_v13 }
 0x7c4   : > { %v1914_v62 = vsel %vm628_vm4, %v1908_v47, %v1910_v36  ;;  %v1920_v13 = vmul.f32 %v1877_v30, %v4356_v60 }
 0x7c5   : > { %v1938_v52 = vadd.f32 %v1914_v62, %v4377_v7  ;;  %v1941_v47 = vmax.f32 %v1933_v48, %v1937_v26  ;;  %v1912_v53 = vpop.permute.xlu1 %1911  ;;  %v1918_v26 = vmul.f32 %v1879_v1, %v4341_v5 }
 0x7c6   : > { %v1913_v9 = vsel %vm628_vm4, %v1910_v36, %v1912_v53  ;;  %v1916_v62 = vsel %vm628_vm4, %v1912_v53, %v1906_v38  ;;  %v1919_v53 = vmul.f32 %v1878_v3, %v4353_v11  ;;  %v1921_v38 = vadd.f32 %v1917_v15, %v4931_v23 }
 0x7c7   : > { %v1942_v29 = vmax.f32 %v1934_v51, %v1938_v52  ;;  %v1882_v44 = vpop.permute.xlu0 %1881  ;;  %v1939_v55 = vadd.f32 %v1913_v9, %v4380_v21  ;;  %v1940_v12 = vadd.f32 %v1916_v62, %v4383_v22  ;;  %v5020_v52 = vmax.f32 %v1865_v31, %v1941_v47 }
 0x7c8   : > { %v1922_v3 = vadd.f32 %v1918_v26, %v4946_v18  ;;  %v1924_v62 = vadd.f32 %v1920_v13, %v4959_v16  ;;  %v5064_v16 = vmax.f32 %v4892_v41, 0.0  ;;  %v6014_v13 = vld [vmem:[#allocation78_spill] sm:$0xff] }
 0x7c9   : > { %v5018_v48 = vmax.f32 %v1866_v8, %v1942_v29  ;;  %6002 = vst [vmem:[#allocation44_spill] sm:$0xff] %v5020_v52  ;;  %v1943_v51 = vmax.f32 %v1935_v2, %v1939_v55  ;;  %v1944_v27 = vmax.f32 %v1936_v33, %v1940_v12  ;;  %v1884_v36 = vpop.permute.xlu1 %1883 }
 0x7ca   : > { %v1891_v49 = vsel %vm628_vm4, %v1882_v44, %v1884_v36  ;;  %6009 = vst [vmem:[#allocation82_spill] sm:$0xff] %v5064_v16 }
 0x7cb   : > { %6001 = vst [vmem:[#allocation63_spill] sm:$0xff] %v5018_v48  ;;  %v1886_v6 = vpop.permute.xlu0 %1885  ;;  %2021 = vmatprep.subr.mxu0 %v5018_v48  ;;  %v5028_v1 = vmax.f32 %v1867_v34, %v1943_v51  ;;  %v1925_v29 = vmul.f32 %v1891_v49, %v4389_v24  ;;  %v5034_v8 = vmax.f32 %v1868_v45, %v1944_v27  ;;  %v5069_v51 = vmax.f32 %v4888_v4, 0.0  ;;  %v6016_v49 = vld [vmem:[#allocation79_spill] sm:$0xff] }
 0x7cc   : > { %v1890_v31 = vsel %vm628_vm4, %v1884_v36, %v1886_v6  ;;  %2022 = vmatpush1.msra.mxu0 %v5020_v52  ;;  %v1923_v45 = vadd.f32 %v1919_v53, %v4949_v43  ;;  %v5076_v27 = vmax.f32 %v4900_v20, 0.0  ;;  %v5081_v36 = vmax.f32 %v4894_v46, 0.0  ;;  %v6013_v53 = vld [vmem:[#allocation76_spill] sm:$0xff] }
 0x7cd   : > { %6003 = vst [vmem:[#allocation18_spill] sm:$0xff] %v5028_v1  ;;  %6004 = vst [vmem:[#allocation65_spill] sm:$0xff] %v5034_v8  ;;  %v1926_v23 = vmul.f32 %v1890_v31, %v4392_v58  ;;  %v1929_v30 = vadd.f32 %v1925_v29, %v1921_v38  ;;  %2092 = vmatprep.subr.mxu1 %v5034_v8  ;;  %v1888_v47 = vpop.permute.xlu1 %1887  ;;  %v6015_v38 = vld [vmem:[#allocation69_spill] sm:$0xff]  ;;  %v6018_v29 = vld [vmem:[#allocation54_spill] sm:$0xff] }
 0x7ce   : > { %v1889_v34 = vsel %vm628_vm4, %v1886_v6, %v1888_v47  ;;  %v1892_v9 = vsel %vm628_vm4, %v1888_v47, %v1882_v44  ;;  %2093 = vmatpush1.msra.mxu1 %v5028_v1  ;;  %6010 = vst [vmem:[#allocation83_spill] sm:$0xff] %v5069_v51  ;;  %6011 = vst [vmem:[#allocation84_spill] sm:$0xff] %v5076_v27  ;;  %v6017_v6 = vld [vmem:[#allocation68_spill] sm:$0xff] }
 0x7cf   : > { %v1930_v15 = vadd.f32 %v1926_v23, %v1922_v3  ;;  %v1927_v18 = vmul.f32 %v1889_v34, %v4401_v25  ;;  %v1928_v2 = vmul.f32 %v1892_v9, %v4404_v59  ;;  %v5052_v55 = vmul.f32 %v1929_v30, %v4412_v57  ;;  %6012 = vst [vmem:[#allocation85_spill] sm:$0xff] %v5081_v36  ;;  %v6019_v31 = vld [vmem:[#allocation80_spill] sm:$0xff]  ;;  %v6020_v3 = vld [vmem:[#allocation55_spill] sm:$0xff]  ;;  %v6021_v23 = vld [vmem:[#allocation81_spill] sm:$0xff] }
 0x7d0   : > { %v6022_v30 = vld [vmem:[#allocation58_spill] sm:$0xff]  ;;  %v6023_v47 = vld [vmem:[#allocation56_spill] sm:$0xff]  ;;  %v6025_v34 = vld [vmem:[#allocation57_spill] sm:$0xff] }
 0x7d1   : > { %v5049_v33 = vmul.f32 %v1930_v15, %v4409_v10  ;;  %6006 = vst [vmem:[#allocation64_spill] sm:$0xff] %v5052_v55  ;;  %v1931_v12 = vadd.f32 %v1927_v18, %v1923_v45  ;;  %v1932_v26 = vadd.f32 %v1928_v2, %v1924_v62  ;;  %v6024_v15 = vld [vmem:[#allocation59_spill] sm:$0xff]  ;;  %v6026_v9 = vld [vmem:[#allocation24_spill] sm:$0xff]  ;;  %v6028_v62 = vld [vmem:[#allocation21_spill] sm:$0xff] }
 0x7d2   : > { %v6027_v45 = vld [vmem:[#allocation60_spill] sm:$0xff]  ;;  %v1961_v18 = vld [vmem:[#allocation8 + $0x20] sm:$0xff] }
 0x7d3   : > { %6005 = vst [vmem:[#allocation17_spill] sm:$0xff] %v5049_v33  ;;  %2023 = vmatprep.subr.mxu0 %v5049_v33  ;;  %v5056_v44 = vmul.f32 %v1931_v12, %v4415_v39  ;;  %v5060_v43 = vmul.f32 %v1932_v26, %v4426_v14  ;;  %v6029_v2 = vld [vmem:[#allocation61_spill] sm:$0xff]  ;;  %v6030_v12 = vld [vmem:[#allocation46_spill] sm:$0xff]  ;;  %v6031_v26 = vld [vmem:[#allocation23_spill] sm:$0xff] }
 0x7d4   : > { %2024 = vmatpush1.msra.mxu0 %v5052_v55 }
 0x7d5   : > { %6007 = vst [vmem:[#allocation20_spill] sm:$0xff] %v5056_v44  ;;  %6008 = vst [vmem:[#allocation19_spill] sm:$0xff] %v5060_v43  ;;  %2025 = vmatprep.subr.mxu0 %v4892_v41  ;;  %2094 = vmatprep.subr.mxu1 %v5060_v43 }
 0x7d6   : > { %2026 = vmatpush1.msra.mxu0 %v4888_v4  ;;  %2095 = vmatpush1.msra.mxu1 %v5056_v44 }
 0x7d7   : > { %2027 = vmatprep.subr.mxu0 %v5064_v16  ;;  %2096 = vmatprep.subr.mxu1 %v4900_v20  ;;  %v6057_v20 = vld [vmem:[#allocation47_spill] sm:$0xff] }
 0x7d8   : > { %2028 = vmatpush1.msra.mxu0 %v5069_v51  ;;  %2097 = vmatpush1.msra.mxu1 %v4894_v46 }
 0x7d9   : > { %2029 = vmatprep.subr.mxu0 %v4778_v42  ;;  %2098 = vmatprep.subr.mxu1 %v5076_v27 }
 0x7da   : > { %2030 = vmatpush1.msra.mxu0 %v4780_v28  ;;  %2099 = vmatpush1.msra.mxu1 %v5081_v36 }
 0x7db   : > { %2031 = vmatprep.subr.mxu0 %v4809_v19  ;;  %2100 = vmatprep.subr.mxu1 %v4794_v54 }
 0x7dc   : > { %2032 = vmatpush1.msra.mxu0 %v4812_v17  ;;  %2101 = vmatpush1.msra.mxu1 %v4788_v63 }
 0x7dd   : > { %2033 = vmatprep.subr.mxu0 %v4652_v56  ;;  %2102 = vmatprep.subr.mxu1 %v4820_v35 }
 0x7de   : > { %2034 = vmatpush1.msra.mxu0 %v4648_v0  ;;  %2103 = vmatpush1.msra.mxu1 %v6013_v53 }
 0x7df   : > { %2035 = vmatprep.subr.mxu0 %v6014_v13  ;;  %2104 = vmatprep.subr.mxu1 %v6015_v38  ;;  %v6042_v38 = vld [vmem:[#allocation27_spill] sm:$0xff] }
 0x7e0   : > { %2036 = vmatpush1.msra.mxu0 %v6016_v49  ;;  %2105 = vmatpush1.msra.mxu1 %v6017_v6 }
 0x7e1   : > { %2037 = vmatprep.subr.mxu0 %v6018_v29  ;;  %2106 = vmatprep.subr.mxu1 %v6019_v31  ;;  %v6032_v29 = vld [vmem:[#allocation41_spill] sm:$0xff]  ;;  %v6041_v31 = vld [vmem:[#allocation26_spill] sm:$0xff] }
 0x7e2   : > { %2038 = vmatpush1.msra.mxu0 %v6020_v3  ;;  %2107 = vmatpush1.msra.mxu1 %v6021_v23  ;;  %v6033_v3 = vld [vmem:[#allocation22_spill] sm:$0xff] }
 0x7e3   : > { %2039 = vmatprep.subr.mxu0 %v6022_v30  ;;  %2108 = vmatprep.subr.mxu1 %v6023_v47  ;;  %v6034_v30 = vld [vmem:[#allocation43_spill] sm:$0xff]  ;;  %v6035_v47 = vmov 0.0  }
 0x7e4   : > { %2040 = vmatpush1.msra.mxu0 %v6024_v15  ;;  %2109 = vmatpush1.msra.mxu1 %v6025_v34  ;;  %v6036_v15 = vld [vmem:[#allocation42_spill] sm:$0xff] }
 0x7e5   : > { %2041 = vmatprep.subr.mxu0 %v6026_v9  ;;  %2110 = vmatprep.subr.mxu1 %v6027_v45 }
 0x7e6   : > { %2042 = vmatpush1.msra.mxu0 %v6028_v62  ;;  %2111 = vmatpush1.msra.mxu1 %v6029_v2 }
 0x7e7   : > { %2043 = vmatprep.subr.mxu0 %v6030_v12  ;;  %2112 = vmatprep.subr.mxu1 %v6031_v26  ;;  %v2155_v12 = vld [vmem:[#allocation8 + $0x48] sm:$0xff] }
 0x7e8   : > { %2044 = vmatpush1.msra.mxu0 %v6032_v29  ;;  %2113 = vmatpush1.msra.mxu1 %v6033_v3 }
 0x7e9   : > { %3510 = vmatmul.mubr.msk.f32.vlgmr.msra.gmra.mxu0 %vm1505_vm7, %v1961_v18  ;;  %2114 = vmatprep.subr.mxu1 %v6034_v30 }
 0x7ea   : > { %2227 = vmatprep.mubr.f32.mxu0 %v6035_v47  ;;  %2115 = vmatpush1.msra.mxu1 %v6036_v15 }
 0x7eb   : > { %3511 = vmatmul.mubr.msk.f32.vlgmr.msra.gmra.mxu1 %vm1505_vm7, %v1961_v18 }
 0x7ec   : > { %2298 = vmatprep.mubr.f32.mxu1 %v6035_v47 }
 0x8a9   : > { %v2079_v34 = vpop.f32.mrf.mxu0 }
 0x8aa   : > { %v2156_v2 = vmax.f32 %v2079_v34, 0.0 }
 0x8ab   : > { %v2081_v9 = vpop.f32.mrf.mxu0  ;;  %v2150_v62 = vpop.f32.mrf.mxu1 }
 0x8ac   : > { %v2157_v45 = vmax.f32 %v2081_v9, 0.0  ;;  %v2158_v26 = vmax.f32 %v2150_v62, 0.0 }
 0x8ad   : > { %v2152_v29 = vpop.f32.mrf.mxu1 }
 0x8ae   : > { %2193 = vmatprep.subr.mxu0 %v2157_v45  ;;  %v2159_v3 = vmax.f32 %v2152_v29, 0.0 }
 0x8af   : > { %2194 = vmatpush1.msra.mxu0 %v2156_v2 }
 0x8b0   : > { %3512 = vmatmul.mubr.msk.f32.vlgmr.msra.gmra.mxu0 %vm1150_vm6, %v2155_v12  ;;  %2264 = vmatprep.subr.mxu1 %v2159_v3  ;;  %v6040_v3 = vld [vmem:[#allocation25_spill] sm:$0xff] }
 0x8b1   : > { %2581 = vmatprep.mubr.f32.mxu0 %v6035_v47  ;;  %2265 = vmatpush1.msra.mxu1 %v2158_v26 }
 0x8b2   : > { %3513 = vmatmul.mubr.msk.f32.vlgmr.msra.gmra.mxu1 %vm1150_vm6, %v2155_v12 }
 0x8b3   : > { %2652 = vmatprep.mubr.f32.mxu1 %v6035_v47 }
 0x970   : > { %v5124_v18 = vpop.f32.mrf.mxu0 }
 0x971   : > { %6037 = vst [vmem:[#allocation54_spill] sm:$0xff] %v5124_v18  ;;  %2317 = vrot.lane.b32.xlu0 %v5124_v18, %s3796_s26 }
 0x972   : > { %v5128_v30 = vpop.f32.mrf.mxu0  ;;  %v5130_v15 = vpop.f32.mrf.mxu1 }
 0x973   : > { %6038 = vst [vmem:[#allocation55_spill] sm:$0xff] %v5130_v15  ;;  %2319 = vrot.lane.b32.xlu1 %v5128_v30, %s3796_s26 }
 0x974   : > { %v5136_v34 = vpop.f32.mrf.mxu1 }
 0x975   : > { %2321 = vrot.lane.b32.xlu0 %v5130_v15, %s3796_s26  ;;  %6039 = vst [vmem:[#allocation58_spill] sm:$0xff] %v5136_v34 }
 0x977   : > { %2323 = vrot.lane.b32.xlu1 %v5136_v34, %s3796_s26 }
 0x979   : > { %2329 = vrot.lane.b32.xlu0 %v5124_v18, %s3797_s7 }
 0x97b   : > { %2331 = vrot.lane.b32.xlu1 %v5128_v30, %s3797_s7 }
 0x97d   : > { %2333 = vrot.lane.b32.xlu0 %v5130_v15, %s3797_s7 }
 0x97f   : > { %2335 = vrot.lane.b32.xlu1 %v5136_v34, %s3797_s7 }
 0x9e3   : > { %v2318_v9 = vpop.permute.xlu0 %2317 }
 0x9e5   : > { %v2320_v45 = vpop.permute.xlu1 %2319 }
 0x9e6   : > { %v2327_v2 = vsel %vm473_vm1, %v2318_v9, %v2320_v45 }
 0x9e7   : > { %v2322_v62 = vpop.permute.xlu0 %2321  ;;  %v2342_v6 = vmul.f32 %v2327_v2, %v6041_v31  ;;  %v6044_v31 = vld [vmem:[#allocation29_spill] sm:$0xff] }
 0x9e8   : > { %v2326_v29 = vsel %vm473_vm1, %v2320_v45, %v2322_v62 }
 0x9e9   : > { %v2324_v12 = vpop.permute.xlu1 %2323  ;;  %v2343_v13 = vmul.f32 %v2326_v29, %v6042_v38  ;;  %v2346_v45 = vadd.f32 %v2342_v6, %v5128_v30  ;;  %v6045_v38 = vld [vmem:[#allocation33_spill] sm:$0xff] }
 0x9ea   : > { %v2328_v26 = vsel %vm473_vm1, %v2324_v12, %v2318_v9  ;;  %v2325_v53 = vsel %vm473_vm1, %v2322_v62, %v2324_v12  ;;  %v6043_v9 = vld [vmem:[#allocation31_spill] sm:$0xff]  ;;  %v6046_v62 = vld [vmem:[#allocation32_spill] sm:$0xff] }
 0x9eb   : > { %v2341_v47 = vmul.f32 %v2328_v26, %v6040_v3  ;;  %v2330_v23 = vpop.permute.xlu0 %2329  ;;  %v2344_v17 = vmul.f32 %v2325_v53, %v6044_v31  ;;  %v2347_v28 = vadd.f32 %v2343_v13, %v5130_v15  ;;  %v6048_v31 = vld [vmem:[#allocation35_spill] sm:$0xff]  ;;  %v6051_v13 = vld [vmem:[#allocation37_spill] sm:$0xff] }
 0x9ed   : > { %v2332_v49 = vpop.permute.xlu1 %2331  ;;  %v2345_v35 = vadd.f32 %v2341_v47, %v5124_v18 }
 0x9ee   : > { %v2339_v0 = vsel %vm486_vm2, %v2330_v23, %v2332_v49 }
 0x9ef   : > { %v2349_v56 = vmul.f32 %v2339_v0, %v6043_v9  ;;  %v2334_v63 = vpop.permute.xlu0 %2333  ;;  %v2361_v19 = vadd.f32 %v2339_v0, %v6045_v38  ;;  %v6047_v9 = vld [vmem:[#allocation30_spill] sm:$0xff]  ;;  %v6050_v0 = vld [vmem:[#allocation28_spill] sm:$0xff] }
 0x9f0   : > { %v2338_v3 = vsel %vm486_vm2, %v2332_v49, %v2334_v63  ;;  %v2357_v27 = vadd.f32 %v2328_v26, %v6047_v9  ;;  %v6053_v26 = vld [vmem:[#allocation34_spill] sm:$0xff] }
 0x9f1   : > { %v5167_v54 = vadd.f32 %v2349_v56, %v2345_v35  ;;  %v2350_v12 = vmul.f32 %v2338_v3, %v6046_v62  ;;  %v2336_v36 = vpop.permute.xlu1 %2335  ;;  %v2362_v56 = vadd.f32 %v2338_v3, %v6048_v31  ;;  %v6049_v35 = vld [vmem:[#allocation36_spill] sm:$0xff]  ;;  %v2358_v62 = vadd.f32 %v2327_v2, %v6050_v0  ;;  %v6055_v2 = vld [vmem:[#allocation39_spill] sm:$0xff] }
 0x9f2   : > { %v2337_v47 = vsel %vm486_vm2, %v2334_v63, %v2336_v36  ;;  %v2340_v6 = vsel %vm486_vm2, %v2336_v36, %v2330_v23  ;;  %v2348_v63 = vadd.f32 %v2344_v17, %v5136_v34  ;;  %v2365_v46 = vmax.f32 %v2357_v27, %v2361_v19  ;;  %v6052_v36 = vld [vmem:[#allocation38_spill] sm:$0xff] }
 0x9f3   : > { %v5177_v49 = vadd.f32 %v2350_v12, %v2346_v45  ;;  %v2351_v42 = vmul.f32 %v2337_v47, %v6049_v35  ;;  %2373 = vrot.lane.b32.xlu0 %v5167_v54, %s3798_s14  ;;  %v2352_v38 = vmul.f32 %v2340_v6, %v6051_v13  ;;  %v2363_v23 = vadd.f32 %v2337_v47, %v6052_v36  ;;  %v6054_v35 = vld [vmem:[#allocation40_spill] sm:$0xff]  ;;  %v6056_v13 = vld [vmem:[#allocation49_spill] sm:$0xff] }
 0x9f4   : > { %v2359_v3 = vadd.f32 %v2326_v29, %v6053_v26  ;;  %v2366_v45 = vmax.f32 %v2358_v62, %v2362_v56  ;;  %v2364_v31 = vadd.f32 %v2340_v6, %v6054_v35  ;;  %v2360_v17 = vadd.f32 %v2325_v53, %v6055_v2 }
 0x9f5   : > { %v5186_v51 = vadd.f32 %v2351_v42, %v2347_v28  ;;  %2375 = vrot.lane.b32.xlu1 %v5177_v49, %s3798_s14  ;;  %v5192_v12 = vadd.f32 %v2352_v38, %v2348_v63  ;;  %v2369_v42 = vmax.f32 %v5124_v18, %v2365_v46 }
 0x9f6   : > { %v2367_v28 = vmax.f32 %v2359_v3, %v2363_v23  ;;  %v2370_v19 = vmax.f32 %v5128_v30, %v2366_v45  ;;  %v2368_v27 = vmax.f32 %v2360_v17, %v2364_v31 }
 0x9f7   : > { %2377 = vrot.lane.b32.xlu0 %v5186_v51, %s3798_s14 }
 0x9f8   : > { %v2371_v38 = vmax.f32 %v5130_v15, %v2367_v28  ;;  %v2372_v29 = vmax.f32 %v5136_v34, %v2368_v27 }
 0x9f9   : > { %2379 = vrot.lane.b32.xlu1 %v5192_v12, %s3798_s14 }
 0x9fb   : > { %2397 = vrot.lane.b32.xlu0 %v2369_v42, %s3798_s14 }
 0x9fd   : > { %2399 = vrot.lane.b32.xlu1 %v2370_v19, %s3798_s14 }
 0x9ff   : > { %2401 = vrot.lane.b32.xlu0 %v2371_v38, %s3798_s14 }
 0xa01   : > { %2403 = vrot.lane.b32.xlu1 %v2372_v29, %s3798_s14 }
 0xa03   : > { %2409 = vrot.lane.b32.xlu0 %v2369_v42, %s3799_s25 }
 0xa05   : > { %2411 = vrot.lane.b32.xlu1 %v2370_v19, %s3799_s25 }
 0xa07   : > { %2413 = vrot.lane.b32.xlu0 %v2371_v38, %s3799_s25 }
 0xa09   : > { %2415 = vrot.lane.b32.xlu1 %v2372_v29, %s3799_s25 }
 0xa0b   : > { %2385 = vrot.lane.b32.xlu0 %v5167_v54, %s3799_s25 }
 0xa0d   : > { %2387 = vrot.lane.b32.xlu1 %v5177_v49, %s3799_s25 }
 0xa0f   : > { %2389 = vrot.lane.b32.xlu0 %v5186_v51, %s3799_s25 }
 0xa11   : > { %2391 = vrot.lane.b32.xlu1 %v5192_v12, %s3799_s25 }
 0xa65   : > { %v2374_v46 = vpop.permute.xlu0 %2373 }
 0xa67   : > { %v2376_v53 = vpop.permute.xlu1 %2375 }
 0xa68   : > { %v2383_v26 = vsel %vm615_vm3, %v2374_v46, %v2376_v53 }
 0xa69   : > { %v2378_v31 = vpop.permute.xlu0 %2377 }
 0xa6a   : > { %v2382_v9 = vsel %vm615_vm3, %v2376_v53, %v2378_v31 }
 0xa6b   : > { %v2380_v62 = vpop.permute.xlu1 %2379 }
 0xa6d   : > { %v2398_v47 = vpop.permute.xlu0 %2397 }
 0xa6f   : > { %v2400_v6 = vpop.permute.xlu1 %2399 }
 0xa70   : > { %v2407_v17 = vsel %vm615_vm3, %v2398_v47, %v2400_v6 }
 0xa71   : > { %v2402_v56 = vpop.permute.xlu0 %2401 }
 0xa72   : > { %v2406_v27 = vsel %vm615_vm3, %v2400_v6, %v2402_v56  ;;  %v2384_v6 = vsel %vm615_vm3, %v2380_v62, %v2374_v46 }
 0xa73   : > { %v2404_v63 = vpop.permute.xlu1 %2403  ;;  %v2439_v44 = vadd.f32 %v2406_v27, %v4364_v61  ;;  %v2421_v27 = vmul.f32 %v2384_v6, %v4347_v32 }
 0xa74   : > { %v2408_v3 = vsel %vm615_vm3, %v2404_v63, %v2398_v47  ;;  %v2405_v36 = vsel %vm615_vm3, %v2402_v56, %v2404_v63 }
 0xa75   : > { %v2410_v23 = vpop.permute.xlu0 %2409  ;;  %v2437_v0 = vadd.f32 %v2408_v3, %v6056_v13  ;;  %v2440_v3 = vadd.f32 %v2405_v36, %v4370_v50 }
 0xa77   : > { %v2412_v45 = vpop.permute.xlu1 %2411 }
 0xa78   : > { %v2419_v28 = vsel %vm628_vm4, %v2410_v23, %v2412_v45 }
 0xa79   : > { %v2441_v2 = vadd.f32 %v2419_v28, %v5999_v40  ;;  %v2414_v35 = vpop.permute.xlu0 %2413  ;;  %v2438_v28 = vadd.f32 %v2407_v17, %v6057_v20 }
 0xa7a   : > { %v2418_v47 = vsel %vm628_vm4, %v2412_v45, %v2414_v35 }
 0xa7b   : > { %v2442_v40 = vadd.f32 %v2418_v47, %v4377_v7  ;;  %v2416_v16 = vpop.permute.xlu1 %2415  ;;  %v2445_v4 = vmax.f32 %v2437_v0, %v2441_v2  ;;  %v2381_v47 = vsel %vm615_vm3, %v2378_v31, %v2380_v62  ;;  %v2422_v0 = vmul.f32 %v2383_v26, %v4341_v5 }
 0xa7c   : > { %v2417_v56 = vsel %vm628_vm4, %v2414_v35, %v2416_v16  ;;  %v2420_v63 = vsel %vm628_vm4, %v2416_v16, %v2410_v23  ;;  %v2423_v16 = vmul.f32 %v2382_v9, %v4353_v11  ;;  %v2424_v23 = vmul.f32 %v2381_v47, %v4356_v60 }
 0xa7d   : > { %v2446_v53 = vmax.f32 %v2438_v28, %v2442_v40  ;;  %v2443_v45 = vadd.f32 %v2417_v56, %v4380_v21  ;;  %v2444_v46 = vadd.f32 %v2420_v63, %v4383_v22  ;;  %v2386_v17 = vpop.permute.xlu0 %2385  ;;  %v5257_v40 = vmax.f32 %v2369_v42, %v2445_v4 }
 0xa7e   : > { %v2425_v26 = vadd.f32 %v2421_v27, %v5167_v54  ;;  %v2426_v9 = vadd.f32 %v2422_v0, %v5177_v49  ;;  %v5808_v47 = vmax.f32 %v5124_v18, 0.0  ;;  %v5807_v27 = vmax.f32 %v5136_v34, 0.0 }
 0xa7f   : > { %v2447_v2 = vmax.f32 %v2439_v44, %v2443_v45  ;;  %v2448_v35 = vmax.f32 %v2440_v3, %v2444_v46  ;;  %v2388_v61 = vpop.permute.xlu1 %2387  ;;  %v5254_v7 = vmax.f32 %v2370_v19, %v2446_v53  ;;  %v5806_v0 = vmax.f32 %v5130_v15, 0.0 }
 0xa80   : > { %v2395_v36 = vsel %vm628_vm4, %v2386_v17, %v2388_v61 }
 0xa81   : > { %v5262_v28 = vmax.f32 %v2371_v38, %v2447_v2  ;;  %v2429_v31 = vmul.f32 %v2395_v36, %v4389_v24  ;;  %v2390_v62 = vpop.permute.xlu0 %2389  ;;  %2525 = vmatprep.subr.mxu0 %v5254_v7  ;;  %v5266_v44 = vmax.f32 %v2372_v29, %v2448_v35  ;;  %v2427_v38 = vadd.f32 %v2423_v16, %v5186_v51  ;;  %v6059_v2 = vld [vmem:[#allocation53_spill] sm:$0xff]  ;;  %v6060_v35 = vld [vmem:[#allocation20_spill] sm:$0xff]  ;;  %v6061_v16 = vld [vmem:[#allocation82_spill] sm:$0xff] }
 0xa82   : > { %v2394_v4 = vsel %vm628_vm4, %v2388_v61, %v2390_v62  ;;  %2526 = vmatpush1.msra.mxu0 %v5257_v40  ;;  %v2428_v61 = vadd.f32 %v2424_v23, %v5192_v12  ;;  %v6062_v36 = vld [vmem:[#allocation45_spill] sm:$0xff]  ;;  %v6063_v23 = vld [vmem:[#allocation83_spill] sm:$0xff] }
 0xa83   : > { %v2430_v42 = vmul.f32 %v2394_v4, %v4392_v58  ;;  %2596 = vmatprep.subr.mxu1 %v5266_v44  ;;  %v2392_v19 = vpop.permute.xlu1 %2391  ;;  %v2433_v6 = vadd.f32 %v2429_v31, %v2425_v26  ;;  %v6064_v31 = vld [vmem:[#allocation62_spill] sm:$0xff]  ;;  %v6066_v26 = vld [vmem:[#allocation84_spill] sm:$0xff]  ;;  %v6067_v4 = vld [vmem:[#allocation71_spill] sm:$0xff] }
 0xa84   : > { %v2393_v29 = vsel %vm628_vm4, %v2390_v62, %v2392_v19  ;;  %v2396_v54 = vsel %vm628_vm4, %v2392_v19, %v2386_v17  ;;  %2597 = vmatpush1.msra.mxu1 %v5262_v28  ;;  %v5809_v17 = vmax.f32 %v5128_v30, 0.0  ;;  %v6065_v62 = vld [vmem:[#allocation70_spill] sm:$0xff]  ;;  %v6070_v19 = vld [vmem:[#allocation73_spill] sm:$0xff] }
 0xa85   : > { %v2434_v56 = vadd.f32 %v2430_v42, %v2426_v9  ;;  %v2431_v49 = vmul.f32 %v2393_v29, %v4401_v25  ;;  %v2432_v63 = vmul.f32 %v2396_v54, %v4404_v59  ;;  %v5288_v45 = vmul.f32 %v2433_v6, %v4412_v57  ;;  %v6068_v9 = vld [vmem:[#allocation85_spill] sm:$0xff]  ;;  %v6069_v42 = vld [vmem:[#allocation74_spill] sm:$0xff]  ;;  %v6072_v6 = vld [vmem:[#allocation72_spill] sm:$0xff] }
 0xa86   : > { %v6073_v29 = vld [vmem:[#allocation67_spill] sm:$0xff]  ;;  %v6074_v54 = vld [vmem:[#allocation77_spill] sm:$0xff] }
 0xa87   : > { %v2435_v3 = vadd.f32 %v2431_v49, %v2427_v38  ;;  %v2436_v53 = vadd.f32 %v2432_v63, %v2428_v61  ;;  %v5285_v51 = vmul.f32 %v2434_v56, %v4409_v10  ;;  %v6071_v38 = vld [vmem:[#allocation75_spill] sm:$0xff]  ;;  %v6075_v61 = vld [vmem:[#allocation66_spill] sm:$0xff]  ;;  %v6076_v56 = vld [vmem:[#allocation76_spill] sm:$0xff] }
 0xa88   : > { %v2465_v49 = vld [vmem:[#allocation8 + $0x28] sm:$0xff] }
 0xa89   : > { %v5291_v46 = vmul.f32 %v2435_v3, %v4415_v39  ;;  %2527 = vmatprep.subr.mxu0 %v5285_v51  ;;  %v5295_v12 = vmul.f32 %v2436_v53, %v4426_v14  ;;  %v6077_v63 = vld [vmem:[#allocation78_spill] sm:$0xff]  ;;  %v6078_v3 = vld [vmem:[#allocation69_spill] sm:$0xff]  ;;  %v6079_v53 = vld [vmem:[#allocation79_spill] sm:$0xff] }
 0xa8a   : > { %2528 = vmatpush1.msra.mxu0 %v5288_v45 }
 0xa8b   : > { %6058 = vst [vmem:[#allocation56_spill] sm:$0xff] %v5291_v46  ;;  %2529 = vmatprep.subr.mxu0 %v5128_v30  ;;  %2598 = vmatprep.subr.mxu1 %v5295_v12 }
 0xa8c   : > { %2530 = vmatpush1.msra.mxu0 %v5124_v18  ;;  %2599 = vmatpush1.msra.mxu1 %v5291_v46 }
 0xa8d   : > { %2531 = vmatprep.subr.mxu0 %v5809_v17  ;;  %2600 = vmatprep.subr.mxu1 %v5136_v34 }
 0xa8e   : > { %2532 = vmatpush1.msra.mxu0 %v5808_v47  ;;  %2601 = vmatpush1.msra.mxu1 %v5130_v15 }
 0xa8f   : > { %2533 = vmatprep.subr.mxu0 %v5018_v48  ;;  %2602 = vmatprep.subr.mxu1 %v5807_v27 }
 0xa90   : > { %2534 = vmatpush1.msra.mxu0 %v5020_v52  ;;  %2603 = vmatpush1.msra.mxu1 %v5806_v0 }
 0xa91   : > { %2535 = vmatprep.subr.mxu0 %v5049_v33  ;;  %2604 = vmatprep.subr.mxu1 %v5034_v8 }
 0xa92   : > { %2536 = vmatpush1.msra.mxu0 %v5052_v55  ;;  %2605 = vmatpush1.msra.mxu1 %v5028_v1 }
 0xa93   : > { %2537 = vmatprep.subr.mxu0 %v4892_v41  ;;  %2606 = vmatprep.subr.mxu1 %v5060_v43 }
 0xa94   : > { %2538 = vmatpush1.msra.mxu0 %v6059_v2  ;;  %2607 = vmatpush1.msra.mxu1 %v6060_v35 }
 0xa95   : > { %2539 = vmatprep.subr.mxu0 %v6061_v16  ;;  %2608 = vmatprep.subr.mxu1 %v6062_v36 }
 0xa96   : > { %2540 = vmatpush1.msra.mxu0 %v6063_v23  ;;  %2609 = vmatpush1.msra.mxu1 %v6064_v31 }
 0xa97   : > { %2541 = vmatprep.subr.mxu0 %v6065_v62  ;;  %2610 = vmatprep.subr.mxu1 %v6066_v26  ;;  %v6080_v62 = vld [vmem:[#allocation68_spill] sm:$0xff] }
 0xa98   : > { %2542 = vmatpush1.msra.mxu0 %v6067_v4  ;;  %2611 = vmatpush1.msra.mxu1 %v6068_v9  ;;  %v6081_v4 = vld [vmem:[#allocation80_spill] sm:$0xff] }
 0xa99   : > { %2543 = vmatprep.subr.mxu0 %v6069_v42  ;;  %2612 = vmatprep.subr.mxu1 %v6070_v19  ;;  %v6082_v42 = vld [vmem:[#allocation81_spill] sm:$0xff]  ;;  %v6083_v19 = vmov 0.0  }
 0xa9a   : > { %2544 = vmatpush1.msra.mxu0 %v6071_v38  ;;  %2613 = vmatpush1.msra.mxu1 %v6072_v6 }
 0xa9b   : > { %2545 = vmatprep.subr.mxu0 %v6073_v29  ;;  %2614 = vmatprep.subr.mxu1 %v6074_v54 }
 0xa9c   : > { %2546 = vmatpush1.msra.mxu0 %v6075_v61  ;;  %2615 = vmatpush1.msra.mxu1 %v6076_v56 }
 0xa9d   : > { %2547 = vmatprep.subr.mxu0 %v6077_v63  ;;  %2616 = vmatprep.subr.mxu1 %v6078_v3  ;;  %v2659_v3 = vld [vmem:[#allocation8 + $0x50] sm:$0xff] }
 0xa9e   : > { %2548 = vmatpush1.msra.mxu0 %v6079_v53  ;;  %2617 = vmatpush1.msra.mxu1 %v6080_v62  ;;  %v5358_v62 = vstv %s3317_s10 }
 0xa9f   : > { %3514 = vmatmul.mubr.msk.f32.vlgmr.msra.gmra.mxu0 %vm1505_vm7, %v2465_v49  ;;  %2618 = vmatprep.subr.mxu1 %v6081_v4  ;;  %6085 = vst [vmem:[#allocation57_spill] sm:$0xff] %v5358_v62  ;;  %v3326_v0 = vmul.f32 %v5358_v62, %v5136_v34  ;;  %v6104_v34 = vld [vmem:[#allocation48_spill] sm:$0xff] }
 0xaa0   : > { %2619 = vmatpush1.msra.mxu1 %v6082_v42  ;;  %2731 = vmatprep.mubr.f32.mxu0 %v6083_v19 }
 0xaa1   : > { %3515 = vmatmul.mubr.msk.f32.vlgmr.msra.gmra.mxu1 %vm1505_vm7, %v2465_v49  ;;  %v5356_v49 = vstv %s3522_s5 }
 0xaa2   : > { %2802 = vmatprep.mubr.f32.mxu1 %v6083_v19  ;;  %6084 = vst [vmem:[#allocation59_spill] sm:$0xff] %v5356_v49 }
 0xb5f   : > { %v2583_v38 = vpop.f32.mrf.mxu0 }
 0xb60   : > { %v2660_v61 = vmax.f32 %v2583_v38, 0.0  ;;  %v3323_v38 = vmul.f32 %v5358_v62, %v5124_v18 }
 0xb61   : > { %v2585_v6 = vpop.f32.mrf.mxu0  ;;  %v2654_v29 = vpop.f32.mrf.mxu1 }
 0xb62   : > { %v2661_v54 = vmax.f32 %v2585_v6, 0.0  ;;  %v2662_v56 = vmax.f32 %v2654_v29, 0.0 }
 0xb63   : > { %v2656_v63 = vpop.f32.mrf.mxu1 }
 0xb64   : > { %v2663_v53 = vmax.f32 %v2656_v63, 0.0  ;;  %2697 = vmatprep.subr.mxu0 %v2661_v54  ;;  %v3324_v54 = vmul.f32 %v5358_v62, %v5128_v30 }
 0xb65   : > { %2698 = vmatpush1.msra.mxu0 %v2660_v61  ;;  %v3325_v61 = vmul.f32 %v5358_v62, %v5130_v15 }
 0xb66   : > { %3516 = vmatmul.mubr.msk.f32.vlgmr.msra.gmra.mxu0 %vm1150_vm6, %v2659_v3  ;;  %2768 = vmatprep.subr.mxu1 %v2663_v53 }
 0xb67   : > { %2769 = vmatpush1.msra.mxu1 %v2662_v56  ;;  %3085 = vmatprep.mubr.f32.mxu0 %v6083_v19 }
 0xb68   : > { %3517 = vmatmul.mubr.msk.f32.vlgmr.msra.gmra.mxu1 %vm1150_vm6, %v2659_v3 }
 0xb69   : > { %3156 = vmatprep.mubr.f32.mxu1 %v6083_v19  ;;  %v6088_v19 = vld [vmem:[#allocation27_spill] sm:$0xff] }
 0xc26   : > { %v5360_v4 = vpop.f32.mrf.mxu0 }
 0xc27   : > { %2821 = vrot.lane.b32.xlu0 %v5360_v4, %s3796_s26  ;;  %v3337_v42 = vmul.f32 %v5356_v49, %v5360_v4 }
 0xc28   : > { %v5368_v6 = vpop.f32.mrf.mxu0  ;;  %v5370_v29 = vpop.f32.mrf.mxu1 }
 0xc29   : > { %2823 = vrot.lane.b32.xlu1 %v5368_v6, %s3796_s26  ;;  %v3338_v56 = vmul.f32 %v5356_v49, %v5368_v6  ;;  %v3339_v63 = vmul.f32 %v5356_v49, %v5370_v29  ;;  %v3341_v53 = vadd.f32 %v3337_v42, %v3323_v38 }
 0xc2a   : > { %v5382_v3 = vpop.f32.mrf.mxu1 }
 0xc2b   : > { %2825 = vrot.lane.b32.xlu0 %v5370_v29, %s3796_s26  ;;  %v3340_v27 = vmul.f32 %v5356_v49, %v5382_v3  ;;  %v3342_v47 = vadd.f32 %v3338_v56, %v3324_v54  ;;  %v3343_v17 = vadd.f32 %v3339_v63, %v3325_v61  ;;  %3357 = vst [vmem:[%s5391_s13] sm:$0xff] %v3341_v53  ;;  %v6086_v56 = vld [vmem:[#allocation25_spill] sm:$0xff] }
 0xc2d   : > { %2827 = vrot.lane.b32.xlu1 %v5382_v3, %s3796_s26  ;;  %v3344_v42 = vadd.f32 %v3340_v27, %v3326_v0  ;;  %3358 = vst [vmem:[%s5391_s13 + $0x8] sm:$0xff] %v3342_v47  ;;  %3359 = vst [vmem:[%s5391_s13 + $0x10] sm:$0xff] %v3343_v17 }
 0xc2f   : > { %2833 = vrot.lane.b32.xlu0 %v5360_v4, %s3797_s7  ;;  %3360 = vst [vmem:[%s5391_s13 + $0x18] sm:$0xff] %v3344_v42  ;;  %v6087_v42 = vld [vmem:[#allocation26_spill] sm:$0xff] }
 0xc31   : > { %2835 = vrot.lane.b32.xlu1 %v5368_v6, %s3797_s7 }
 0xc33   : > { %2837 = vrot.lane.b32.xlu0 %v5370_v29, %s3797_s7 }
 0xc35   : > { %2839 = vrot.lane.b32.xlu1 %v5382_v3, %s3797_s7 }
 0xc99   : > { %v2822_v38 = vpop.permute.xlu0 %2821 }
 0xc9b   : > { %v2824_v54 = vpop.permute.xlu1 %2823 }
 0xc9c   : > { %v2831_v47 = vsel %vm473_vm1, %v2822_v38, %v2824_v54 }
 0xc9d   : > { %v2826_v61 = vpop.permute.xlu0 %2825  ;;  %v2846_v49 = vmul.f32 %v2831_v47, %v6087_v42  ;;  %v6090_v42 = vld [vmem:[#allocation29_spill] sm:$0xff] }
 0xc9e   : > { %v2830_v0 = vsel %vm473_vm1, %v2824_v54, %v2826_v61 }
 0xc9f   : > { %v2828_v17 = vpop.permute.xlu1 %2827  ;;  %v2847_v9 = vmul.f32 %v2830_v0, %v6088_v19  ;;  %v2850_v54 = vadd.f32 %v2846_v49, %v5368_v6  ;;  %v6091_v19 = vld [vmem:[#allocation33_spill] sm:$0xff] }
 0xca0   : > { %v2832_v27 = vsel %vm473_vm1, %v2828_v17, %v2822_v38  ;;  %v2829_v26 = vsel %vm473_vm1, %v2826_v61, %v2828_v17  ;;  %v6089_v38 = vld [vmem:[#allocation31_spill] sm:$0xff]  ;;  %v6092_v61 = vld [vmem:[#allocation32_spill] sm:$0xff] }
 0xca1   : > { %v2845_v63 = vmul.f32 %v2832_v27, %v6086_v56  ;;  %v2834_v53 = vpop.permute.xlu0 %2833  ;;  %v2848_v35 = vmul.f32 %v2829_v26, %v6090_v42  ;;  %v2851_v1 = vadd.f32 %v2847_v9, %v5370_v29  ;;  %v6094_v42 = vld [vmem:[#allocation35_spill] sm:$0xff]  ;;  %v6097_v9 = vld [vmem:[#allocation37_spill] sm:$0xff] }
 0xca3   : > { %v2836_v62 = vpop.permute.xlu1 %2835  ;;  %v2849_v23 = vadd.f32 %v2845_v63, %v5360_v4 }
 0xca4   : > { %v2843_v31 = vsel %vm486_vm2, %v2834_v53, %v2836_v62 }
 0xca5   : > { %v2853_v36 = vmul.f32 %v2843_v31, %v6089_v38  ;;  %v2838_v16 = vpop.permute.xlu0 %2837  ;;  %v2865_v43 = vadd.f32 %v2843_v31, %v6091_v19  ;;  %v6093_v38 = vld [vmem:[#allocation30_spill] sm:$0xff]  ;;  %v6096_v31 = vld [vmem:[#allocation28_spill] sm:$0xff] }
 0xca6   : > { %v2842_v56 = vsel %vm486_vm2, %v2836_v62, %v2838_v16  ;;  %v2861_v55 = vadd.f32 %v2832_v27, %v6093_v38  ;;  %v2862_v19 = vadd.f32 %v2831_v47, %v6096_v31  ;;  %v6100_v38 = vld [vmem:[#allocation40_spill] sm:$0xff]  ;;  %v6101_v47 = vld [vmem:[#allocation39_spill] sm:$0xff] }
 0xca7   : > { %v5426_v2 = vadd.f32 %v2853_v36, %v2849_v23  ;;  %v2854_v17 = vmul.f32 %v2842_v56, %v6092_v61  ;;  %v2840_v41 = vpop.permute.xlu1 %2839  ;;  %v2866_v36 = vadd.f32 %v2842_v56, %v6094_v42  ;;  %v6095_v23 = vld [vmem:[#allocation36_spill] sm:$0xff] }
 0xca8   : > { %v2841_v63 = vsel %vm486_vm2, %v2838_v16, %v2840_v41  ;;  %v2844_v49 = vsel %vm486_vm2, %v2840_v41, %v2834_v53  ;;  %v2852_v16 = vadd.f32 %v2848_v35, %v5382_v3  ;;  %v2869_v33 = vmax.f32 %v2861_v55, %v2865_v43  ;;  %v6098_v41 = vld [vmem:[#allocation38_spill] sm:$0xff] }
 0xca9   : > { %v5436_v62 = vadd.f32 %v2854_v17, %v2850_v54  ;;  %v2855_v8 = vmul.f32 %v2841_v63, %v6095_v23  ;;  %2877 = vrot.lane.b32.xlu0 %v5426_v2, %s3798_s14  ;;  %v2856_v61 = vmul.f32 %v2844_v49, %v6097_v9  ;;  %v2867_v27 = vadd.f32 %v2841_v63, %v6098_v41  ;;  %v6099_v53 = vld [vmem:[#allocation34_spill] sm:$0xff] }
 0xcaa   : > { %v2863_v54 = vadd.f32 %v2830_v0, %v6099_v53  ;;  %v2870_v56 = vmax.f32 %v2862_v19, %v2866_v36  ;;  %v2868_v42 = vadd.f32 %v2844_v49, %v6100_v38  ;;  %v2864_v35 = vadd.f32 %v2829_v26, %v6101_v47 }
 0xcab   : > { %v5445_v52 = vadd.f32 %v2855_v8, %v2851_v1  ;;  %2879 = vrot.lane.b32.xlu1 %v5436_v62, %s3798_s14  ;;  %v5451_v17 = vadd.f32 %v2856_v61, %v2852_v16  ;;  %v2873_v1 = vmax.f32 %v5360_v4, %v2869_v33 }
 0xcac   : > { %v2871_v8 = vmax.f32 %v2863_v54, %v2867_v27  ;;  %v2874_v55 = vmax.f32 %v5368_v6, %v2870_v56  ;;  %v2872_v43 = vmax.f32 %v2864_v35, %v2868_v42  ;;  %v6102_v56 = vld [vmem:[#allocation50_spill] sm:$0xff] }
 0xcad   : > { %2881 = vrot.lane.b32.xlu0 %v5445_v52, %s3798_s14 }
 0xcae   : > { %v2875_v0 = vmax.f32 %v5370_v29, %v2871_v8  ;;  %v2876_v63 = vmax.f32 %v5382_v3, %v2872_v43 }
 0xcaf   : > { %2883 = vrot.lane.b32.xlu1 %v5451_v17, %s3798_s14 }
 0xcb1   : > { %2901 = vrot.lane.b32.xlu0 %v2873_v1, %s3798_s14 }
 0xcb3   : > { %2903 = vrot.lane.b32.xlu1 %v2874_v55, %s3798_s14 }
 0xcb5   : > { %2905 = vrot.lane.b32.xlu0 %v2875_v0, %s3798_s14 }
 0xcb7   : > { %2907 = vrot.lane.b32.xlu1 %v2876_v63, %s3798_s14 }
 0xcb9   : > { %2913 = vrot.lane.b32.xlu0 %v2873_v1, %s3799_s25 }
 0xcbb   : > { %2915 = vrot.lane.b32.xlu1 %v2874_v55, %s3799_s25 }
 0xcbd   : > { %2917 = vrot.lane.b32.xlu0 %v2875_v0, %s3799_s25 }
 0xcbf   : > { %2919 = vrot.lane.b32.xlu1 %v2876_v63, %s3799_s25 }
 0xcc1   : > { %2889 = vrot.lane.b32.xlu0 %v5426_v2, %s3799_s25 }
 0xcc3   : > { %2891 = vrot.lane.b32.xlu1 %v5436_v62, %s3799_s25 }
 0xcc5   : > { %2893 = vrot.lane.b32.xlu0 %v5445_v52, %s3799_s25 }
 0xcc7   : > { %2895 = vrot.lane.b32.xlu1 %v5451_v17, %s3799_s25 }
 0xd1b   : > { %v2878_v33 = vpop.permute.xlu0 %2877 }
 0xd1d   : > { %v2880_v26 = vpop.permute.xlu1 %2879 }
 0xd1e   : > { %v2887_v47 = vsel %vm615_vm3, %v2878_v33, %v2880_v26 }
 0xd1f   : > { %v2882_v49 = vpop.permute.xlu0 %2881 }
 0xd21   : > { %v2884_v36 = vpop.permute.xlu1 %2883 }
 0xd23   : > { %v2902_v23 = vpop.permute.xlu0 %2901 }
 0xd25   : > { %v2904_v31 = vpop.permute.xlu1 %2903 }
 0xd26   : > { %v2911_v27 = vsel %vm615_vm3, %v2902_v23, %v2904_v31 }
 0xd27   : > { %v2906_v19 = vpop.permute.xlu0 %2905 }
 0xd28   : > { %v2910_v54 = vsel %vm615_vm3, %v2904_v31, %v2906_v19  ;;  %v2888_v31 = vsel %vm615_vm3, %v2884_v36, %v2878_v33 }
 0xd29   : > { %v2908_v9 = vpop.permute.xlu1 %2907  ;;  %v2943_v46 = vadd.f32 %v2910_v54, %v6104_v34  ;;  %v2925_v34 = vmul.f32 %v2888_v31, %v4347_v32  ;;  %v6117_v31 = vld [vmem:[#allocation64_spill] sm:$0xff] }
 0xd2a   : > { %v2912_v16 = vsel %vm615_vm3, %v2908_v9, %v2902_v23  ;;  %v2909_v35 = vsel %vm615_vm3, %v2906_v19, %v2908_v9  ;;  %v2886_v23 = vsel %vm615_vm3, %v2880_v26, %v2882_v49 }
 0xd2b   : > { %v2914_v61 = vpop.permute.xlu0 %2913  ;;  %v2941_v8 = vadd.f32 %v2912_v16, %v6056_v13  ;;  %v2944_v9 = vadd.f32 %v2909_v35, %v4370_v50 }
 0xd2d   : > { %v2916_v41 = vpop.permute.xlu1 %2915 }
 0xd2e   : > { %v2923_v53 = vsel %vm628_vm4, %v2914_v61, %v2916_v41 }
 0xd2f   : > { %v2945_v38 = vadd.f32 %v2923_v53, %v6102_v56  ;;  %v2918_v42 = vpop.permute.xlu0 %2917  ;;  %v2942_v53 = vadd.f32 %v2911_v27, %v6057_v20  ;;  %v6103_v56 = vld [vmem:[#allocation51_spill] sm:$0xff]  ;;  %v2926_v27 = vmul.f32 %v2887_v47, %v4341_v5  ;;  %v2929_v5 = vadd.f32 %v2925_v34, %v5426_v2  ;;  %v6127_v34 = vld [vmem:[#allocation84_spill] sm:$0xff] }
 0xd30   : > { %v2922_v43 = vsel %vm628_vm4, %v2916_v41, %v2918_v42  ;;  %v2885_v41 = vsel %vm615_vm3, %v2882_v49, %v2884_v36 }
 0xd31   : > { %v2946_v48 = vadd.f32 %v2922_v43, %v6103_v56  ;;  %v2920_v15 = vpop.permute.xlu1 %2919  ;;  %v2949_v18 = vmax.f32 %v2941_v8, %v2945_v38  ;;  %v6119_v56 = vld [vmem:[#allocation52_spill] sm:$0xff] }
 0xd32   : > { %v2921_v13 = vsel %vm628_vm4, %v2918_v42, %v2920_v15  ;;  %v2924_v19 = vsel %vm628_vm4, %v2920_v15, %v2914_v61  ;;  %v2927_v15 = vmul.f32 %v2886_v23, %v4353_v11  ;;  %v2930_v11 = vadd.f32 %v2926_v27, %v5436_v62  ;;  %v6115_v23 = vld [vmem:[#allocation17_spill] sm:$0xff] }
 0xd33   : > { %v2950_v26 = vmax.f32 %v2942_v53, %v2946_v48  ;;  %v2947_v16 = vadd.f32 %v2921_v13, %v4380_v21  ;;  %v2948_v33 = vadd.f32 %v2924_v19, %v4383_v22  ;;  %v2890_v20 = vpop.permute.xlu0 %2889  ;;  %v2953_v50 = vmax.f32 %v2873_v1, %v2949_v18  ;;  %v6118_v53 = vld [vmem:[#allocation18_spill] sm:$0xff]  ;;  %v6120_v13 = vld [vmem:[#allocation19_spill] sm:$0xff]  ;;  %v6121_v19 = vld [vmem:[#allocation53_spill] sm:$0xff] }
 0xd34   : > { %v2928_v22 = vmul.f32 %v2885_v41, %v4356_v60  ;;  %v2931_v60 = vadd.f32 %v2927_v15, %v5445_v52  ;;  %v6126_v41 = vld [vmem:[#allocation62_spill] sm:$0xff]  ;;  %v6128_v27 = vld [vmem:[#allocation85_spill] sm:$0xff] }
 0xd35   : > { %v2951_v54 = vmax.f32 %v2943_v46, %v2947_v16  ;;  %v2952_v38 = vmax.f32 %v2944_v9, %v2948_v33  ;;  %v2892_v42 = vpop.permute.xlu1 %2891  ;;  %v2954_v8 = vmax.f32 %v2874_v55, %v2950_v26  ;;  %v6122_v9 = vld [vmem:[#allocation20_spill] sm:$0xff]  ;;  %v2969_v26 = vld [vmem:[#allocation8 + $0x30] sm:$0xff]  ;;  %v6123_v16 = vld [vmem:[#allocation82_spill] sm:$0xff] }
 0xd36   : > { %v2899_v21 = vsel %vm628_vm4, %v2890_v20, %v2892_v42  ;;  %v2932_v2 = vadd.f32 %v2928_v22, %v5451_v17  ;;  %v2814_v17 = vmax.f32 %v5368_v6, 0.0  ;;  %v6124_v33 = vld [vmem:[#allocation45_spill] sm:$0xff]  ;;  %v3163_v22 = vld [vmem:[#allocation8 + $0x58] sm:$0xff] }
 0xd37   : > { %v2955_v48 = vmax.f32 %v2875_v0, %v2951_v54  ;;  %v2933_v61 = vmul.f32 %v2899_v21, %v4389_v24  ;;  %v2894_v49 = vpop.permute.xlu0 %2893  ;;  %3029 = vmatprep.subr.mxu0 %v2954_v8  ;;  %v2956_v32 = vmax.f32 %v2876_v63, %v2952_v38  ;;  %v6129_v54 = vmov 0.0  }
 0xd38   : > { %v2898_v46 = vsel %vm628_vm4, %v2892_v42, %v2894_v49  ;;  %3030 = vmatpush1.msra.mxu0 %v2953_v50 }
 0xd39   : > { %v2934_v18 = vmul.f32 %v2898_v46, %v4392_v58  ;;  %3100 = vmatprep.subr.mxu1 %v2956_v32  ;;  %v2896_v1 = vpop.permute.xlu1 %2895  ;;  %v2937_v55 = vadd.f32 %v2933_v61, %v2929_v5  ;;  %v6130_v32 = vld [vmem:[#allocation57_spill] sm:$0xff]  ;;  %v6131_v46 = vld [vmem:[#allocation59_spill] sm:$0xff] }
 0xd3a   : > { %v2897_v24 = vsel %vm628_vm4, %v2894_v49, %v2896_v1  ;;  %v2900_v0 = vsel %vm628_vm4, %v2896_v1, %v2890_v20  ;;  %3101 = vmatpush1.msra.mxu1 %v2955_v48  ;;  %v6125_v20 = vld [vmem:[#allocation83_spill] sm:$0xff]  ;;  %v3331_v5 = vmul.f32 %v6130_v32, %v5360_v4  ;;  %v3332_v1 = vmul.f32 %v6130_v32, %v5368_v6 }
 0xd3b   : > { %v2938_v63 = vadd.f32 %v2934_v18, %v2930_v11  ;;  %v2935_v36 = vmul.f32 %v2897_v24, %v4401_v25  ;;  %v2936_v62 = vmul.f32 %v2900_v0, %v4404_v59  ;;  %v2957_v52 = vmul.f32 %v2937_v55, %v4412_v57  ;;  %v6105_v57 = vld [vmem:[#allocation54_spill] sm:$0xff]  ;;  %v6106_v59 = vld [vmem:[#allocation56_spill] sm:$0xff] }
 0xd3c   : > { %v2813_v25 = vmax.f32 %v5360_v4, 0.0  ;;  %v3333_v0 = vmul.f32 %v6130_v32, %v5370_v29 }
 0xd3d   : > { %v2939_v58 = vadd.f32 %v2935_v36, %v2931_v60  ;;  %v2940_v47 = vadd.f32 %v2936_v62, %v2932_v2  ;;  %v2958_v35 = vmul.f32 %v2938_v63, %v4409_v10  ;;  %v2816_v10 = vmax.f32 %v5382_v3, 0.0 }
 0xd3e   : > { %v3334_v36 = vmul.f32 %v6130_v32, %v5382_v3 }
 0xd3f   : > { %v2959_v43 = vmul.f32 %v2939_v58, %v4415_v39  ;;  %3031 = vmatprep.subr.mxu0 %v2958_v35  ;;  %v2960_v37 = vmul.f32 %v2940_v47, %v4426_v14  ;;  %v2815_v14 = vmax.f32 %v5370_v29, 0.0  ;;  %v6108_v39 = vld [vmem:[#allocation58_spill] sm:$0xff] }
 0xd40   : > { %3032 = vmatpush1.msra.mxu0 %v2957_v52 }
 0xd41   : > { %3033 = vmatprep.subr.mxu0 %v5368_v6  ;;  %3102 = vmatprep.subr.mxu1 %v2960_v37 }
 0xd42   : > { %3034 = vmatpush1.msra.mxu0 %v5360_v4  ;;  %3103 = vmatpush1.msra.mxu1 %v2959_v43 }
 0xd43   : > { %3035 = vmatprep.subr.mxu0 %v2814_v17  ;;  %3104 = vmatprep.subr.mxu1 %v5382_v3 }
 0xd44   : > { %3036 = vmatpush1.msra.mxu0 %v2813_v25  ;;  %3105 = vmatpush1.msra.mxu1 %v5370_v29 }
 0xd45   : > { %3037 = vmatprep.subr.mxu0 %v5254_v7  ;;  %3106 = vmatprep.subr.mxu1 %v2816_v10  ;;  %v6107_v7 = vmax.f32 %v5128_v30, 0.0 }
 0xd46   : > { %3038 = vmatpush1.msra.mxu0 %v5257_v40  ;;  %3107 = vmatpush1.msra.mxu1 %v2815_v14  ;;  %v6109_v40 = vmax.f32 %v6105_v57, 0.0 }
 0xd47   : > { %3039 = vmatprep.subr.mxu0 %v5285_v51  ;;  %3108 = vmatprep.subr.mxu1 %v5266_v44  ;;  %v6110_v44 = vld [vmem:[#allocation55_spill] sm:$0xff] }
 0xd48   : > { %3040 = vmatpush1.msra.mxu0 %v5288_v45  ;;  %3109 = vmatpush1.msra.mxu1 %v5262_v28  ;;  %v6111_v51 = vld [vmem:[#allocation63_spill] sm:$0xff]  ;;  %v6112_v28 = vmax.f32 %v6108_v39, 0.0  ;;  %v6113_v45 = vld [vmem:[#allocation44_spill] sm:$0xff] }
 0xd49   : > { %3041 = vmatprep.subr.mxu0 %v5128_v30  ;;  %3110 = vmatprep.subr.mxu1 %v5295_v12  ;;  %v6114_v12 = vmax.f32 %v6110_v44, 0.0  ;;  %v6116_v30 = vld [vmem:[#allocation65_spill] sm:$0xff] }
 0xd4a   : > { %3042 = vmatpush1.msra.mxu0 %v6105_v57  ;;  %3111 = vmatpush1.msra.mxu1 %v6106_v59 }
 0xd4b   : > { %3043 = vmatprep.subr.mxu0 %v6107_v7  ;;  %3112 = vmatprep.subr.mxu1 %v6108_v39 }
 0xd4c   : > { %3044 = vmatpush1.msra.mxu0 %v6109_v40  ;;  %3113 = vmatpush1.msra.mxu1 %v6110_v44 }
 0xd4d   : > { %3045 = vmatprep.subr.mxu0 %v6111_v51  ;;  %3114 = vmatprep.subr.mxu1 %v6112_v28 }
 0xd4e   : > { %3046 = vmatpush1.msra.mxu0 %v6113_v45  ;;  %3115 = vmatpush1.msra.mxu1 %v6114_v12 }
 0xd4f   : > { %3047 = vmatprep.subr.mxu0 %v6115_v23  ;;  %3116 = vmatprep.subr.mxu1 %v6116_v30 }
 0xd50   : > { %3048 = vmatpush1.msra.mxu0 %v6117_v31  ;;  %3117 = vmatpush1.msra.mxu1 %v6118_v53 }
 0xd51   : > { %3049 = vmatprep.subr.mxu0 %v6119_v56  ;;  %3118 = vmatprep.subr.mxu1 %v6120_v13 }
 0xd52   : > { %3050 = vmatpush1.msra.mxu0 %v6121_v19  ;;  %3119 = vmatpush1.msra.mxu1 %v6122_v9 }
 0xd53   : > { %3051 = vmatprep.subr.mxu0 %v6123_v16  ;;  %3120 = vmatprep.subr.mxu1 %v6124_v33 }
 0xd54   : > { %3052 = vmatpush1.msra.mxu0 %v6125_v20  ;;  %3121 = vmatpush1.msra.mxu1 %v6126_v41 }
 0xd55   : > { %3518 = vmatmul.mubr.msk.f32.vlgmr.msra.gmra.mxu0 %vm1505_vm7, %v2969_v26  ;;  %3122 = vmatprep.subr.mxu1 %v6127_v34 }
 0xd56   : > { %3123 = vmatpush1.msra.mxu1 %v6128_v27  ;;  %3235 = vmatprep.mubr.f32.mxu0 %v6129_v54 }
 0xd57   : > { %3519 = vmatmul.mubr.msk.f32.vlgmr.msra.gmra.mxu1 %vm1505_vm7, %v2969_v26 }
 0xd58   : > { %3306 = vmatprep.mubr.f32.mxu1 %v6129_v54 }
 0xe15   : > { %v3087_v38 = vpop.f32.mrf.mxu0 }
 0xe16   : > { %v3164_v42 = vmax.f32 %v3087_v38, 0.0 }
 0xe17   : > { %v3089_v8 = vpop.f32.mrf.mxu0  ;;  %v3158_v15 = vpop.f32.mrf.mxu1 }
 0xe18   : > { %v3165_v50 = vmax.f32 %v3089_v8, 0.0  ;;  %v3166_v61 = vmax.f32 %v3158_v15, 0.0 }
 0xe19   : > { %v3160_v21 = vpop.f32.mrf.mxu1 }
 0xe1a   : > { %v3167_v48 = vmax.f32 %v3160_v21, 0.0  ;;  %3201 = vmatprep.subr.mxu0 %v3165_v50 }
 0xe1b   : > { %3202 = vmatpush1.msra.mxu0 %v3164_v42 }
 0xe1c   : > { %3520 = vmatmul.mubr.msk.f32.vlgmr.msra.gmra.mxu0 %vm1150_vm6, %v3163_v22  ;;  %3272 = vmatprep.subr.mxu1 %v3167_v48 }
 0xe1d   : > { %3273 = vmatpush1.msra.mxu1 %v3166_v61 }
 0xe1e   : > { %3521 = vmatmul.mubr.msk.f32.vlgmr.msra.gmra.mxu1 %vm1150_vm6, %v3163_v22 }
 0xedc   : > { %v3237_v49 = vpop.f32.mrf.mxu0 }
 0xedd   : > { %v3349_v11 = vmul.f32 %v6131_v46, %v3237_v49 }
 0xede   : > { %v3239_v18 = vpop.f32.mrf.mxu0  ;;  %v3308_v60 = vpop.f32.mrf.mxu1 }
 0xedf   : > { %v3353_v55 = vadd.f32 %v3349_v11, %v3331_v5  ;;  %v3350_v24 = vmul.f32 %v6131_v46, %v3239_v18  ;;  %v3351_v2 = vmul.f32 %v6131_v46, %v3308_v60 }
 0xee0   : > { %v3310_v4 = vpop.f32.mrf.mxu1 }
 0xee1   : > { %3361 = vst [vmem:[%s5391_s13 + $0x20] sm:$0xff] %v3353_v55  ;;  %v3354_v63 = vadd.f32 %v3350_v24, %v3332_v1  ;;  %v3355_v6 = vadd.f32 %v3351_v2, %v3333_v0  ;;  %v3352_v62 = vmul.f32 %v6131_v46, %v3310_v4 }
 0xee3   : > { %3362 = vst [vmem:[%s5391_s13 + $0x28] sm:$0xff] %v3354_v63  ;;  %3363 = vst [vmem:[%s5391_s13 + $0x30] sm:$0xff] %v3355_v6  ;;  %v3356_v29 = vadd.f32 %v3352_v62, %v3334_v36 }
 0xee5   : > { %3364 = vst [vmem:[%s5391_s13 + $0x38] sm:$0xff] %v3356_v29 }
 0xee6   : > { %3722 = shalt.err (!%p3719_p10)
}
 0xee7   : > { %s3723_s29 = scalar_lea.hbm %s5603_s23, 1024  ;;  %s3727_s7 = scalar_lea.hbm %s5657_s4, 2048 }
 0xee8   : > { %p3724_p6 = scmp.ne.s32.totalorder %s5603_s23, %s3723_s29  ;;  %p3728_p12 = scmp.lt.s32.totalorder %s5603_s23, %s5657_s4 }
 0xee9   : > { %p3729_p11 = scmp.lt.s32.totalorder %s3727_s7, %s3723_s29 }
 0xeea   : > { %p3725_p4 = pnand %p3724_p6, %p6132_p5 }
 0xeeb   : > { %p3730_p13 = por %p3729_p11, %p3728_p12 }
 0xeec   : > { %p3726_p0 = pneg %p3725_p4 }
 0xeee   : > { %p3731_p1 = pnand %p3730_p13, %p3726_p0 }
 0xef0   : > { %3734 = shalt.err (!%p3731_p1)
}
 0xef1   : > { %s3801_s5 = smov 512   ;;  %s3802_s10 = smov 32  }
 0xef2   : > { %3544 = dma.vmem_to_hbm [thread:$0]  (%p6132_p5), %s5605_s11, 1024, %s5603_s23, %s5612_s19, %s3801_s5, %s3801_s5, %s3802_s10  }
 0xef3 PF: > { %s3394_s13 = sand.u32 1, %s3773_s15   ;;  %p6133_p3 = scmp.ne.s32.totalorder %s5834_s28, 0 }
 0xef4   : > { %p6134_p8 = scmp.ge.s32.totalorder %s3785_s18, 2  ;;  %s3395_s9 = scalar_lea.sflag [#allocation5], %s3394_s13 }
 0xef6   : > { %p3561_p2 = pnand %p6134_p8, %p6133_p3 }
 0xef8   : > { %p3562_p9 = pneg %p3561_p2 }
 0xefa   : > { %3768 = dma.done.wait (%p3562_p9), %s3395_s9, 1024  }
 0xefb   : > { %3770 = vsyncadd (%p3562_p9), %s3395_s9, 4294966272  ;;  %p17_p7 = scmp.ge.s32.totalorder %s3853_s21, 4   ;;  %s6135_s15 = smov %s3777_s16 }
 0xefc   : > { %s6136_s16 = smov %s3781_s17  ;;  %s6137_s17 = smov %s3865_s24 }
 0xefd   : > { %s6138_s18 = smov %s3853_s21  ;;  %19 = sbr.rel (!%p17_p7) target bundleno = 8 (0x8), region = 101 }
 0xf02   :  { %3400 = vsyncpa [#allocation4], 1 }
 0xf03   :  { %3402 = vsyncpa [#allocation4 + $0x1], 1 }
 0xf04   :  { %3403 = vsyncpa [#allocation9], 1 }
 0xf05   :  { %3404 = vsyncpa [#allocation5], 1 }
 0xf06   :  { %3406 = vsyncpa [#allocation5 + $0x1], 1 }
 0xf07   :  { %3407 = vsyncpa [#allocation6], 1 }
 0xf08   :  { %3409 = vsyncpa [#allocation6 + $0x1], 1 }

</bundles_post_ra>
